<compile_context>
chip_gen: v6e
topology: v6e:2x2x1
jax: 0.10.0
libtpu: 0.0.40
codegen_flags: <defaults>
</compile_context>

<pallas_src>
import functools
import math

import jax
import jax.numpy as jnp
from jax.experimental import pallas as pl
from jax.experimental.pallas import tpu as pltpu


def ffm_kernel(x_ref, wt_ref, o_ref, *, in_features, pack):
    # x_ref:  (tile_rows, pack*in_features)  -- `pack` coordinate rows per lane-row
    # wt_ref: (in_features, num_freq)        -- frozen weight (scales pre-folded), transposed
    # o_ref:  (tile_rows, pack*out_features) -- lane-dense output slab (>=128 lanes)
    sqrt2 = jnp.float32(math.sqrt(2.0))
    wt = wt_ref[...]
    pieces = []
    for p in range(pack):  # static unroll (pack is 1 or 2 typically)
        xp = x_ref[:, p * in_features:(p + 1) * in_features]
        z = jnp.dot(xp, wt, preferred_element_type=jnp.float32)
        pieces.append(sqrt2 * jnp.sin(z))
        pieces.append(sqrt2 * jnp.cos(z))
    # Single full-lane-width store; the lane concat rides the (idle) XLU slot.
    o_ref[...] = jnp.concatenate(pieces, axis=-1).astype(o_ref.dtype)


def fourier_feature_map(x, coordinate_scales, weight, *, tile_n=4096, out_dtype=None):
    """x: (..., in_features); coordinate_scales: (in_features,);
    weight: (num_freq, in_features) -- same convention as nn.Linear.weight."""
    in_features = x.shape[-1]
    num_freq = weight.shape[0]
    out_features = 2 * num_freq
    if out_dtype is None:
        out_dtype = x.dtype

    lead_shape = x.shape[:-1]
    x2d = x.reshape(-1, in_features).astype(jnp.float32)
    n = x2d.shape[0]

    # Fold frozen coordinate scales into the frozen weight (one-time, tiny op).
    w_t = (weight.astype(jnp.float32)
           * coordinate_scales.reshape(1, in_features).astype(jnp.float32)).T  # (in, num_freq)

    # Row-pack factor so the output lane width is >= 128 (lane-dense stores).
    if out_features < 128 and 128 % out_features == 0:
        pack = 128 // out_features
    else:
        pack = 1

    # Tile sizing: multiple of 8*pack rows; cap for small inputs to avoid over-padding.
    row_align = 8 * pack
    tile_n = max(row_align, (tile_n // row_align) * row_align)
    tile_n = min(tile_n, pl.cdiv(n, row_align) * row_align)
    n_pad = pl.cdiv(n, tile_n) * tile_n
    if n_pad != n:
        x2d = jnp.pad(x2d, ((0, n_pad - n), (0, 0)))

    # Contiguous reinterpretations (no data movement): pack `pack` rows per lane-row.
    rows = n_pad // pack
    tile_rows = tile_n // pack
    packed_in = pack * in_features
    packed_out = pack * out_features
    x_packed = x2d.reshape(rows, packed_in)

    kernel = functools.partial(ffm_kernel, in_features=in_features, pack=pack)

    out = pl.pallas_call(
        kernel,
        out_shape=jax.ShapeDtypeStruct((rows, packed_out), out_dtype),
        grid_spec=pltpu.PrefetchScalarGridSpec(
            num_scalar_prefetch=0,
            grid=(rows // tile_rows,),
            in_specs=[
                pl.BlockSpec((tile_rows, packed_in), lambda i: (i, 0)),
                pl.BlockSpec((in_features, num_freq), lambda i: (0, 0)),
            ],
            out_specs=pl.BlockSpec((tile_rows, packed_out), lambda i: (i, 0)),
        ),
        compiler_params=pltpu.CompilerParams(
            dimension_semantics=("parallel",),
        ),
    )(x_packed, w_t)

    # Undo the row packing (contiguous reshape) and drop padded rows.
    out = out.reshape(n_pad, out_features)[:n]
    return out.reshape(*lead_shape, out_features)


def _reference(x, coordinate_scales, weight):
    z = (x * coordinate_scales) @ weight.T
    return jnp.concatenate(
        (math.sqrt(2.0) * jnp.sin(z), math.sqrt(2.0) * jnp.cos(z)), axis=-1
    )


if __name__ == "__main__":
    # Module config: in_features=3 coordinates, out_features=64 -> num_freq=32.
    in_features = 3
    out_features = 64
    num_freq = out_features // 2
    coordinate_scales = jnp.array([1.0, 2.0, 0.5], dtype=jnp.float32)

    key = jax.random.PRNGKey(0)
    k_w, k_x1, k_x2 = jax.random.split(key, 3)
    # nn.Linear(in_features, num_freq, bias=False).weight.normal_(std=1, mean=0)
    weight = jax.random.normal(k_w, (num_freq, in_features), dtype=jnp.float32)

    # Case 1: batch=2, 128 coordinate points, 3 coords each (aligned rows).
    x1 = jax.random.normal(k_x1, (2, 128, in_features), dtype=jnp.float32)
    out1 = jax.block_until_ready(fourier_feature_map(x1, coordinate_scales, weight))
    ref1 = _reference(x1, coordinate_scales, weight)
    assert out1.shape == (2, 128, out_features)
    assert jnp.allclose(out1, ref1, atol=1e-5, rtol=1e-5)

    # Case 2: ragged row count (exercises the padding / row-packing path).
    x2 = jax.random.normal(k_x2, (2, 100, in_features), dtype=jnp.float32)
    out2 = jax.block_until_ready(fourier_feature_map(x2, coordinate_scales, weight))
    ref2 = _reference(x2, coordinate_scales, weight)
    assert out2.shape == (2, 100, out_features)
    assert jnp.allclose(out2, ref2, atol=1e-5, rtol=1e-5)

    print("KERNEL_OK")
</pallas_src>

<mosaic_0001>
module attributes {stable_mosaic.version = 11 : i64} {
  func.func @ffm_kernel(%arg0: i32, %arg1: memref<128x6xf32, #tpu.memory_space<vmem>>, %arg2: memref<3x32xf32, #tpu.memory_space<vmem>>, %arg3: memref<128x128xf32, #tpu.memory_space<vmem>>) attributes {dimension_semantics = [#tpu.dimension_semantics<parallel>], iteration_bounds = array<i64: 1>, scalar_prefetch = 0 : i64, scratch_operands = 0 : i64, tpu.core_type = #tpu.core_type<tc>, window_params = [{transform_indices = @transform_0, window_bounds = array<i64: 128, 6>}, {pipeline_mode = #tpu.pipeline_mode<synchronous>, transform_indices = @transform_1, window_bounds = array<i64: 3, 32>}, {transform_indices = @transform_2, window_bounds = array<i64: 128, 128>}]} {
    %c0 = arith.constant 0 : index
    %c0_0 = arith.constant 0 : index
    %0 = vector.load %arg2[%c0, %c0_0] : memref<3x32xf32, #tpu.memory_space<vmem>>, vector<3x32xf32>
    %c0_1 = arith.constant 0 : index
    %c0_2 = arith.constant 0 : index
    %1 = vector.load %arg1[%c0_1, %c0_2] : memref<128x6xf32, #tpu.memory_space<vmem>>, vector<128x3xf32>
    %cst = arith.constant dense<0.000000e+00> : vector<128x32xf32>
    %2 = tpu.matmul %1, %0, %cst {dimension_numbers = #tpu.dot_dimension_numbers<[1], [0], [0], [1], [0, 0, 1, 1], [], []>} : vector<128x3xf32>, vector<3x32xf32>, vector<128x32xf32> -> vector<128x32xf32>
    %3 = math.sin %2 : vector<128x32xf32>
    %cst_3 = arith.constant 1.41421354 : f32
    %4 = vector.broadcast %cst_3 : f32 to vector<128x32xf32>
    %5 = arith.mulf %4, %3 : vector<128x32xf32>
    %6 = math.cos %2 : vector<128x32xf32>
    %cst_4 = arith.constant 1.41421354 : f32
    %7 = vector.broadcast %cst_4 : f32 to vector<128x32xf32>
    %8 = arith.mulf %7, %6 : vector<128x32xf32>
    %c0_5 = arith.constant 0 : index
    %c3 = arith.constant 3 : index
    %9 = vector.load %arg1[%c0_5, %c3] : memref<128x6xf32, #tpu.memory_space<vmem>>, vector<128x3xf32>
    %cst_6 = arith.constant dense<0.000000e+00> : vector<128x32xf32>
    %10 = tpu.matmul %9, %0, %cst_6 {dimension_numbers = #tpu.dot_dimension_numbers<[1], [0], [0], [1], [0, 0, 1, 1], [], []>} : vector<128x3xf32>, vector<3x32xf32>, vector<128x32xf32> -> vector<128x32xf32>
    %11 = math.sin %10 : vector<128x32xf32>
    %cst_7 = arith.constant 1.41421354 : f32
    %12 = vector.broadcast %cst_7 : f32 to vector<128x32xf32>
    %13 = arith.mulf %12, %11 : vector<128x32xf32>
    %14 = math.cos %10 : vector<128x32xf32>
    %cst_8 = arith.constant 1.41421354 : f32
    %15 = vector.broadcast %cst_8 : f32 to vector<128x32xf32>
    %16 = arith.mulf %15, %14 : vector<128x32xf32>
    %17 = tpu.concatenate %5, %8, %13, %16 in 1 : vector<128x32xf32>, vector<128x32xf32>, vector<128x32xf32>, vector<128x32xf32> -> vector<128x128xf32>
    %c0_9 = arith.constant 0 : index
    %c0_10 = arith.constant 0 : index
    %18 = vector.load %arg3[%c0_9, %c0_10] : memref<128x128xf32, #tpu.memory_space<vmem>>, vector<128x128xf32>
    tpu.vector_store %arg3[%c0_9, %c0_10], %17 {strides = array<i32>} : memref<128x128xf32, #tpu.memory_space<vmem>>, vector<128x128xf32>,
    return
  }
  func.func @transform_0(%arg0: i32) -> (i32, i32) {
    %c0_i32 = arith.constant 0 : i32
    %c0_i32_0 = arith.constant 0 : i32
    return %arg0, %c0_i32 : i32, i32
  }
  func.func @transform_1(%arg0: i32) -> (i32, i32) {
    %c0_i32 = arith.constant 0 : i32
    %c0_i32_0 = arith.constant 0 : i32
    %c0_i32_1 = arith.constant 0 : i32
    return %c0_i32, %c0_i32_0 : i32, i32
  }
  func.func @transform_2(%arg0: i32) -> (i32, i32) {
    %c0_i32 = arith.constant 0 : i32
    %c0_i32_0 = arith.constant 0 : i32
    return %arg0, %c0_i32 : i32, i32
  }
}

</mosaic_0001>

<bundles_post_ra>
// kernel: tpu_custom_call.1
= control target key start
LH: loop header
LB: loop body
LE: loop exit
PB: predicated region body
PF: predicated region fallthrough
CT: control target
= control target key end

     0   :  { %vm78_vm0 = vcmask 1042432   ;;  %vm29_vm1 = vcmask 23552   ;;  %s8066_s13 = smov 125   ;;  %s11689_s0 = inlined_call_operand.vmem [shape: f32[128,6], index: 0, kind: input, shape index: {}]   ;;  %s11690_s1 = inlined_call_operand.vmem [shape: f32[3,32], index: 1, kind: input, shape index: {}]   ;;  %s11691_s2 = inlined_call_operand.hbm [shape: f32[128,128], index: 2, kind: output, shape index: {}]  }
   0x1   :  { %v13_v0 = vld [vmem:[%s11689_s0] sm:$0xff]  ;;  %v14_v2 = vld [vmem:[%s11689_s0 + $0x8] sm:$0xff]  ;;  %v15_v3 = vld [vmem:[%s11689_s0 + $0x10] sm:$0xff] }
   0x2   :  { %v12_v1 = vld [vmem:[%s11690_s1] sm:$0x7]  ;;  %3571 = vrot.lane.b32.xlu0 %v13_v0, %s8066_s13  ;;  %7725 = vmatprep.mubr.msk.f32.mxu0 %vm29_vm1, %v13_v0  ;;  %v16_v4 = vld [vmem:[%s11689_s0 + $0x18] sm:$0xff] }
   0x3   :  { %7723 = vmatprep.subr.msk.mxu0 %vm78_vm0, %v12_v1  ;;  %3575 = vrot.lane.b32.xlu1 %v15_v3, %s8066_s13  ;;  %v17_v5 = vld [vmem:[%s11689_s0 + $0x20] sm:$0xff] }
   0x4   :  { %7724 = vmatpush3.msk.msra.mxu0 %vm78_vm0, %v12_v1  ;;  %7749 = vmatprep.subr.msk.mxu1 %vm78_vm0, %v12_v1 }
   0x5   :  { %7726 = vmatmul.mubr.msk.f32.vlgmr.msra.gmra.mxu0 %vm29_vm1, %v14_v2  ;;  %7750 = vmatpush3.msk.msra.mxu1 %vm78_vm0, %v12_v1 }
   0x6   :  { %7728 = vmatprep.mubr.msk.f32.mxu0 %vm29_vm1, %v15_v3  ;;  %3573 = vrot.lane.b32.xlu0 %v14_v2, %s8066_s13 }
   0x7   :  { %7 = vsyncpa [#allocation3], 0  ;;  %3577 = vrot.lane.b32.xlu1 %v16_v4, %s8066_s13  ;;  %v18_v6 = vld [vmem:[%s11689_s0 + $0x28] sm:$0xff]  ;;  %v19_v7 = vld [vmem:[%s11689_s0 + $0x30] sm:$0xff]  ;;  %v11705_v59 = vmov 683565275  }
   0x8   :  { %v20_v8 = vld [vmem:[%s11689_s0 + $0x38] sm:$0xff]  ;;  %v21_v9 = vld [vmem:[%s11689_s0 + $0x40] sm:$0xff]  ;;  %v22_v10 = vld [vmem:[%s11689_s0 + $0x48] sm:$0xff]  ;;  %v11693_v61 = vmov 2475754826   ;;  %s8075_s16 = smov 96  }
   0x9   :  { %7729 = vmatmul.mubr.msk.f32.gmra.mxu0 %vm29_vm1, %v16_v4  ;;  %v23_v11 = vld [vmem:[%s11689_s0 + $0x50] sm:$0xff]  ;;  %v24_v12 = vld [vmem:[%s11689_s0 + $0x58] sm:$0xff]  ;;  %v25_v13 = vld [vmem:[%s11689_s0 + $0x60] sm:$0xff]  ;;  %v11696_v63 = vmov 2131351028   ;;  %s8076_s17 = smov [#allocation2]  }
   0xa   :  { %7731 = vmatprep.mubr.msk.f32.mxu0 %vm29_vm1, %v17_v5  ;;  %3579 = vrot.lane.b32.xlu0 %v17_v5, %s8066_s13  ;;  %v26_v14 = vld [vmem:[%s11689_s0 + $0x68] sm:$0xff]  ;;  %v27_v15 = vld [vmem:[%s11689_s0 + $0x70] sm:$0xff]  ;;  %v28_v16 = vld [vmem:[%s11689_s0 + $0x78] sm:$0xff]  ;;  %v11698_v1 = vmov 2102212464   ;;  %s8073_s0 = smov 32  }
   0xb   :  { %3581 = vrot.lane.b32.xlu1 %v18_v6, %s8066_s13  ;;  %v11701_v3 = vmov 920167782   ;;  %s7388_s1 = sshll.u32 %s8076_s17, 4  ;;  %s7389_s1 = int_to_ptr.vmem [resolvable:$true] %s7388_s1 }
   0xc   :  { %s8044_s18 = scalar_lea.vmem %s7389_s1, 2048  ;;  %p8049_p1 = scmp.lt.s32.totalorder %s7389_s1, %s7389_s1 }
   0xd   :  { %7732 = vmatmul.mubr.msk.f32.gmra.mxu0 %vm29_vm1, %v18_v6  ;;  %p8045_p0 = scmp.ne.s32.totalorder %s7389_s1, %s8044_s18  ;;  %p8050_p2 = scmp.lt.s32.totalorder %s8044_s18, %s8044_s18 }
   0xe   :  { %7734 = vmatprep.mubr.msk.f32.mxu0 %vm29_vm1, %v19_v7  ;;  %3583 = vrot.lane.b32.xlu0 %v19_v7, %s8066_s13 }
   0xf   :  { %3585 = vrot.lane.b32.xlu1 %v20_v8, %s8066_s13  ;;  %p8051_p3 = por %p8050_p2, %p8049_p1 }
  0x11   :  { %7735 = vmatmul.mubr.msk.f32.gmra.mxu0 %vm29_vm1, %v20_v8  ;;  %p8052_p4 = pnand %p8051_p3, %p8045_p0 }
  0x12   :  { %7737 = vmatprep.mubr.msk.f32.mxu0 %vm29_vm1, %v21_v9  ;;  %3587 = vrot.lane.b32.xlu0 %v21_v9, %s8066_s13 }
  0x13   :  { %3589 = vrot.lane.b32.xlu1 %v22_v10, %s8066_s13 }
  0x15   :  { %7738 = vmatmul.mubr.msk.f32.gmra.mxu0 %vm29_vm1, %v22_v10  ;;  %v11703_v10 = vmov 1326507024  }
  0x16   :  { %7740 = vmatprep.mubr.msk.f32.mxu0 %vm29_vm1, %v23_v11  ;;  %3591 = vrot.lane.b32.xlu0 %v23_v11, %s8066_s13 }
  0x17   :  { %3593 = vrot.lane.b32.xlu1 %v24_v12, %s8066_s13 }
  0x19   :  { %7741 = vmatmul.mubr.msk.f32.gmra.mxu0 %vm29_vm1, %v24_v12 }
  0x1a   :  { %7743 = vmatprep.mubr.msk.f32.mxu0 %vm29_vm1, %v25_v13  ;;  %3595 = vrot.lane.b32.xlu0 %v25_v13, %s8066_s13 }
  0x1b   :  { %3597 = vrot.lane.b32.xlu1 %v26_v14, %s8066_s13 }
  0x1d   :  { %7744 = vmatmul.mubr.msk.f32.gmra.mxu0 %vm29_vm1, %v26_v14 }
  0x1e   :  { %7746 = vmatprep.mubr.msk.f32.mxu0 %vm29_vm1, %v27_v15  ;;  %3599 = vrot.lane.b32.xlu0 %v27_v15, %s8066_s13 }
  0x1f   :  { %3601 = vrot.lane.b32.xlu1 %v28_v16, %s8066_s13  ;;  %s8074_s13 = smov 64  }
  0x21   :  { %7747 = vmatmul.mubr.msk.f32.gmra.mxu0 %vm29_vm1, %v28_v16 }
  0x74   :  { %v3572_v17 = vpop.permute.xlu0 %3571 }
  0x75   :  { %7751 = vmatprep.mubr.msk.f32.mxu1 %vm29_vm1, %v3572_v17  ;;  %v3576_v18 = vpop.permute.xlu1 %3575 }
  0x78   :  { %v3574_v19 = vpop.permute.xlu0 %3573 }
  0x79   :  { %7752 = vmatmul.mubr.msk.f32.vlgmr.msra.gmra.mxu1 %vm29_vm1, %v3574_v19  ;;  %v3578_v20 = vpop.permute.xlu1 %3577 }
  0x7a   :  { %7754 = vmatprep.mubr.msk.f32.mxu1 %vm29_vm1, %v3576_v18 }
  0x7c   :  { %v3580_v21 = vpop.permute.xlu0 %3579 }
  0x7d   :  { %7755 = vmatmul.mubr.msk.f32.gmra.mxu1 %vm29_vm1, %v3578_v20  ;;  %v3582_v22 = vpop.permute.xlu1 %3581 }
  0x7e   :  { %7757 = vmatprep.mubr.msk.f32.mxu1 %vm29_vm1, %v3580_v21 }
  0x80   :  { %v3584_v23 = vpop.permute.xlu0 %3583 }
  0x81   :  { %7758 = vmatmul.mubr.msk.f32.gmra.mxu1 %vm29_vm1, %v3582_v22  ;;  %v3586_v24 = vpop.permute.xlu1 %3585 }
  0x82   :  { %7760 = vmatprep.mubr.msk.f32.mxu1 %vm29_vm1, %v3584_v23 }
  0x84   :  { %v3588_v25 = vpop.permute.xlu0 %3587 }
  0x85   :  { %7761 = vmatmul.mubr.msk.f32.gmra.mxu1 %vm29_vm1, %v3586_v24  ;;  %v3590_v26 = vpop.permute.xlu1 %3589 }
  0x86   :  { %7763 = vmatprep.mubr.msk.f32.mxu1 %vm29_vm1, %v3588_v25 }
  0x88   :  { %v3592_v27 = vpop.permute.xlu0 %3591 }
  0x89   :  { %7764 = vmatmul.mubr.msk.f32.gmra.mxu1 %vm29_vm1, %v3590_v26  ;;  %v3594_v28 = vpop.permute.xlu1 %3593 }
  0x8a   :  { %7766 = vmatprep.mubr.msk.f32.mxu1 %vm29_vm1, %v3592_v27 }
  0x8c   :  { %v3596_v29 = vpop.permute.xlu0 %3595 }
  0x8d   :  { %7767 = vmatmul.mubr.msk.f32.gmra.mxu1 %vm29_vm1, %v3594_v28  ;;  %v3598_v30 = vpop.permute.xlu1 %3597 }
  0x8e   :  { %7769 = vmatprep.mubr.msk.f32.mxu1 %vm29_vm1, %v3596_v29 }
  0x90   :  { %v3600_v31 = vpop.permute.xlu0 %3599 }
  0x91   :  { %7770 = vmatmul.mubr.msk.f32.gmra.mxu1 %vm29_vm1, %v3598_v30  ;;  %v3602_v32 = vpop.permute.xlu1 %3601 }
  0x92   :  { %7772 = vmatprep.mubr.msk.f32.mxu1 %vm29_vm1, %v3600_v31 }
  0x95   :  { %7773 = vmatmul.mubr.msk.f32.gmra.mxu1 %vm29_vm1, %v3602_v32 }
  0xc5   :  { %v8197_v33 = vpop.f32.mrf.mxu0 }
  0xc6   :  { %v331_v34 = vand.u32 2147483647, %v8197_v33  ;;  %v334_v35 = vand.u32 2139095040, %v8197_v33 }
  0xc7   :  { %v8201_v36 = vpop.f32.mrf.mxu0 }
  0xc8   :  { %v335_v37 = vshrl.u32 %v334_v35, 23  ;;  %v338_v38 = vand.u32 8388607, %v331_v34  ;;  %v227_v39 = vand.u32 2147483647, %v8201_v36  ;;  %v230_v40 = vand.u32 2139095040, %v8201_v36 }
  0xc9   :  { %v8207_v41 = vpop.f32.mrf.mxu0 }
  0xca   :  { %v7420_v42 = vadd.s32 4294967169, %v335_v37  ;;  %v231_v43 = vshrl.u32 %v230_v40, 23  ;;  %v234_v44 = vand.u32 8388607, %v227_v39  ;;  %v542_v45 = vand.u32 2139095040, %v8207_v41 }
  0xcb   :  { %v339_v47 = vor.u32 8388608, %v338_v38 }
  0xcc   :  { %v341_v46 = vadd.s32 1, %v7420_v42  ;;  %v7416_v48 = vadd.s32 4294967169, %v231_v43  ;;  %v235_v49 = vor.u32 8388608, %v234_v44  ;;  %v543_v50 = vshrl.u32 %v542_v45, 23 }
  0xcd   :  { %v8212_v55 = vshll.u32 %v339_v47, 8 }
  0xce   :  { %vm342_vm2 = vcmp.gt.s32.totalorder %v341_v46, 0  ;;  %v237_v52 = vadd.s32 1, %v7416_v48  ;;  %v8214_v56 = vshll.u32 %v235_v49, 8  ;;  %v8216_v57 = vadd.s32 4294967169, %v543_v50 }
  0xcf   :  { %v343_v51 = vsel %vm342_vm2, %v341_v46, 0 }
  0xd0   :  { %v344_v53 = vshrl.u32 %v343_v51, 5  ;;  %v345_v54 = vand.u32 31, %v343_v51  ;;  %vm238_vm3 = vcmp.gt.s32.totalorder %v237_v52, 0 }
  0xd1   :  { %v239_v15 = vsel %vm238_vm3, %v237_v52, 0 }
  0xd2   :  { %v346_v58 = vsub.s32 32, %v345_v54  ;;  %v348_v60 = vshll.u32 %v11705_v59, %v345_v54  ;;  %v351_v62 = vshll.u32 %v11693_v61, %v345_v54  ;;  %v354_v0 = vshll.u32 %v11696_v63, %v345_v54 }
  0xd3   :  { %v357_v2 = vshll.u32 %v11698_v1, %v345_v54  ;;  %v360_v4 = vshll.u32 %v11701_v3, %v345_v54  ;;  %vm363_vm4 = vcmp.lt.s32.totalorder %v344_v53, 1  ;;  %vm364_vm5 = vcmp.lt.s32.totalorder %v344_v53, 2 }
  0xd4   :  { %v347_v5 = vshrl.u32 %v11705_v59, %v346_v58  ;;  %v349_v6 = vshrl.u32 %v11693_v61, %v346_v58  ;;  %v352_v7 = vshrl.u32 %v11696_v63, %v346_v58  ;;  %v355_v8 = vshrl.u32 %v11698_v1, %v346_v58 }
  0xd5   :  { %v358_v9 = vshrl.u32 %v11701_v3, %v346_v58  ;;  %v361_v11 = vshrl.u32 %v11703_v10, %v346_v58  ;;  %vm365_vm6 = vcmp.lt.s32.totalorder %v344_v53, 3  ;;  %vm366_vm7 = vcmp.lt.s32.totalorder %v344_v53, 4 }
  0xd6   :  { %v350_v12 = vor.u32 %v349_v6, %v348_v60  ;;  %v353_v13 = vor.u32 %v352_v7, %v351_v62  ;;  %v356_v14 = vor.u32 %v355_v8, %v354_v0  ;;  %v240_v18 = vshrl.u32 %v239_v15, 5 }
  0xd7   :  { %v359_v16 = vor.u32 %v358_v9, %v357_v2  ;;  %v362_v17 = vor.u32 %v361_v11, %v360_v4  ;;  %v241_v19 = vand.u32 31, %v239_v15  ;;  %v549_v62 = vadd.s32 1, %v8216_v57 }
  0xd8   :  { %v367_v20 = vsel %vm363_vm4, %v347_v5, %v350_v12  ;;  %v368_v21 = vsel %vm366_vm7, %v356_v14, 2102212464  ;;  %v371_v22 = vsel %vm363_vm4, %v350_v12, %v353_v13  ;;  %v375_v23 = vsel %vm363_vm4, %v353_v13, %v356_v14 }
  0xd9   :  { %v369_v24 = vsel %vm365_vm6, %v353_v13, %v368_v21  ;;  %v372_v25 = vsel %vm366_vm7, %v359_v16, 920167782  ;;  %v376_v26 = vsel %vm366_vm7, %v362_v17, 1326507024  ;;  %v242_v27 = vsub.s32 32, %v241_v19 }
  0xda   :  { %v370_v28 = vsel %vm364_vm5, %v367_v20, %v369_v24  ;;  %v373_v29 = vsel %vm365_vm6, %v356_v14, %v372_v25  ;;  %v377_v30 = vsel %vm365_vm6, %v359_v16, %v376_v26  ;;  %v244_v31 = vshll.u32 %v11705_v59, %v241_v19 }
  0xdb   :  { %v374_v32 = vsel %vm364_vm5, %v371_v22, %v373_v29  ;;  %v378_v35 = vsel %vm364_vm5, %v375_v23, %v377_v30  ;;  %v386_v37 = vmul.u32 %v8212_v55, %v370_v28  ;;  %v243_v38 = vshrl.u32 %v11705_v59, %v242_v27  ;;  %v8285_v30 = vpop.f32.mrf.mxu0 }
  0xdc   :  { %v8243_v40 = vmul.u32.u64.low %v8212_v55, %v378_v35  ;;  %v8244_v42 = vmul.u32.u64.high %v8212_v55, %v378_v35, %v8243_v40  ;;  %v8247_v43 = vmul.u32.u64.low %v8212_v55, %v374_v32  ;;  %v8248_v44 = vmul.u32.u64.high %v8212_v55, %v374_v32, %v8247_v43  ;;  %11806 = vst [vmem:[#allocation5_spill] sm:$0xff] %v8285_v30 }
  0xdd   :  { %v245_v45 = vshrl.u32 %v11693_v61, %v242_v27  ;;  %v247_v46 = vshll.u32 %v11693_v61, %v241_v19  ;;  %v248_v47 = vshrl.u32 %v11696_v63, %v242_v27  ;;  %v250_v48 = vshll.u32 %v11696_v63, %v241_v19 }
  0xde   :  { %v251_v49 = vshrl.u32 %v11698_v1, %v242_v27  ;;  %v253_v50 = vshll.u32 %v11698_v1, %v241_v19  ;;  %v254_v51 = vshrl.u32 %v11701_v3, %v242_v27  ;;  %v256_v52 = vshll.u32 %v11701_v3, %v241_v19 }
  0xdf   :  { %v246_v53 = vor.u32 %v245_v45, %v244_v31  ;;  %v249_v54 = vor.u32 %v248_v47, %v247_v46  ;;  %v257_v55 = vshrl.u32 %v11703_v10, %v242_v27  ;;  %vm259_vm8 = vcmp.lt.s32.totalorder %v240_v18, 1 }
  0xe0   :  { %vm388_vm9 = vc.u32 %v8244_v42, %v8247_v43  ;;  %v389_v58 = vadd.s32 1, %v8248_v44  ;;  %v252_v60 = vor.u32 %v251_v49, %v250_v48  ;;  %v255_v0 = vor.u32 %v254_v51, %v253_v50 }
  0xe1   :  { %v258_v2 = vor.u32 %v257_v55, %v256_v52  ;;  %vm260_vm10 = vcmp.lt.s32.totalorder %v240_v18, 2  ;;  %vm261_vm11 = vcmp.lt.s32.totalorder %v240_v18, 3  ;;  %vm262_vm12 = vcmp.lt.s32.totalorder %v240_v18, 4 }
  0xe2   :  { %v390_v4 = vsel %vm388_vm9, %v389_v58, %v8248_v44  ;;  %v263_v5 = vsel %vm259_vm8, %v243_v38, %v246_v53  ;;  %v267_v6 = vsel %vm259_vm8, %v246_v53, %v249_v54  ;;  %v264_v8 = vsel %vm262_vm12, %v252_v60, 2102212464 }
  0xe3   :  { %v391_v7 = vadd.s32 %v390_v4, %v386_v37  ;;  %v268_v9 = vsel %vm262_vm12, %v255_v0, 920167782  ;;  %v271_v11 = vsel %vm259_vm8, %v249_v54, %v252_v60  ;;  %v265_v12 = vsel %vm261_vm11, %v249_v54, %v264_v8 }
  0xe4   :  { %v269_v13 = vsel %vm261_vm11, %v252_v60, %v268_v9  ;;  %v272_v14 = vsel %vm262_vm12, %v258_v2, 1326507024  ;;  %vm550_vm13 = vcmp.gt.s32.totalorder %v549_v62, 0  ;;  %v539_v17 = vand.u32 2147483647, %v8207_v41 }
  0xe5   :  { %v392_v57 = vadd.s32 536870912, %v391_v7  ;;  %v270_v15 = vsel %vm260_vm10, %v267_v6, %v269_v13  ;;  %v273_v16 = vsel %vm261_vm11, %v255_v0, %v272_v14  ;;  %v266_v19 = vsel %vm260_vm10, %v263_v5, %v265_v12 }
  0xe6   :  { %v274_v20 = vsel %vm260_vm10, %v271_v11, %v273_v16  ;;  %v8273_v21 = vmul.u32.u64.low %v8214_v56, %v270_v15  ;;  %v8274_v22 = vmul.u32.u64.high %v8214_v56, %v270_v15, %v8273_v21  ;;  %v551_v26 = vsel %vm550_vm13, %v549_v62, 0 }
  0xe7   :  { %v8277_v23 = vshrl.u32 %v392_v57, 30  ;;  %v8280_v24 = vmul.u32.u64.low %v8214_v56, %v274_v20  ;;  %v8281_v25 = vmul.u32.u64.high %v8214_v56, %v274_v20, %v8280_v24  ;;  %v553_v27 = vand.u32 31, %v551_v26 }
  0xe8   :  { %v282_v29 = vmul.u32 %v8214_v56, %v266_v19  ;;  %v285_v18 = vadd.s32 1, %v8274_v22  ;;  %v546_v35 = vand.u32 8388607, %v539_v17  ;;  %v438_v56 = vand.u32 2139095040, %v8285_v30 }
  0xe9   :  { %v394_v28 = vshll.u32 %v8277_v23, 30  ;;  %v554_v31 = vsub.s32 32, %v553_v27  ;;  %vm284_vm14 = vc.u32 %v8281_v25, %v8273_v21  ;;  %v556_v38 = vshll.u32 %v11705_v59, %v553_v27 }
  0xea   :  { %v286_v37 = vsel %vm284_vm14, %v285_v18, %v8274_v22  ;;  %v559_v40 = vshll.u32 %v11693_v61, %v553_v27  ;;  %v552_v48 = vshrl.u32 %v551_v26, 5  ;;  %v562_v49 = vshll.u32 %v11696_v63, %v553_v27 }
  0xeb   :  { %v8288_v32 = vsub.s32 %v391_v7, %v394_v28  ;;  %v287_v45 = vadd.s32 %v286_v37, %v282_v29  ;;  %v557_v46 = vshrl.u32 %v11693_v61, %v554_v31  ;;  %v560_v47 = vshrl.u32 %v11696_v63, %v554_v31 }
  0xec   :  { %v563_v50 = vshrl.u32 %v11698_v1, %v554_v31  ;;  %v565_v51 = vshll.u32 %v11698_v1, %v553_v27  ;;  %v547_v54 = vor.u32 8388608, %v546_v35  ;;  %v435_v55 = vand.u32 2147483647, %v8285_v30 }
  0xed   :  { %v397_v44 = vsub.s32 0, %v8288_v32  ;;  %v288_v53 = vadd.s32 536870912, %v287_v45  ;;  %v566_v58 = vshrl.u32 %v11701_v3, %v554_v31  ;;  %v568_v60 = vshll.u32 %v11701_v3, %v553_v27 }
  0xee   :  { %v569_v62 = vshrl.u32 %v11703_v10, %v554_v31  ;;  %v439_v0 = vshrl.u32 %v438_v56, 23  ;;  %v558_v5 = vor.u32 %v557_v46, %v556_v38  ;;  %v561_v6 = vor.u32 %v560_v47, %v559_v40 }
  0xef   :  { %v7421_v52 = vmin.u32 %v397_v44, %v8288_v32  ;;  %v289_v4 = vshrl.u32 %v288_v53, 30  ;;  %v564_v7 = vor.u32 %v563_v50, %v562_v49  ;;  %v567_v8 = vor.u32 %v566_v58, %v565_v51 }
  0xf0   :  { %vm571_vm15 = vcmp.lt.s32.totalorder %v552_v48, 1  ;;  %vm574_vm0 = vcmp.lt.s32.totalorder %v552_v48, 4  ;;  %v555_v12 = vshrl.u32 %v11705_v59, %v554_v31  ;;  %vm573_vm1 = vcmp.lt.s32.totalorder %v552_v48, 3 }
  0xf1   :  { %v399_v2 = vclz %v7421_v52  ;;  %v290_v11 = vshll.u32 %v289_v4, 30  ;;  %v570_v13 = vor.u32 %v569_v62, %v568_v60  ;;  %vm572_vm2 = vcmp.lt.s32.totalorder %v552_v48, 2 }
  0xf2   :  { %v580_v14 = vsel %vm574_vm0, %v567_v8, 920167782  ;;  %v587_v57 = vshll.u32 %v547_v54, 8  ;;  %v576_v16 = vsel %vm574_vm0, %v564_v7, 2102212464  ;;  %v579_v19 = vsel %vm571_vm15, %v558_v5, %v561_v6 }
  0xf3   :  { %v7422_v9 = vadd.s32 4294967294, %v399_v2  ;;  %v8311_v15 = vsub.s32 %v287_v45, %v290_v11  ;;  %v387_v20 = vadd.s32 %v8247_v43, %v8244_v42  ;;  %v581_v24 = vsel %vm573_vm1, %v564_v7, %v580_v14 }
  0xf4   :  { %v7424_v26 = vadd.s32 4294967169, %v439_v0  ;;  %v575_v29 = vsel %vm571_vm15, %v555_v12, %v558_v5  ;;  %v583_v18 = vsel %vm571_vm15, %v561_v6, %v564_v7  ;;  %v577_v35 = vsel %vm573_vm1, %v561_v6, %v576_v16  ;;  %v8356_v16 = vpop.f32.mrf.mxu0 }
  0xf5   :  { %vm7423_vm3 = vcmp.lt.s32.totalorder %v7422_v9, 0  ;;  %v293_v28 = vsub.s32 0, %v8311_v15  ;;  %v582_v37 = vsel %vm572_vm2, %v579_v19, %v581_v24  ;;  %v584_v38 = vsel %vm574_vm0, %v570_v13, 1326507024  ;;  %11809 = vst [vmem:[#allocation6_spill] sm:$0xff] %v8356_v16 }
  0xf6   :  { %v402_v22 = vsel %vm7423_vm3, 0, %v7422_v9  ;;  %v585_v43 = vsel %vm573_vm1, %v567_v8, %v584_v38  ;;  %v8327_v44 = vmul.u32.u64.low %v587_v57, %v582_v37  ;;  %v8328_v45 = vmul.u32.u64.high %v587_v57, %v582_v37, %v8327_v44 }
  0xf7   :  { %v407_v27 = vsub.s32 4294967266, %v402_v22  ;;  %v403_v31 = vsub.s32 32, %v402_v22  ;;  %v7417_v42 = vmin.u32 %v293_v28, %v8311_v15  ;;  %v586_v56 = vsel %vm572_vm2, %v583_v18, %v585_v43 }
  0xf8   :  { %v442_v46 = vand.u32 8388607, %v435_v55  ;;  %v404_v47 = vshll.u32 %v8288_v32, %v402_v22  ;;  %v578_v50 = vsel %vm572_vm2, %v575_v29, %v577_v35  ;;  %v445_v51 = vadd.s32 1, %v7424_v26 }
  0xf9   :  { %v408_v40 = vadd.s32 127, %v407_v27  ;;  %v295_v49 = vclz %v7417_v42  ;;  %v405_v52 = vshrl.u32 %v387_v20, %v403_v31  ;;  %v417_v60 = vsub.s32 4, %v8277_v23 }
  0xfa   :  { %v8335_v54 = vmul.u32.u64.low %v587_v57, %v586_v56  ;;  %v8336_v58 = vmul.u32.u64.high %v587_v57, %v586_v56, %v8335_v54  ;;  %v313_v0 = vsub.s32 4, %v289_v4  ;;  %vm446_vm4 = vcmp.gt.s32.totalorder %v445_v51, 0 }
  0xfb   :  { %v409_v53 = vshll.u32 %v408_v40, 23  ;;  %v7418_v62 = vadd.s32 4294967294, %v295_v49  ;;  %v597_v2 = vadd.s32 1, %v8328_v45  ;;  %v447_v5 = vsel %vm446_vm4, %v445_v51, 0 }
  0xfc   :  { %vm333_vm5 = vcmp.lt.s32.totalorder %v8197_v33, 0  ;;  %v594_v32 = vmul.u32 %v587_v57, %v578_v50  ;;  %v449_v48 = vand.u32 31, %v447_v5  ;;  %v406_v6 = vor.u32 %v405_v52, %v404_v47 }
  0xfd   :  { %vm7419_vm6 = vcmp.lt.s32.totalorder %v7418_v62, 0  ;;  %v410_v7 = vor.u32 4788187, %v409_v53  ;;  %vm229_vm7 = vcmp.lt.s32.totalorder %v8201_v36, 0  ;;  %vm596_vm8 = vc.u32 %v8336_v58, %v8327_v44 }
  0xfe   :  { %v418_v8 = vsel %vm333_vm5, %v417_v60, %v8277_v23  ;;  %v314_v9 = vsel %vm229_vm7, %v313_v0, %v289_v4  ;;  %v443_v11 = vor.u32 8388608, %v442_v46  ;;  %vm8351_vm9 = vcmp.le.f32.partialorder %v331_v34, 0.7853982 }
  0xff   :  { %v298_v13 = vsel %vm7419_vm6, 0, %v7418_v62  ;;  %v598_v14 = vsel %vm596_vm8, %v597_v2, %v8328_v45  ;;  %v450_v57 = vsub.s32 32, %v449_v48  ;;  %vm8360_vm10 = vcmp.le.f32.partialorder %v227_v39, 0.7853982 }
 0x100   :  { %v283_v4 = vadd.s32 %v8273_v21, %v8281_v25  ;;  %v599_v19 = vadd.s32 %v598_v14, %v594_v32  ;;  %v747_v34 = vand.u32 2147483647, %v8356_v16  ;;  %v411_v20 = vand.u32 2147483647, %v410_v7 }
 0x101   :  { %v413_v22 = vcvt.s32.f32 %v406_v6  ;;  %v8369_v24 = vsel %vm8351_vm9, 0, %v418_v8  ;;  %v8373_v26 = vsel %vm8360_vm10, 0, %v314_v9  ;;  %v303_v39 = vsub.s32 4294967266, %v298_v13 }
 0x102   :  { %v600_v27 = vadd.s32 536870912, %v599_v19  ;;  %v8375_v28 = vshll.u32 %v443_v11, 8  ;;  %v750_v29 = vand.u32 2139095040, %v8356_v16  ;;  %v452_v21 = vshll.u32 %v11705_v59, %v449_v48 }
 0x103   :  { %v453_v25 = vshrl.u32 %v11693_v61, %v450_v57  ;;  %v455_v18 = vshll.u32 %v11693_v61, %v449_v48  ;;  %v456_v31 = vshrl.u32 %v11696_v63, %v450_v57  ;;  %v448_v37 = vshrl.u32 %v447_v5, 5 }
 0x104   :  { %v8382_v35 = vshrl.u32 %v600_v27, 30  ;;  %v458_v38 = vshll.u32 %v11696_v63, %v449_v48  ;;  %v459_v40 = vshrl.u32 %v11698_v1, %v450_v57  ;;  %v414_v42 = vmul.f32 %v413_v22, %v411_v20 }
 0x105   :  { %v299_v43 = vsub.s32 32, %v298_v13  ;;  %v461_v56 = vshll.u32 %v11698_v1, %v449_v48  ;;  %v462_v45 = vshrl.u32 %v11701_v3, %v450_v57  ;;  %v300_v46 = vshll.u32 %v8311_v15, %v298_v13 }
 0x106   :  { %v304_v47 = vadd.s32 127, %v303_v39  ;;  %v602_v49 = vshll.u32 %v8382_v35, 30  ;;  %v464_v50 = vshll.u32 %v11701_v3, %v449_v48  ;;  %v454_v51 = vor.u32 %v453_v25, %v452_v21 }
 0x107   :  { %v457_v52 = vor.u32 %v456_v31, %v455_v18  ;;  %v463_v53 = vor.u32 %v462_v45, %v461_v56  ;;  %v465_v54 = vshrl.u32 %v11703_v10, %v450_v57  ;;  %v451_v62 = vshrl.u32 %v11705_v59, %v450_v57 }
 0x108   :  { %v8392_v60 = vsub.s32 %v599_v19, %v602_v49  ;;  %v460_v0 = vor.u32 %v459_v40, %v458_v38  ;;  %vm467_vm11 = vcmp.lt.s32.totalorder %v448_v37, 1  ;;  %v415_v2 = vxor.u32 2147483648, %v414_v42 }
 0x109   :  { %v301_v5 = vshrl.u32 %v283_v4, %v299_v43  ;;  %v466_v32 = vor.u32 %v465_v54, %v464_v50  ;;  %vm470_vm12 = vcmp.lt.s32.totalorder %v448_v37, 4  ;;  %v305_v15 = vshll.u32 %v304_v47, 23 }
 0x10a   :  { %v605_v6 = vsub.s32 0, %v8392_v60  ;;  %vm469_vm13 = vcmp.lt.s32.totalorder %v448_v37, 3  ;;  %v472_v48 = vsel %vm470_vm12, %v460_v0, 2102212464  ;;  %vm468_vm14 = vcmp.lt.s32.totalorder %v448_v37, 2 }
 0x10b   :  { %v475_v7 = vsel %vm467_vm11, %v454_v51, %v457_v52  ;;  %v476_v8 = vsel %vm470_vm12, %v463_v53, 920167782  ;;  %v751_v9 = vshrl.u32 %v750_v29, 23  ;;  %v471_v13 = vsel %vm467_vm11, %v451_v62, %v454_v51 }
 0x10c   :  { %v7429_v11 = vmin.u32 %v605_v6, %v8392_v60  ;;  %v473_v14 = vsel %vm469_vm13, %v457_v52, %v472_v48  ;;  %v479_v57 = vsel %vm467_vm11, %v457_v52, %v460_v0  ;;  %v416_v4 = vsel %vm333_vm5, %v415_v2, %v414_v42 }
 0x10d   :  { %v302_v19 = vor.u32 %v301_v5, %v300_v46  ;;  %v477_v20 = vsel %vm469_vm13, %v460_v0, %v476_v8  ;;  %v480_v22 = vsel %vm470_vm12, %v466_v32, 1326507024  ;;  %v306_v39 = vor.u32 4788187, %v305_v15  ;;  %v8437_v32 = vpop.f32.mrf.mxu0 }
 0x10e   :  { %v607_v27 = vclz %v7429_v11  ;;  %v478_v29 = vsel %vm468_vm14, %v475_v7, %v477_v20  ;;  %v481_v21 = vsel %vm469_vm13, %v463_v53, %v480_v22  ;;  %v474_v25 = vsel %vm468_vm14, %v471_v13, %v473_v14  ;;  %11812 = vst [vmem:[#allocation7_spill] sm:$0xff] %v8437_v32 }
 0x10f   :  { %v482_v18 = vsel %vm468_vm14, %v479_v57, %v481_v21  ;;  %v8412_v31 = vmul.u32.u64.low %v8375_v28, %v478_v29  ;;  %v8413_v38 = vmul.u32.u64.high %v8375_v28, %v478_v29, %v8412_v31  ;;  %v7436_v56 = vadd.s32 4294967169, %v751_v9 }
 0x110   :  { %v7430_v40 = vadd.s32 4294967294, %v607_v27  ;;  %v8417_v42 = vmul.u32.u64.low %v8375_v28, %v482_v18  ;;  %v8418_v43 = vmul.u32.u64.high %v8375_v28, %v482_v18, %v8417_v42  ;;  %v424_v45 = vadd.s32 3, %v8369_v24 }
 0x111   :  { %v320_v46 = vadd.s32 3, %v8373_v26  ;;  %v757_v47 = vadd.s32 1, %v7436_v56  ;;  %v419_v37 = vsel %vm8351_vm9, %v8197_v33, %v416_v4  ;;  %v490_v50 = vmul.u32 %v8375_v28, %v474_v25 }
 0x112   :  { %vm7431_vm15 = vcmp.lt.s32.totalorder %v7430_v40, 0  ;;  %v493_v51 = vadd.s32 1, %v8413_v38  ;;  %v307_v52 = vand.u32 2147483647, %v306_v39  ;;  %v309_v53 = vcvt.s32.f32 %v302_v19 }
 0x113   :  { %v610_v49 = vsel %vm7431_vm15, 0, %v7430_v40  ;;  %vm541_vm0 = vcmp.lt.s32.totalorder %v8207_v41, 0  ;;  %v754_v62 = vand.u32 8388607, %v747_v34  ;;  %v8430_v0 = vand.u32 3, %v424_v45 }
 0x114   :  { %v615_v54 = vsub.s32 4294967266, %v610_v49  ;;  %v595_v2 = vadd.s32 %v8327_v44, %v8336_v58  ;;  %vm492_vm1 = vc.u32 %v8418_v43, %v8412_v31  ;;  %vm758_vm2 = vcmp.gt.s32.totalorder %v757_v47, 0 }
 0x115   :  { %7916 = vcosq.f32 %v419_v37  ;;  %v611_v12 = vsub.s32 32, %v610_v49  ;;  %v494_v28 = vsel %vm492_vm1, %v493_v51, %v8413_v38  ;;  %v759_v5 = vsel %vm758_vm2, %v757_v47, 0 }
 0x116   :  { %7918 = vsinq.f32 %v419_v37  ;;  %v8439_v15 = vand.u32 3, %v320_v46  ;;  %v495_v6 = vadd.s32 %v494_v28, %v490_v50  ;;  %v761_v48 = vand.u32 31, %v759_v5 }
 0x117   :  { %v310_v7 = vmul.f32 %v309_v53, %v307_v52  ;;  %v616_v8 = vadd.s32 127, %v615_v54  ;;  %v625_v44 = vsub.s32 4, %v8382_v35  ;;  %v755_v58 = vor.u32 8388608, %v754_v62 }
 0x118   :  { %v612_v9 = vshll.u32 %v8392_v60, %v610_v49  ;;  %v496_v11 = vadd.s32 536870912, %v495_v6  ;;  %v762_v13 = vsub.s32 32, %v761_v48  ;;  %v646_v14 = vand.u32 2139095040, %v8437_v32 }
 0x119   :  { %v613_v57 = vshrl.u32 %v595_v2, %v611_v12  ;;  %v764_v4 = vshll.u32 %v11705_v59, %v761_v48  ;;  %v767_v19 = vshll.u32 %v11693_v61, %v761_v48  ;;  %v773_v20 = vshll.u32 %v11698_v1, %v761_v48 }
 0x11a   :  { %v8447_v22 = vshrl.u32 %v496_v11, 30  ;;  %v760_v39 = vshrl.u32 %v759_v5, 5  ;;  %v765_v27 = vshrl.u32 %v11693_v61, %v762_v13  ;;  %v768_v29 = vshrl.u32 %v11696_v63, %v762_v13 }
 0x11b   :  { %v617_v21 = vshll.u32 %v616_v8, 23  ;;  %v770_v60 = vshll.u32 %v11696_v63, %v761_v48  ;;  %v771_v25 = vshrl.u32 %v11698_v1, %v762_v13  ;;  %v774_v18 = vshrl.u32 %v11701_v3, %v762_v13 }
 0x11c   :  { %v311_v38 = vxor.u32 2147483648, %v310_v7  ;;  %v626_v40 = vsel %vm541_vm0, %v625_v44, %v8382_v35  ;;  %v498_v42 = vshll.u32 %v8447_v22, 30  ;;  %v776_v56 = vshll.u32 %v11701_v3, %v761_v48 }
 0x11d   :  { %v766_v45 = vor.u32 %v765_v27, %v764_v4  ;;  %v769_v46 = vor.u32 %v768_v29, %v767_v19  ;;  %v775_v47 = vor.u32 %v774_v18, %v773_v20  ;;  %v777_v37 = vshrl.u32 %v11703_v10, %v762_v13 }
 0x11e   :  { %v614_v49 = vor.u32 %v613_v57, %v612_v9  ;;  %v8460_v50 = vsub.s32 %v495_v6, %v498_v42  ;;  %vm779_vm3 = vcmp.lt.s32.totalorder %v760_v39, 1  ;;  %v647_v51 = vshrl.u32 %v646_v14, 23 }
 0x11f   :  { %vm8464_vm4 = vcmp.le.f32.partialorder %v539_v17, 0.7853982  ;;  %v618_v35 = vor.u32 4788187, %v617_v21  ;;  %v763_v53 = vshrl.u32 %v11705_v59, %v762_v13  ;;  %v772_v54 = vor.u32 %v771_v25, %v770_v60 }
 0x120   :  { %v795_v62 = vshll.u32 %v755_v58, 8  ;;  %v501_v2 = vsub.s32 0, %v8460_v50  ;;  %v778_v12 = vor.u32 %v777_v37, %v776_v56  ;;  %vm781_vm5 = vcmp.lt.s32.totalorder %v760_v39, 3 }
 0x121   :  { %vm782_vm6 = vcmp.lt.s32.totalorder %v760_v39, 4  ;;  %vm780_vm8 = vcmp.lt.s32.totalorder %v760_v39, 2  ;;  %v787_v5 = vsel %vm779_vm3, %v766_v45, %v769_v46  ;;  %v621_v48 = vcvt.s32.f32 %v614_v49 }
 0x122   :  { %v784_v28 = vsel %vm782_vm6, %v772_v54, 2102212464  ;;  %v788_v17 = vsel %vm782_vm6, %v775_v47, 920167782  ;;  %v8473_v6 = vpop.eup %7916  ;;  %vm437_vm9 = vcmp.lt.s32.totalorder %v8285_v30, 0  ;;  %v7425_v8 = vmin.u32 %v501_v2, %v8460_v50 }
 0x123   :  { %v643_v44 = vand.u32 2147483647, %v8437_v32  ;;  %v7432_v58 = vadd.s32 4294967169, %v647_v51  ;;  %v8478_v9 = vpop.eup %7918  ;;  %v783_v11 = vsel %vm779_vm3, %v763_v53, %v766_v45  ;;  %v785_v13 = vsel %vm781_vm5, %v769_v46, %v784_v28 }
 0x124   :  { %v789_v14 = vsel %vm781_vm5, %v772_v54, %v788_v17  ;;  %v791_v57 = vsel %vm779_vm3, %v769_v46, %v772_v54  ;;  %v619_v4 = vand.u32 2147483647, %v618_v35  ;;  %v503_v19 = vclz %v7425_v8  ;;  %v8514_v54 = vpop.f32.mrf.mxu0 }
 0x125   :  { %v790_v20 = vsel %vm780_vm8, %v787_v5, %v789_v14  ;;  %v792_v27 = vsel %vm782_vm6, %v778_v12, 1326507024  ;;  %v312_v29 = vsel %vm229_vm7, %v311_v38, %v310_v7  ;;  %vm8490_vm11 = vcmp.le.f32.partialorder %v435_v55, 0.7853982  ;;  %11818 = vst [vmem:[#allocation9_spill] sm:$0xff] %v8514_v54 }
 0x126   :  { %v793_v60 = vsel %vm781_vm5, %v775_v47, %v792_v27  ;;  %v8495_v25 = vmul.u32.u64.low %v795_v62, %v790_v20  ;;  %v8496_v18 = vmul.u32.u64.high %v795_v62, %v790_v20, %v8495_v25  ;;  %v7426_v42 = vadd.s32 4294967294, %v503_v19 }
 0x127   :  { %v786_v56 = vsel %vm780_vm8, %v783_v11, %v785_v13  ;;  %v794_v45 = vsel %vm780_vm8, %v791_v57, %v793_v60  ;;  %v653_v46 = vadd.s32 1, %v7432_v58  ;;  %v521_v7 = vsub.s32 4, %v8447_v22 }
 0x128   :  { %v8502_v38 = vmul.u32.u64.low %v795_v62, %v794_v45  ;;  %v8503_v37 = vmul.u32.u64.high %v795_v62, %v794_v45, %v8502_v38  ;;  %v650_v55 = vand.u32 8388607, %v643_v44  ;;  %v622_v49 = vmul.f32 %v621_v48, %v619_v4 }
 0x129   :  { %v8509_v47 = vsel %vm8464_vm4, 0, %v626_v40  ;;  %vm7427_vm7 = vcmp.lt.s32.totalorder %v7426_v42, 0  ;;  %vm654_vm12 = vcmp.gt.s32.totalorder %v653_v46, 0  ;;  %v802_v39 = vmul.u32 %v795_v62, %v786_v56 }
 0x12a   :  { %11817 = vst [vmem:[#allocation8_spill] sm:$0xff] %v8509_v47  ;;  %v8511_v51 = vsel %vm7427_vm7, 0, %v7426_v42  ;;  %v805_v35 = vadd.s32 1, %v8496_v18  ;;  %v655_v53 = vsel %vm654_vm12, %v653_v46, 0  ;;  %v8519_v2 = vsel %vm8360_vm10, %v8201_v36, %v312_v29 }
 0x12b   :  { %v8522_v12 = vadd.s32 3, %v8509_v47  ;;  %v491_v40 = vadd.s32 %v8412_v31, %v8418_v43  ;;  %v11695_v28 = vand.u32 2147483647, %v8514_v54  ;;  %v522_v62 = vsel %vm437_vm9, %v521_v7, %v8447_v22 }
 0x12c   :  { %vm804_vm13 = vc.u32 %v8503_v37, %v8495_v25  ;;  %v651_v5 = vor.u32 8388608, %v650_v55  ;;  %v657_v17 = vand.u32 31, %v655_v53  ;;  %v623_v23 = vxor.u32 2147483648, %v622_v49 }
 0x12d   :  { %v511_v48 = vsub.s32 4294967266, %v8511_v51  ;;  %v806_v8 = vsel %vm804_vm13, %v805_v35, %v8496_v18  ;;  %v958_v58 = vand.u32 2139095040, %v8514_v54  ;;  %v507_v22 = vsub.s32 32, %v8511_v51 }
 0x12e   :  { %v807_v11 = vadd.s32 %v806_v8, %v802_v39  ;;  %v658_v31 = vsub.s32 32, %v657_v17  ;;  %v660_v43 = vshll.u32 %v11705_v59, %v657_v17  ;;  %v663_v13 = vshll.u32 %v11693_v61, %v657_v17 }
 0x12f   :  { %v8540_v14 = vsel %vm8490_vm11, 0, %v522_v62  ;;  %v656_v57 = vshrl.u32 %v655_v53, 5  ;;  %v669_v4 = vshll.u32 %v11698_v1, %v657_v17  ;;  %v666_v29 = vshll.u32 %v11696_v63, %v657_v17 }
 0x130   :  { %11819 = vst [vmem:[#allocation10_spill] sm:$0xff] %v8540_v14  ;;  %v808_v19 = vadd.s32 536870912, %v807_v11  ;;  %v661_v20 = vshrl.u32 %v11693_v61, %v658_v31  ;;  %v664_v27 = vshrl.u32 %v11696_v63, %v658_v31  ;;  %v512_v60 = vadd.s32 127, %v511_v48 }
 0x131   :  { %v667_v18 = vshrl.u32 %v11698_v1, %v658_v31  ;;  %v670_v42 = vshrl.u32 %v11701_v3, %v658_v31  ;;  %v959_v56 = vshrl.u32 %v958_v58, 23  ;;  %v672_v38 = vshll.u32 %v11701_v3, %v657_v17 }
 0x132   :  { %v8548_v45 = vshrl.u32 %v808_v19, 30  ;;  %v662_v46 = vor.u32 %v661_v20, %v660_v43  ;;  %v665_v7 = vor.u32 %v664_v27, %v663_v13  ;;  %v508_v55 = vshll.u32 %v8460_v50, %v8511_v51 }
 0x133   :  { %v671_v39 = vor.u32 %v670_v42, %v669_v4  ;;  %v673_v35 = vshrl.u32 %v11703_v10, %v658_v31  ;;  %vm675_vm10 = vcmp.lt.s32.totalorder %v656_v57, 1  ;;  %v509_v53 = vshrl.u32 %v491_v40, %v507_v22 }
 0x134   :  { %v810_v62 = vshll.u32 %v8548_v45, 30  ;;  %v659_v48 = vshrl.u32 %v11705_v59, %v658_v31  ;;  %v668_v8 = vor.u32 %v667_v18, %v666_v29  ;;  %v513_v58 = vshll.u32 %v512_v60, 23 }
 0x135   :  { %v674_v19 = vor.u32 %v673_v35, %v672_v38  ;;  %vm677_vm14 = vcmp.lt.s32.totalorder %v656_v57, 3  ;;  %vm678_vm15 = vcmp.lt.s32.totalorder %v656_v57, 4  ;;  %vm676_vm1 = vcmp.lt.s32.totalorder %v656_v57, 2 }
 0x136   :  { %v8556_v43 = vsub.s32 %v807_v11, %v810_v62  ;;  %v680_v17 = vsel %vm678_vm15, %v668_v8, 2102212464  ;;  %v683_v50 = vsel %vm675_vm10, %v662_v46, %v665_v7  ;;  %v624_v51 = vsel %vm541_vm0, %v623_v23, %v622_v49 }
 0x137   :  { %v528_v40 = vadd.s32 3, %v8540_v14  ;;  %v684_v13 = vsel %vm678_vm15, %v671_v39, 920167782  ;;  %v691_v22 = vshll.u32 %v651_v5, 8  ;;  %v679_v4 = vsel %vm675_vm10, %v659_v48, %v662_v46 }
 0x138   :  { %v813_v31 = vsub.s32 0, %v8556_v43  ;;  %v681_v20 = vsel %vm677_vm14, %v665_v7, %v680_v17  ;;  %v685_v11 = vsel %vm677_vm14, %v668_v8, %v684_v13  ;;  %v687_v29 = vsel %vm675_vm10, %v665_v7, %v668_v8 }
 0x139   :  { %v686_v27 = vsel %vm676_vm1, %v683_v50, %v685_v11  ;;  %v688_v60 = vsel %vm678_vm15, %v674_v19, 1326507024  ;;  %v7444_v18 = vadd.s32 4294967169, %v959_v56  ;;  %v510_v42 = vor.u32 %v509_v53, %v508_v55 }
 0x13a   :  { %v514_v49 = vor.u32 4788187, %v513_v58  ;;  %v7437_v23 = vmin.u32 %v813_v31, %v8556_v43  ;;  %v689_v5 = vsel %vm677_vm14, %v671_v39, %v688_v60  ;;  %v682_v38 = vsel %vm676_vm1, %v679_v4, %v681_v20 }
 0x13b   :  { %v690_v46 = vsel %vm676_vm1, %v687_v29, %v689_v5  ;;  %v8572_v35 = vmul.u32.u64.low %v691_v22, %v686_v27  ;;  %v8573_v62 = vmul.u32.u64.high %v691_v22, %v686_v27, %v8572_v35  ;;  %7920 = vcosq.f32 %v8519_v2 }
 0x13c   :  { %v815_v48 = vclz %v7437_v23  ;;  %v8577_v7 = vmul.u32.u64.low %v691_v22, %v690_v46  ;;  %v8578_v8 = vmul.u32.u64.high %v691_v22, %v690_v46, %v8577_v7  ;;  %7922 = vsinq.f32 %v8519_v2 }
 0x13d   :  { %v8584_v56 = vsel %vm8464_vm4, %v8207_v41, %v624_v51  ;;  %v8587_v57 = vand.u32 3, %v8522_v12  ;;  %v965_v55 = vadd.s32 1, %v7444_v18  ;;  %v515_v39 = vand.u32 2147483647, %v514_v49 }
 0x13e   :  { %v517_v53 = vcvt.s32.f32 %v510_v42  ;;  %vm749_vm0 = vcmp.lt.s32.totalorder %v8356_v16, 0  ;;  %v7438_v58 = vadd.s32 4294967294, %v815_v48  ;;  %v698_v19 = vmul.u32 %v691_v22, %v682_v38 }
 0x13f   :  { %v8590_v17 = vand.u32 3, %v528_v40  ;;  %v701_v50 = vadd.s32 1, %v8573_v62  ;;  %v962_v2 = vand.u32 8388607, %v11695_v28  ;;  %vm966_vm2 = vcmp.gt.s32.totalorder %v965_v55, 0 }
 0x140   :  { %v803_v52 = vadd.s32 %v8495_v25, %v8503_v37  ;;  %vm7439_vm3 = vcmp.lt.s32.totalorder %v7438_v58, 0  ;;  %vm700_vm4 = vc.u32 %v8578_v8, %v8572_v35  ;;  %v967_v12 = vsel %vm966_vm2, %v965_v55, 0 }
 0x141   :  { %11820 = vst [vmem:[#allocation11_spill] sm:$0xff] %v8590_v17  ;;  %v818_v51 = vsel %vm7439_vm3, 0, %v7438_v58  ;;  %v833_v13 = vsub.s32 4, %v8548_v45  ;;  %v702_v40 = vsel %vm700_vm4, %v701_v50, %v8573_v62  ;;  %v969_v22 = vand.u32 31, %v967_v12 }
 0x142   :  { %v518_v31 = vmul.f32 %v517_v53, %v515_v39  ;;  %v819_v4 = vsub.s32 32, %v818_v51  ;;  %v823_v20 = vsub.s32 4294967266, %v818_v51  ;;  %v703_v11 = vadd.s32 %v702_v40, %v698_v19 }
 0x143   :  { %v820_v27 = vshll.u32 %v8556_v43, %v818_v51  ;;  %v8602_v29 = vshrl.u32 %v967_v12, 5  ;;  %v970_v25 = vsub.s32 32, %v969_v22  ;;  %v972_v37 = vshll.u32 %v11705_v59, %v969_v22  ;;  %v8620_v12 = vpop.f32.mrf.mxu0 }
 0x144   :  { %v821_v60 = vshrl.u32 %v803_v52, %v819_v4  ;;  %v824_v18 = vadd.s32 127, %v823_v20  ;;  %v704_v42 = vadd.s32 536870912, %v703_v11  ;;  %v975_v49 = vshll.u32 %v11693_v61, %v969_v22  ;;  %11821 = vst [vmem:[#allocation12_spill] sm:$0xff] %v8620_v12 }
 0x145   :  { %v973_v23 = vshrl.u32 %v11693_v61, %v970_v25  ;;  %v976_v5 = vshrl.u32 %v11696_v63, %v970_v25  ;;  %v978_v38 = vshll.u32 %v11696_v63, %v969_v22  ;;  %v981_v46 = vshll.u32 %v11698_v1, %v969_v22 }
 0x146   :  { %v825_v62 = vshll.u32 %v824_v18, 23  ;;  %v8610_v43 = vshrl.u32 %v704_v42, 30  ;;  %v979_v48 = vshrl.u32 %v11698_v1, %v970_v25  ;;  %v982_v7 = vshrl.u32 %v11701_v3, %v970_v25 }
 0x147   :  { %7924 = vcosq.f32 %v8584_v56  ;;  %v834_v55 = vsel %vm749_vm0, %v833_v13, %v8548_v45  ;;  %v963_v39 = vor.u32 8388608, %v962_v2  ;;  %v984_v53 = vshll.u32 %v11701_v3, %v969_v22 }
 0x148   :  { %v519_v58 = vxor.u32 2147483648, %v518_v31  ;;  %v822_v19 = vor.u32 %v821_v60, %v820_v27  ;;  %v706_v50 = vshll.u32 %v8610_v43, 30  ;;  %v974_v52 = vor.u32 %v973_v23, %v972_v37  ;;  %v8622_v51 = vpop.eup %7920 }
 0x149   :  { %v826_v40 = vor.u32 4788187, %v825_v62  ;;  %v977_v4 = vor.u32 %v976_v5, %v975_v49  ;;  %v983_v20 = vor.u32 %v982_v7, %v981_v46  ;;  %v985_v18 = vshrl.u32 %v11703_v10, %v970_v25  ;;  %v8625_v42 = vpop.eup %7922 }
 0x14a   :  { %vm8629_vm5 = vcmp.le.f32.partialorder %v747_v34, 0.7853982  ;;  %v8633_v2 = vsub.s32 %v703_v11, %v706_v50  ;;  %v971_v13 = vshrl.u32 %v11705_v59, %v970_v25  ;;  %v980_v22 = vor.u32 %v979_v48, %v978_v38 }
 0x14b   :  { %vm987_vm6 = vcmp.lt.s32.totalorder %v8602_v29, 1  ;;  %vm645_vm8 = vcmp.lt.s32.totalorder %v8437_v32, 0  ;;  %v986_v27 = vor.u32 %v985_v18, %v984_v53  ;;  %vm990_vm7 = vcmp.lt.s32.totalorder %v8602_v29, 4 }
 0x14c   :  { %v1003_v37 = vshll.u32 %v963_v39, 8  ;;  %v854_v60 = vand.u32 2139095040, %v8620_v12  ;;  %v829_v49 = vcvt.s32.f32 %v822_v19  ;;  %v709_v34 = vsub.s32 0, %v8633_v2 }
 0x14d   :  { %vm989_vm12 = vcmp.lt.s32.totalorder %v8602_v29, 3  ;;  %v992_v11 = vsel %vm990_vm7, %v980_v22, 2102212464  ;;  %v827_v25 = vand.u32 2147483647, %v826_v40  ;;  %vm988_vm13 = vcmp.lt.s32.totalorder %v8602_v29, 2 }
 0x14e   :  { %v995_v23 = vsel %vm987_vm6, %v974_v52, %v977_v4  ;;  %v996_v5 = vsel %vm990_vm7, %v983_v20, 920167782  ;;  %v520_v38 = vsel %vm437_vm9, %v519_v58, %v518_v31  ;;  %vm8653_vm10 = vcmp.le.f32.partialorder %v643_v44, 0.7853982 }
 0x14f   :  { %v7433_v62 = vmin.u32 %v709_v34, %v8633_v2  ;;  %v991_v48 = vsel %vm987_vm6, %v971_v13, %v974_v52  ;;  %v999_v7 = vsel %vm987_vm6, %v977_v4, %v980_v22  ;;  %v993_v39 = vsel %vm989_vm12, %v977_v4, %v992_v11 }
 0x150   :  { %v997_v31 = vsel %vm989_vm12, %v980_v22, %v996_v5  ;;  %v1000_v44 = vsel %vm990_vm7, %v986_v27, 1326507024  ;;  %v855_v53 = vshrl.u32 %v854_v60, 23  ;;  %v729_v19 = vsub.s32 4, %v8610_v43 }
 0x151   :  { %v711_v58 = vclz %v7433_v62  ;;  %v998_v50 = vsel %vm988_vm13, %v995_v23, %v997_v31  ;;  %v1001_v52 = vsel %vm989_vm12, %v983_v20, %v1000_v44  ;;  %v830_v40 = vmul.f32 %v829_v49, %v827_v25 }
 0x152   :  { %v1002_v4 = vsel %vm988_vm13, %v999_v7, %v1001_v52  ;;  %v8675_v18 = vmul.u32.u64.low %v1003_v37, %v998_v50  ;;  %v8676_v13 = vmul.u32.u64.high %v1003_v37, %v998_v50, %v8675_v18  ;;  %v994_v27 = vsel %vm988_vm13, %v991_v48, %v993_v39 }
 0x153   :  { %v7434_v22 = vadd.s32 4294967294, %v711_v58  ;;  %v8681_v60 = vmul.u32.u64.low %v1003_v37, %v1002_v4  ;;  %v8682_v34 = vmul.u32.u64.high %v1003_v37, %v1002_v4, %v8681_v60  ;;  %7926 = vsinq.f32 %v8584_v56 }
 0x154   :  { %v523_v20 = vsel %vm8490_vm11, %v8285_v30, %v520_v38  ;;  %v8690_v49 = vsel %vm8629_vm5, 0, %v834_v55  ;;  %v7440_v11 = vadd.s32 4294967169, %v855_v53  ;;  %v8692_v25 = vpop.eup %7924  ;;  %v730_v29 = vsel %vm645_vm8, %v729_v19, %v8610_v43  ;;  %v8708_v43 = vpop.f32.mrf.mxu0 }
 0x155   :  { %11826 = vst [vmem:[#allocation13_spill] sm:$0xff] %v8690_v49  ;;  %v840_v23 = vadd.s32 3, %v8690_v49  ;;  %vm7435_vm9 = vcmp.lt.s32.totalorder %v7434_v22, 0  ;;  %v11692_v56 = vand.u32 2147483647, %v8620_v12  ;;  %v1010_v62 = vmul.u32 %v1003_v37, %v994_v27  ;;  %11828 = vst [vmem:[#allocation15_spill] sm:$0xff] %v8708_v43 }
 0x156   :  { %v714_v5 = vsel %vm7435_vm9, 0, %v7434_v22  ;;  %v1013_v21 = vadd.s32 1, %v8676_v13  ;;  %v861_v38 = vadd.s32 1, %v7440_v11  ;;  %7928 = vcosq.f32 %v523_v20 }
 0x157   :  { %v831_v55 = vxor.u32 2147483648, %v830_v40  ;;  %v699_v48 = vadd.s32 %v8572_v35, %v8578_v8  ;;  %v719_v7 = vsub.s32 4294967266, %v714_v5  ;;  %v715_v39 = vsub.s32 32, %v714_v5 }
 0x158   :  { %v8704_v31 = vsel %vm8653_vm10, 0, %v730_v29  ;;  %vm1012_vm11 = vc.u32 %v8682_v34, %v8675_v18  ;;  %vm862_vm14 = vcmp.gt.s32.totalorder %v861_v38, 0  ;;  %7930 = vsinq.f32 %v523_v20 }
 0x159   :  { %11827 = vst [vmem:[#allocation14_spill] sm:$0xff] %v8704_v31  ;;  %v8710_v37 = vand.u32 3, %v840_v23  ;;  %v1014_v44 = vsel %vm1012_vm11, %v1013_v21, %v8676_v13  ;;  %v863_v53 = vsel %vm862_vm14, %v861_v38, 0  ;;  %v720_v58 = vadd.s32 127, %v719_v7 }
 0x15a   :  { %v1015_v35 = vadd.s32 %v1014_v44, %v1010_v62  ;;  %v858_v8 = vand.u32 8388607, %v11692_v56  ;;  %v865_v19 = vand.u32 31, %v863_v53  ;;  %v832_v50 = vsel %vm749_vm0, %v831_v55, %v830_v40 }
 0x15b   :  { %11829 = vst [vmem:[#allocation16_spill] sm:$0xff] %v8710_v37  ;;  %v8718_v52 = vadd.s32 3, %v8704_v31  ;;  %v1166_v22 = vand.u32 2139095040, %v8708_v43  ;;  %v716_v27 = vshll.u32 %v8633_v2, %v714_v5  ;;  %v717_v13 = vshrl.u32 %v699_v48, %v715_v39 }
 0x15c   :  { %v1016_v60 = vadd.s32 536870912, %v1015_v35  ;;  %v866_v20 = vsub.s32 32, %v865_v19  ;;  %v864_v11 = vshrl.u32 %v863_v53, 5  ;;  %v868_v23 = vshll.u32 %v11705_v59, %v865_v19 }
 0x15d   :  { %v871_v29 = vshll.u32 %v11693_v61, %v865_v19  ;;  %v877_v62 = vshll.u32 %v11698_v1, %v865_v19  ;;  %v721_v40 = vshll.u32 %v720_v58, 23  ;;  %v859_v7 = vor.u32 8388608, %v858_v8 }
 0x15e   :  { %v1017_v21 = vshrl.u32 %v1016_v60, 30  ;;  %v869_v38 = vshrl.u32 %v11693_v61, %v866_v20  ;;  %v872_v55 = vshrl.u32 %v11696_v63, %v866_v20  ;;  %v874_v44 = vshll.u32 %v11696_v63, %v865_v19 }
 0x15f   :  { %v875_v2 = vshrl.u32 %v11698_v1, %v866_v20  ;;  %v878_v5 = vshrl.u32 %v11701_v3, %v866_v20  ;;  %v835_v48 = vsel %vm8629_vm5, %v8356_v16, %v832_v50  ;;  %v880_v53 = vshll.u32 %v11701_v3, %v865_v19 }
 0x160   :  { %v1018_v39 = vshll.u32 %v1017_v21, 30  ;;  %v1167_v58 = vshrl.u32 %v1166_v22, 23  ;;  %v8735_v60 = vpop.eup %7926  ;;  %v870_v56 = vor.u32 %v869_v38, %v868_v23  ;;  %v873_v61 = vor.u32 %v872_v55, %v871_v29 }
 0x161   :  { %v879_v28 = vor.u32 %v878_v5, %v877_v62  ;;  %v881_v8 = vshrl.u32 %v11703_v10, %v866_v20  ;;  %v718_v63 = vor.u32 %v717_v13, %v716_v27  ;;  %v722_v4 = vor.u32 4788187, %v721_v40 }
 0x162   :  { %v8738_v1 = vsub.s32 %v1015_v35, %v1018_v39  ;;  %vm883_vm15 = vcmp.lt.s32.totalorder %v864_v11, 1  ;;  %vm957_vm1 = vcmp.lt.s32.totalorder %v8514_v54, 0  ;;  %v867_v45 = vshrl.u32 %v11705_v59, %v866_v20 }
 0x163   :  { %v876_v50 = vor.u32 %v875_v2, %v874_v44  ;;  %v899_v31 = vshll.u32 %v859_v7, 8  ;;  %v11830_v19 = vand.u32 2147483647, %v8708_v43  ;;  %v8744_v3 = vpop.eup %7928  ;;  %v882_v29 = vor.u32 %v881_v8, %v880_v53 }
 0x164   :  { %11831 = vst [vmem:[#allocation17_spill] sm:$0xff] %v8744_v3  ;;  %v1021_v23 = vsub.s32 0, %v8738_v1  ;;  %vm885_vm0 = vcmp.lt.s32.totalorder %v864_v11, 3  ;;  %vm886_vm2 = vcmp.lt.s32.totalorder %v864_v11, 4  ;;  %vm884_vm3 = vcmp.lt.s32.totalorder %v864_v11, 2  ;;  %v8780_v11 = vpop.f32.mrf.mxu0 }
 0x165   :  { %v1170_v22 = vand.u32 8388607, %v11830_v19  ;;  %v888_v35 = vsel %vm886_vm2, %v876_v50, 2102212464  ;;  %v891_v27 = vsel %vm883_vm15, %v870_v56, %v873_v61  ;;  %v892_v13 = vsel %vm886_vm2, %v879_v28, 920167782  ;;  %v8750_v20 = vpop.eup %7930 }
 0x166   :  { %11832 = vst [vmem:[#allocation18_spill] sm:$0xff] %v8750_v20  ;;  %v723_v62 = vand.u32 2147483647, %v722_v4  ;;  %v725_v40 = vcvt.s32.f32 %v718_v63  ;;  %v7445_v38 = vmin.u32 %v1021_v23, %v8738_v1  ;;  %v7452_v55 = vadd.s32 4294967169, %v1167_v58  ;;  %11836 = vst [vmem:[#allocation19_spill] sm:$0xff] %v8780_v11 }
 0x167   :  { %v11833_v7 = vand.u32 2147483647, %v8514_v54  ;;  %v887_v2 = vsel %vm883_vm15, %v867_v45, %v870_v56  ;;  %v889_v5 = vsel %vm885_vm0, %v873_v61, %v888_v35  ;;  %v893_v39 = vsel %vm885_vm0, %v876_v50, %v892_v13 }
 0x168   :  { %v895_v53 = vsel %vm883_vm15, %v873_v61, %v876_v50  ;;  %v1023_v8 = vclz %v7445_v38  ;;  %v1041_v4 = vsub.s32 4, %v1017_v21  ;;  %v894_v63 = vsel %vm884_vm3, %v891_v27, %v893_v39 }
 0x169   :  { %vm8755_vm4 = vcmp.le.f32.partialorder %v11833_v7, 0.7853982  ;;  %v896_v58 = vsel %vm886_vm2, %v882_v29, 1326507024  ;;  %7932 = vcosq.f32 %v835_v48  ;;  %v890_v45 = vsel %vm884_vm3, %v887_v2, %v889_v5 }
 0x16a   :  { %v897_v19 = vsel %vm885_vm0, %v879_v28, %v896_v58  ;;  %v8766_v23 = vmul.u32.u64.low %v899_v31, %v894_v63  ;;  %v8767_v7 = vmul.u32.u64.high %v899_v31, %v894_v63, %v8766_v23  ;;  %v7446_v56 = vadd.s32 4294967294, %v1023_v8 }
 0x16b   :  { %v898_v35 = vsel %vm884_vm3, %v895_v53, %v897_v19  ;;  %v1173_v13 = vadd.s32 1, %v7452_v55  ;;  %v8772_v61 = vmul.f32 %v725_v40, %v723_v62  ;;  %v1171_v27 = vor.u32 8388608, %v1170_v22 }
 0x16c   :  { %v8774_v50 = vmul.u32.u64.low %v899_v31, %v898_v35  ;;  %v8775_v38 = vmul.u32.u64.high %v899_v31, %v898_v35, %v8774_v50  ;;  %7934 = vsinq.f32 %v835_v48  ;;  %vm7447_vm5 = vcmp.lt.s32.totalorder %v7446_v56, 0 }
 0x16d   :  { %v1042_v28 = vsel %vm957_vm1, %v1041_v4, %v1017_v21  ;;  %vm1174_vm6 = vcmp.gt.s32.totalorder %v1173_v13, 0  ;;  %v1026_v29 = vsel %vm7447_vm5, 0, %v7446_v56  ;;  %v906_v39 = vmul.u32 %v899_v31, %v890_v45 }
 0x16e   :  { %v909_v8 = vadd.s32 1, %v8767_v7  ;;  %v1175_v2 = vsel %vm1174_vm6, %v1173_v13, 0  ;;  %v1011_v62 = vadd.s32 %v8675_v18, %v8682_v34  ;;  %v1027_v40 = vsub.s32 32, %v1026_v29 }
 0x16f   :  { %v1031_v55 = vsub.s32 4294967266, %v1026_v29  ;;  %v727_v48 = vxor.u32 2147483648, %v8772_v61  ;;  %vm908_vm7 = vc.u32 %v8775_v38, %v8766_v23  ;;  %v1177_v21 = vand.u32 31, %v1175_v2 }
 0x170   :  { %v8788_v5 = vshll.u32 %v1171_v27, 8  ;;  %v8792_v53 = vsel %vm8755_vm4, 0, %v1042_v28  ;;  %v910_v4 = vsel %vm908_vm7, %v909_v8, %v8767_v7  ;;  %v1176_v18 = vshrl.u32 %v1175_v2, 5 }
 0x171   :  { %v1032_v31 = vadd.s32 127, %v1031_v55  ;;  %11837 = vst [vmem:[#allocation20_spill] sm:$0xff] %v8792_v53  ;;  %v911_v34 = vadd.s32 %v910_v4, %v906_v39  ;;  %v1178_v63 = vsub.s32 32, %v1177_v21  ;;  %v1180_v58 = vshll.u32 %v11705_v59, %v1177_v21 }
 0x172   :  { %v11838_v19 = vmov 2475754826   ;;  %v1028_v45 = vshll.u32 %v8738_v1, %v1026_v29  ;;  %v1029_v35 = vshrl.u32 %v1011_v62, %v1027_v40  ;;  %v11839_v50 = vmov 2102212464  }
 0x173   :  { %v1183_v56 = vshll.u32 %v11838_v19, %v1177_v21  ;;  %v1033_v13 = vshll.u32 %v1032_v31, 23  ;;  %v1189_v27 = vshll.u32 %v11839_v50, %v1177_v21  ;;  %v912_v55 = vadd.s32 536870912, %v911_v34 }
 0x174   :  { %v1181_v22 = vshrl.u32 %v11838_v19, %v1178_v63  ;;  %v11840_v28 = vmov 2131351028   ;;  %v1187_v39 = vshrl.u32 %v11839_v50, %v1178_v63  ;;  %v11841_v8 = vmov 920167782  }
 0x175   :  { %v1184_v10 = vshrl.u32 %v11840_v28, %v1178_v63  ;;  %v1186_v7 = vshll.u32 %v11840_v28, %v1177_v21  ;;  %v1190_v2 = vshrl.u32 %v11841_v8, %v1178_v63  ;;  %vm1195_vm12 = vcmp.lt.s32.totalorder %v1176_v18, 1 }
 0x176   :  { %v1062_v4 = vand.u32 2139095040, %v8780_v11  ;;  %v913_v59 = vshrl.u32 %v912_v55, 30  ;;  %v1182_v1 = vor.u32 %v1181_v22, %v1180_v58  ;;  %v1192_v62 = vshll.u32 %v11841_v8, %v1177_v21  ;;  %v8806_v40 = vpop.eup %7932 }
 0x177   :  { %v1185_v29 = vor.u32 %v1184_v10, %v1183_v56  ;;  %v1030_v31 = vor.u32 %v1029_v35, %v1028_v45  ;;  %v1034_v49 = vor.u32 4788187, %v1033_v13  ;;  %v1191_v37 = vor.u32 %v1190_v2, %v1189_v27 }
 0x178   :  { %v11842_v16 = vmov 1326507024   ;;  %v1048_v3 = vadd.s32 3, %v8792_v53  ;;  %v914_v20 = vshll.u32 %v913_v59, 30  ;;  %v11843_v17 = vmov 683565275  }
 0x179   :  { %v1193_v14 = vshrl.u32 %v11842_v16, %v1178_v63  ;;  %v1179_v30 = vshrl.u32 %v11843_v17, %v1178_v63  ;;  %v1188_v47 = vor.u32 %v1187_v39, %v1186_v7  ;;  %vm853_vm13 = vcmp.lt.s32.totalorder %v8620_v12, 0  ;;  %v8812_v22 = vpop.eup %7934 }
 0x17a   :  { %vm1197_vm9 = vcmp.lt.s32.totalorder %v1176_v18, 3  ;;  %vm1198_vm11 = vcmp.lt.s32.totalorder %v1176_v18, 4  ;;  %v1063_v10 = vshrl.u32 %v1062_v4, 23  ;;  %v8814_v21 = vsub.s32 %v911_v34, %v914_v20 }
 0x17b   :  { %v1194_v55 = vor.u32 %v1193_v14, %v1192_v62  ;;  %vm1196_vm14 = vcmp.lt.s32.totalorder %v1176_v18, 2  ;;  %v1200_v58 = vsel %vm1198_vm11, %v1188_v47, 2102212464  ;;  %v1203_v56 = vsel %vm1195_vm12, %v1182_v1, %v1185_v29 }
 0x17c   :  { %v728_v63 = vsel %vm645_vm8, %v727_v48, %v8772_v61  ;;  %v1035_v45 = vand.u32 2147483647, %v1034_v49  ;;  %v1037_v35 = vcvt.s32.f32 %v1030_v31  ;;  %v1204_v14 = vsel %vm1198_vm11, %v1191_v37, 920167782 }
 0x17d   :  { %v11844_v13 = vand.u32 2147483647, %v8620_v12  ;;  %v917_v20 = vsub.s32 0, %v8814_v21  ;;  %v1199_v34 = vsel %vm1195_vm12, %v1179_v30, %v1182_v1  ;;  %v1201_v7 = vsel %vm1197_vm9, %v1185_v29, %v1200_v58 }
 0x17e   :  { %v1205_v39 = vsel %vm1197_vm9, %v1188_v47, %v1204_v14  ;;  %v1207_v49 = vsel %vm1195_vm12, %v1185_v29, %v1188_v47  ;;  %v1208_v48 = vsel %vm1198_vm11, %v1194_v55, 1326507024  ;;  %v7448_v2 = vadd.s32 4294967169, %v1063_v10 }
 0x17f   :  { %vm8824_vm15 = vcmp.le.f32.partialorder %v11844_v13, 0.7853982  ;;  %v1206_v61 = vsel %vm1196_vm14, %v1203_v56, %v1205_v39  ;;  %v731_v4 = vsel %vm8653_vm10, %v8437_v32, %v728_v63  ;;  %v7441_v62 = vmin.u32 %v917_v20, %v8814_v21 }
 0x180   :  { %v937_v31 = vsub.s32 4, %v913_v59  ;;  %v1209_v30 = vsel %vm1197_vm9, %v1191_v37, %v1208_v48  ;;  %v1202_v1 = vsel %vm1196_vm14, %v1199_v34, %v1201_v7  ;;  %v1038_v47 = vmul.f32 %v1037_v35, %v1035_v45 }
 0x181   :  { %v1210_v58 = vsel %vm1196_vm14, %v1207_v49, %v1209_v30  ;;  %v8843_v56 = vmul.u32.u64.low %v8788_v5, %v1206_v61  ;;  %v8844_v14 = vmul.u32.u64.high %v8788_v5, %v1206_v61, %v8843_v56  ;;  %v919_v29 = vclz %v7441_v62 }
 0x182   :  { %v8848_v55 = vmul.u32.u64.low %v8788_v5, %v1210_v58  ;;  %v8849_v46 = vmul.u32.u64.high %v8788_v5, %v1210_v58, %v8848_v55  ;;  %7936 = vcosq.f32 %v731_v4  ;;  %v8852_v10 = vand.u32 3, %v8718_v52 }
 0x183   :  { %v8854_v37 = vand.u32 3, %v1048_v3  ;;  %v1069_v63 = vadd.s32 1, %v7448_v2  ;;  %7938 = vsinq.f32 %v731_v4  ;;  %v7442_v18 = vadd.s32 4294967294, %v919_v29 }
 0x184   :  { %11847 = vst [vmem:[#allocation21_spill] sm:$0xff] %v8852_v10  ;;  %v938_v13 = vsel %vm853_vm13, %v937_v31, %v913_v59  ;;  %v1218_v20 = vmul.u32 %v8788_v5, %v1202_v1  ;;  %v907_v45 = vadd.s32 %v8766_v23, %v8775_v38  ;;  %v1221_v35 = vadd.s32 1, %v8844_v14 }
 0x185   :  { %11848 = vst [vmem:[#allocation22_spill] sm:$0xff] %v8854_v37  ;;  %v11849_v34 = vand.u32 2147483647, %v8780_v11  ;;  %vm1070_vm8 = vcmp.gt.s32.totalorder %v1069_v63, 0  ;;  %v1039_v52 = vxor.u32 2147483648, %v1038_v47  ;;  %vm7443_vm10 = vcmp.lt.s32.totalorder %v7442_v18, 0 }
 0x186   :  { %vm1220_vm0 = vc.u32 %v8849_v46, %v8843_v56  ;;  %v1071_v3 = vsel %vm1070_vm8, %v1069_v63, 0  ;;  %v922_v39 = vsel %vm7443_vm10, 0, %v7442_v18  ;;  %v8868_v59 = vsel %vm8824_vm15, 0, %v938_v13 }
 0x187   :  { %v1066_v7 = vand.u32 8388607, %v11849_v34  ;;  %11850 = vst [vmem:[#allocation23_spill] sm:$0xff] %v8868_v59  ;;  %v1222_v5 = vsel %vm1220_vm0, %v1221_v35, %v8844_v14  ;;  %v1073_v23 = vand.u32 31, %v1071_v3  ;;  %v923_v38 = vsub.s32 32, %v922_v39 }
 0x188   :  { %v924_v61 = vshll.u32 %v8814_v21, %v922_v39  ;;  %v927_v49 = vsub.s32 4294967266, %v922_v39  ;;  %v1223_v48 = vadd.s32 %v1222_v5, %v1218_v20  ;;  %v8872_v2 = vshrl.u32 %v1071_v3, 5 }
 0x189   :  { %v1074_v4 = vsub.s32 32, %v1073_v23  ;;  %v1076_v62 = vshll.u32 %v11843_v17, %v1073_v23  ;;  %v1079_v31 = vshll.u32 %v11838_v19, %v1073_v23  ;;  %v925_v30 = vshrl.u32 %v907_v45, %v923_v38 }
 0x18a   :  { %v928_v1 = vadd.s32 127, %v927_v49  ;;  %v1224_v58 = vadd.s32 536870912, %v1223_v48  ;;  %v1082_v29 = vshll.u32 %v11840_v28, %v1073_v23  ;;  %v1085_v63 = vshll.u32 %v11839_v50, %v1073_v23 }
 0x18b   :  { %v1077_v14 = vshrl.u32 %v11838_v19, %v1074_v4  ;;  %v1080_v55 = vshrl.u32 %v11840_v28, %v1074_v4  ;;  %v1083_v21 = vshrl.u32 %v11839_v50, %v1074_v4  ;;  %v926_v18 = vor.u32 %v925_v30, %v924_v61  ;;  %v8888_v61 = vpop.f32.mrf.mxu0 }
 0x18c   :  { %v929_v13 = vshll.u32 %v928_v1, 23  ;;  %v1225_v20 = vshrl.u32 %v1224_v58, 30  ;;  %v1086_v35 = vshrl.u32 %v11841_v8, %v1074_v4  ;;  %v1040_v45 = vsel %vm957_vm1, %v1039_v52, %v1038_v47  ;;  %11851 = vst [vmem:[#allocation24_spill] sm:$0xff] %v8888_v61 }
 0x18d   :  { %v944_v34 = vadd.s32 3, %v8868_v59  ;;  %v1067_v3 = vor.u32 8388608, %v1066_v7  ;;  %v1088_v39 = vshll.u32 %v11841_v8, %v1073_v23  ;;  %v933_v38 = vcvt.s32.f32 %v926_v18 }
 0x18e   :  { %v930_v5 = vor.u32 4788187, %v929_v13  ;;  %vm1165_vm2 = vcmp.lt.s32.totalorder %v8708_v43, 0  ;;  %v1226_v49 = vshll.u32 %v1225_v20, 30  ;;  %v1075_v53 = vshrl.u32 %v11843_v17, %v1074_v4 }
 0x18f   :  { %v1078_v30 = vor.u32 %v1077_v14, %v1076_v62  ;;  %v1081_v1 = vor.u32 %v1080_v55, %v1079_v31  ;;  %v1087_v58 = vor.u32 %v1086_v35, %v1085_v63  ;;  %v1089_v37 = vshrl.u32 %v11842_v16, %v1074_v4  ;;  %v8891_v47 = vpop.eup %7936 }
 0x190   :  { %11852 = vst [vmem:[#allocation25_spill] sm:$0xff] %v8891_v47  ;;  %v931_v52 = vand.u32 2147483647, %v930_v5  ;;  %v8893_v7 = vsub.s32 %v1223_v48, %v1226_v49  ;;  %v1084_v23 = vor.u32 %v1083_v21, %v1082_v29  ;;  %vm1091_vm1 = vcmp.lt.s32.totalorder %v8872_v2, 1  ;;  %v8896_v18 = vpop.eup %7938 }
 0x191   :  { %11853 = vst [vmem:[#allocation26_spill] sm:$0xff] %v8896_v18  ;;  %v11854_v13 = vand.u32 2147483647, %v8708_v43  ;;  %v1090_v62 = vor.u32 %v1089_v37, %v1088_v39  ;;  %vm1094_vm5 = vcmp.lt.s32.totalorder %v8872_v2, 4  ;;  %v1107_v4 = vshll.u32 %v1067_v3, 8 }
 0x192   :  { %v1374_v31 = vand.u32 2139095040, %v8888_v61  ;;  %v934_v14 = vmul.f32 %v933_v38, %v931_v52  ;;  %v1229_v48 = vsub.s32 0, %v8893_v7  ;;  %vm1093_vm6 = vcmp.lt.s32.totalorder %v8872_v2, 3 }
 0x193   :  { %vm8900_vm3 = vcmp.le.f32.partialorder %v11854_v13, 0.7853982  ;;  %v1096_v29 = vsel %vm1094_vm5, %v1084_v23, 2102212464  ;;  %v1249_v55 = vsub.s32 4, %v1225_v20  ;;  %vm1092_vm7 = vcmp.lt.s32.totalorder %v8872_v2, 2 }
 0x194   :  { %v1099_v21 = vsel %vm1091_vm1, %v1078_v30, %v1081_v1  ;;  %v1100_v37 = vsel %vm1094_vm5, %v1087_v58, 920167782  ;;  %v7453_v63 = vmin.u32 %v1229_v48, %v8893_v7  ;;  %v1095_v35 = vsel %vm1091_vm1, %v1075_v53, %v1078_v30 }
 0x195   :  { %v1097_v3 = vsel %vm1093_vm6, %v1081_v1, %v1096_v29  ;;  %v1103_v39 = vsel %vm1091_vm1, %v1081_v1, %v1084_v23  ;;  %v935_v5 = vxor.u32 2147483648, %v934_v14  ;;  %v1101_v38 = vsel %vm1093_vm6, %v1084_v23, %v1100_v37 }
 0x196   :  { %v1104_v49 = vsel %vm1094_vm5, %v1090_v62, 1326507024  ;;  %v1375_v52 = vshrl.u32 %v1374_v31, 23  ;;  %v1043_v13 = vsel %vm8755_vm4, %v8514_v54, %v1040_v45  ;;  %v1231_v48 = vclz %v7453_v63 }
 0x197   :  { %v1102_v53 = vsel %vm1092_vm7, %v1099_v21, %v1101_v38  ;;  %v1105_v30 = vsel %vm1093_vm6, %v1087_v58, %v1104_v49  ;;  %v1250_v1 = vsel %vm1165_vm2, %v1249_v55, %v1225_v20  ;;  %v1098_v44 = vsel %vm1092_vm7, %v1095_v35, %v1097_v3 }
 0x198   :  { %v1106_v23 = vsel %vm1092_vm7, %v1103_v39, %v1105_v30  ;;  %v8937_v29 = vmul.u32.u64.low %v1107_v4, %v1102_v53  ;;  %v8938_v62 = vmul.u32.u64.high %v1107_v4, %v1102_v53, %v8937_v29  ;;  %v7454_v31 = vadd.s32 4294967294, %v1231_v48  ;;  %v8966_v53 = vpop.f32.mrf.mxu0 }
 0x199   :  { %v8943_v45 = vmul.u32.u64.low %v1107_v4, %v1106_v23  ;;  %v8944_v37 = vmul.u32.u64.high %v1107_v4, %v1106_v23, %v8943_v45  ;;  %v936_v58 = vsel %vm853_vm13, %v935_v5, %v934_v14  ;;  %v8948_v21 = vand.u32 3, %v944_v34  ;;  %11859 = vst [vmem:[#allocation29_spill] sm:$0xff] %v8966_v53 }
 0x19a   :  { %v11721_v20 = vand.u32 2147483647, %v8888_v61  ;;  %v7460_v55 = vadd.s32 4294967169, %v1375_v52  ;;  %7940 = vcosq.f32 %v1043_v13  ;;  %v1219_v63 = vadd.s32 %v8843_v56, %v8849_v46 }
 0x19b   :  { %11857 = vst [vmem:[#allocation27_spill] sm:$0xff] %v8948_v21  ;;  %vm7455_vm4 = vcmp.lt.s32.totalorder %v7454_v31, 0  ;;  %v8955_v2 = vsel %vm8900_vm3, 0, %v1250_v1  ;;  %v1114_v3 = vmul.u32 %v1107_v4, %v1098_v44  ;;  %v1117_v39 = vadd.s32 1, %v8938_v62 }
 0x19c   :  { %11858 = vst [vmem:[#allocation28_spill] sm:$0xff] %v8955_v2  ;;  %v1234_v35 = vsel %vm7455_vm4, 0, %v7454_v31  ;;  %v1381_v38 = vadd.s32 1, %v7460_v55  ;;  %v939_v34 = vsel %vm8824_vm15, %v8620_v12, %v936_v58  ;;  %v1256_v49 = vadd.s32 3, %v8955_v2 }
 0x19d   :  { %v1235_v14 = vsub.s32 32, %v1234_v35  ;;  %v1239_v5 = vsub.s32 4294967266, %v1234_v35  ;;  %7942 = vsinq.f32 %v1043_v13  ;;  %v1236_v56 = vshll.u32 %v8893_v7, %v1234_v35 }
 0x19e   :  { %vm1116_vm12 = vc.u32 %v8944_v37, %v8937_v29  ;;  %vm1382_vm13 = vcmp.gt.s32.totalorder %v1381_v38, 0  ;;  %7944 = vcosq.f32 %v939_v34  ;;  %v1378_v30 = vand.u32 8388607, %v11721_v20 }
 0x19f   :  { %v1237_v46 = vshrl.u32 %v1219_v63, %v1235_v14  ;;  %v1240_v4 = vadd.s32 127, %v1239_v5  ;;  %v1118_v52 = vsel %vm1116_vm12, %v1117_v39, %v8938_v62  ;;  %v1383_v48 = vsel %vm1382_vm13, %v1381_v38, 0 }
 0x1a0   :  { %v1119_v27 = vadd.s32 %v1118_v52, %v1114_v3  ;;  %v1385_v1 = vand.u32 31, %v1383_v48  ;;  %7946 = vsinq.f32 %v939_v34  ;;  %v8970_v7 = vand.u32 3, %v1256_v49 }
 0x1a1   :  { %v1241_v13 = vshll.u32 %v1240_v4, 23  ;;  %v11729_v23 = vand.u32 2147483647, %v8966_v53  ;;  %v8973_v44 = vshrl.u32 %v1383_v48, 5  ;;  %v1270_v62 = vand.u32 2139095040, %v8966_v53 }
 0x1a2   :  { %11860 = vst [vmem:[#allocation30_spill] sm:$0xff] %v8970_v7  ;;  %v1120_v31 = vadd.s32 536870912, %v1119_v27  ;;  %v1386_v45 = vsub.s32 32, %v1385_v1  ;;  %v1238_v58 = vor.u32 %v1237_v46, %v1236_v56  ;;  %v1388_v55 = vshll.u32 %v11843_v17, %v1385_v1 }
 0x1a3   :  { %v1391_v63 = vshll.u32 %v11838_v19, %v1385_v1  ;;  %v1397_v35 = vshll.u32 %v11839_v50, %v1385_v1  ;;  %v1242_v3 = vor.u32 4788187, %v1241_v13  ;;  %v1379_v14 = vor.u32 8388608, %v1378_v30 }
 0x1a4   :  { %v1121_v39 = vshrl.u32 %v1120_v31, 30  ;;  %v1389_v38 = vshrl.u32 %v11838_v19, %v1386_v45  ;;  %v1392_v34 = vshrl.u32 %v11840_v28, %v1386_v45  ;;  %v1394_v5 = vshll.u32 %v11840_v28, %v1385_v1 }
 0x1a5   :  { %v1395_v49 = vshrl.u32 %v11839_v50, %v1386_v45  ;;  %v1398_v4 = vshrl.u32 %v11841_v8, %v1386_v45  ;;  %vm1061_vm9 = vcmp.lt.s32.totalorder %v8780_v11, 0  ;;  %v1400_v46 = vshll.u32 %v11841_v8, %v1385_v1 }
 0x1a6   :  { %v1122_v56 = vshll.u32 %v1121_v39, 30  ;;  %v1271_v52 = vshrl.u32 %v1270_v62, 23  ;;  %v1274_v48 = vand.u32 8388607, %v11729_v23  ;;  %v1390_v13 = vor.u32 %v1389_v38, %v1388_v55 }
 0x1a7   :  { %v1393_v31 = vor.u32 %v1392_v34, %v1391_v63  ;;  %v1399_v20 = vor.u32 %v1398_v4, %v1397_v35  ;;  %v1401_v30 = vshrl.u32 %v11842_v16, %v1386_v45  ;;  %v8989_v2 = vpop.eup %7940  ;;  %v1243_v7 = vand.u32 2147483647, %v1242_v3  ;;  %v9013_v3 = vpop.f32.mrf.mxu0 }
 0x1a8   :  { %11861 = vst [vmem:[#allocation31_spill] sm:$0xff] %v8989_v2  ;;  %v1245_v21 = vcvt.s32.f32 %v1238_v58  ;;  %v8991_v12 = vsub.s32 %v1119_v27, %v1122_v56  ;;  %vm1403_vm11 = vcmp.lt.s32.totalorder %v8973_v44, 1  ;;  %v11862_v54 = vand.u32 2147483647, %v8780_v11 }
 0x1a9   :  { %v1145_v62 = vsub.s32 4, %v1121_v39  ;;  %v1387_v55 = vshrl.u32 %v11843_v17, %v1386_v45  ;;  %v1396_v63 = vor.u32 %v1395_v49, %v1394_v5  ;;  %v1419_v35 = vshll.u32 %v1379_v14, 8 }
 0x1aa   :  { %vm8996_vm14 = vcmp.le.f32.partialorder %v11862_v54, 0.7853982  ;;  %v1125_v38 = vsub.s32 0, %v8991_v12  ;;  %v1402_v34 = vor.u32 %v1401_v30, %v1400_v46  ;;  %vm1405_vm15 = vcmp.lt.s32.totalorder %v8973_v44, 3  ;;  %v9004_v27 = vpop.eup %7942 }
 0x1ab   :  { %vm1406_vm8 = vcmp.lt.s32.totalorder %v8973_v44, 4  ;;  %11865 = vst [vmem:[#allocation32_spill] sm:$0xff] %v9004_v27  ;;  %vm1404_vm10 = vcmp.lt.s32.totalorder %v8973_v44, 2  ;;  %v1411_v58 = vsel %vm1403_vm11, %v1390_v13, %v1393_v31  ;;  %v1246_v14 = vmul.f32 %v1245_v21, %v1243_v7  ;;  %v9017_v56 = vpop.eup %7944 }
 0x1ac   :  { %v1408_v54 = vsel %vm1406_vm8, %v1396_v63, 2102212464  ;;  %v1412_v45 = vsel %vm1406_vm8, %v1399_v20, 920167782  ;;  %v7449_v5 = vmin.u32 %v1125_v38, %v8991_v12  ;;  %v7456_v49 = vadd.s32 4294967169, %v1271_v52  ;;  %11866 = vst [vmem:[#allocation33_spill] sm:$0xff] %v9017_v56 }
 0x1ad   :  { %v1407_v46 = vsel %vm1403_vm11, %v1387_v55, %v1390_v13  ;;  %v1409_v30 = vsel %vm1405_vm15, %v1393_v31, %v1408_v54  ;;  %v1413_v23 = vsel %vm1405_vm15, %v1396_v63, %v1412_v45  ;;  %v1415_v2 = vsel %vm1403_vm11, %v1393_v31, %v1396_v63  ;;  %v9027_v21 = vpop.eup %7946 }
 0x1ae   :  { %11867 = vst [vmem:[#allocation34_spill] sm:$0xff] %v9027_v21  ;;  %v1127_v7 = vclz %v7449_v5  ;;  %v1414_v52 = vsel %vm1404_vm10, %v1411_v58, %v1413_v23  ;;  %v1416_v38 = vsel %vm1406_vm8, %v1402_v34, 1326507024  ;;  %v1275_v4 = vor.u32 8388608, %v1274_v48 }
 0x1af   :  { %v1146_v13 = vsel %vm1061_vm9, %v1145_v62, %v1121_v39  ;;  %v1417_v55 = vsel %vm1405_vm15, %v1399_v20, %v1416_v38  ;;  %v9037_v54 = vmul.u32.u64.low %v1419_v35, %v1414_v52  ;;  %v9038_v45 = vmul.u32.u64.high %v1419_v35, %v1414_v52, %v9037_v54 }
 0x1b0   :  { %v7450_v31 = vadd.s32 4294967294, %v1127_v7  ;;  %v1410_v63 = vsel %vm1404_vm10, %v1407_v46, %v1409_v30  ;;  %v1418_v23 = vsel %vm1404_vm10, %v1415_v2, %v1417_v55  ;;  %v1277_v58 = vadd.s32 1, %v7456_v49 }
 0x1b1   :  { %v1247_v34 = vxor.u32 2147483648, %v1246_v14  ;;  %v1115_v48 = vadd.s32 %v8937_v29, %v8944_v37  ;;  %v9047_v39 = vmul.u32.u64.low %v1419_v35, %v1418_v23  ;;  %v9048_v62 = vmul.u32.u64.high %v1419_v35, %v1418_v23, %v9047_v39 }
 0x1b2   :  { %vm7451_vm0 = vcmp.lt.s32.totalorder %v7450_v31, 0  ;;  %v9052_v20 = vsel %vm8996_vm14, 0, %v1146_v13  ;;  %vm1278_vm1 = vcmp.gt.s32.totalorder %v1277_v58, 0  ;;  %v1582_v5 = vand.u32 2139095040, %v9013_v3 }
 0x1b3   :  { %11868 = vst [vmem:[#allocation35_spill] sm:$0xff] %v9052_v20  ;;  %v1130_v46 = vsel %vm7451_vm0, 0, %v7450_v31  ;;  %v1426_v30 = vmul.u32 %v1419_v35, %v1410_v63  ;;  %v1429_v2 = vadd.s32 1, %v9038_v45  ;;  %v1279_v44 = vsel %vm1278_vm1, %v1277_v58, 0 }
 0x1b4   :  { %v1131_v49 = vsub.s32 32, %v1130_v46  ;;  %v1132_v7 = vshll.u32 %v8991_v12, %v1130_v46  ;;  %v1135_v29 = vsub.s32 4294967266, %v1130_v46  ;;  %v9057_v37 = vshll.u32 %v1275_v4, 8 }
 0x1b5   :  { %v1248_v52 = vsel %vm1165_vm2, %v1247_v34, %v1246_v14  ;;  %v1152_v38 = vadd.s32 3, %v9052_v20  ;;  %vm1428_vm5 = vc.u32 %v9048_v62, %v9037_v54  ;;  %v1281_v13 = vand.u32 31, %v1279_v44 }
 0x1b6   :  { %v1133_v55 = vshrl.u32 %v1115_v48, %v1131_v49  ;;  %v1136_v35 = vadd.s32 127, %v1135_v29  ;;  %v1430_v31 = vsel %vm1428_vm5, %v1429_v2, %v9038_v45  ;;  %v1583_v63 = vshrl.u32 %v1582_v5, 23 }
 0x1b7   :  { %v1431_v23 = vadd.s32 %v1430_v31, %v1426_v30  ;;  %v1282_v58 = vsub.s32 32, %v1281_v13  ;;  %v1284_v12 = vshll.u32 %v11843_v17, %v1281_v13  ;;  %v1287_v4 = vshll.u32 %v11838_v19, %v1281_v13 }
 0x1b8   :  { %v1134_v39 = vor.u32 %v1133_v55, %v1132_v7  ;;  %v1137_v46 = vshll.u32 %v1136_v35, 23  ;;  %v1280_v14 = vshrl.u32 %v1279_v44, 5  ;;  %v1293_v34 = vshll.u32 %v11839_v50, %v1281_v13 }
 0x1b9   :  { %v1432_v20 = vadd.s32 536870912, %v1431_v23  ;;  %v1285_v56 = vshrl.u32 %v11838_v19, %v1282_v58  ;;  %v1288_v48 = vshrl.u32 %v11840_v28, %v1282_v58  ;;  %v1290_v49 = vshll.u32 %v11840_v28, %v1281_v13 }
 0x1ba   :  { %v1138_v45 = vor.u32 4788187, %v1137_v46  ;;  %v1141_v5 = vcvt.s32.f32 %v1134_v39  ;;  %vm1373_vm2 = vcmp.lt.s32.totalorder %v8888_v61, 0  ;;  %v1291_v30 = vshrl.u32 %v11839_v50, %v1282_v58 }
 0x1bb   :  { %v1294_v2 = vshrl.u32 %v11841_v8, %v1282_v58  ;;  %v1433_v7 = vshrl.u32 %v1432_v20, 30  ;;  %v1286_v29 = vor.u32 %v1285_v56, %v1284_v12  ;;  %v1289_v44 = vor.u32 %v1288_v48, %v1287_v4 }
 0x1bc   :  { %v1296_v55 = vshll.u32 %v11841_v8, %v1281_v13  ;;  %v1139_v35 = vand.u32 2147483647, %v1138_v45  ;;  %v1297_v21 = vshrl.u32 %v11842_v16, %v1282_v58  ;;  %vm1299_vm6 = vcmp.lt.s32.totalorder %v1280_v14, 1 }
 0x1bd   :  { %v1295_v31 = vor.u32 %v1294_v2, %v1293_v34  ;;  %v1434_v27 = vshll.u32 %v1433_v7, 30  ;;  %v1457_v47 = vsub.s32 4, %v1433_v7  ;;  %v1283_v39 = vshrl.u32 %v11843_v17, %v1282_v58 }
 0x1be   :  { %v1292_v46 = vor.u32 %v1291_v30, %v1290_v49  ;;  %v1142_v18 = vmul.f32 %v1141_v5, %v1139_v35  ;;  %v11869_v10 = vand.u32 2147483647, %v8888_v61  ;;  %v1298_v56 = vor.u32 %v1297_v21, %v1296_v55 }
 0x1bf   :  { %vm1301_vm4 = vcmp.lt.s32.totalorder %v1280_v14, 3  ;;  %vm1302_vm12 = vcmp.lt.s32.totalorder %v1280_v14, 4  ;;  %v9083_v20 = vsub.s32 %v1431_v23, %v1434_v27  ;;  %vm1300_vm13 = vcmp.lt.s32.totalorder %v1280_v14, 2 }
 0x1c0   :  { %vm9079_vm7 = vcmp.le.f32.partialorder %v11869_v10, 0.7853982  ;;  %v1304_v13 = vsel %vm1302_vm12, %v1292_v46, 2102212464  ;;  %v1307_v12 = vsel %vm1299_vm6, %v1286_v29, %v1289_v44  ;;  %v1251_v58 = vsel %vm8900_vm3, %v8708_v43, %v1248_v52 }
 0x1c1   :  { %v1143_v4 = vxor.u32 2147483648, %v1142_v18  ;;  %v9089_v34 = vand.u32 3, %v1152_v38  ;;  %v1308_v10 = vsel %vm1302_vm12, %v1295_v31, 920167782  ;;  %v1437_v48 = vsub.s32 0, %v9083_v20 }
 0x1c2   :  { %v1303_v21 = vsel %vm1299_vm6, %v1283_v39, %v1286_v29  ;;  %v1305_v49 = vsel %vm1301_vm4, %v1289_v44, %v1304_v13  ;;  %v1309_v27 = vsel %vm1301_vm4, %v1292_v46, %v1308_v10  ;;  %v1311_v45 = vsel %vm1299_vm6, %v1289_v44, %v1292_v46  ;;  %v9121_v46 = vpop.f32.mrf.mxu0 }
 0x1c3   :  { %11872 = vst [vmem:[#allocation36_spill] sm:$0xff] %v9089_v34  ;;  %v1310_v23 = vsel %vm1300_vm13, %v1307_v12, %v1309_v27  ;;  %v1312_v5 = vsel %vm1302_vm12, %v1298_v56, 1326507024  ;;  %v7468_v30 = vadd.s32 4294967169, %v1583_v63  ;;  %v1144_v59 = vsel %vm1061_vm9, %v1143_v4, %v1142_v18 }
 0x1c4   :  { %v7461_v52 = vmin.u32 %v1437_v48, %v9083_v20  ;;  %v1458_v38 = vsel %vm1373_vm2, %v1457_v47, %v1433_v7  ;;  %v1313_v2 = vsel %vm1301_vm4, %v1295_v31, %v1312_v5  ;;  %v1306_v29 = vsel %vm1300_vm13, %v1303_v21, %v1305_v49 }
 0x1c5   :  { %v1314_v55 = vsel %vm1300_vm13, %v1311_v45, %v1313_v2  ;;  %v9106_v35 = vmul.u32.u64.low %v9057_v37, %v1310_v23  ;;  %v9107_v39 = vmul.u32.u64.high %v9057_v37, %v1310_v23, %v9106_v35  ;;  %7948 = vcosq.f32 %v1251_v58 }
 0x1c6   :  { %v1439_v63 = vclz %v7461_v52  ;;  %v9111_v18 = vmul.u32.u64.low %v9057_v37, %v1314_v55  ;;  %v9112_v44 = vmul.u32.u64.high %v9057_v37, %v1314_v55, %v9111_v18  ;;  %7950 = vsinq.f32 %v1251_v58 }
 0x1c7   :  { %v9117_v47 = vsel %vm8996_vm14, %v8780_v11, %v1144_v59  ;;  %v11873_v14 = vand.u32 2147483647, %v9013_v3  ;;  %v1589_v31 = vadd.s32 1, %v7468_v30  ;;  %v9125_v13 = vsel %vm9079_vm7, 0, %v1458_v38 }
 0x1c8   :  { %v7462_v56 = vadd.s32 4294967294, %v1439_v63  ;;  %11874 = vst [vmem:[#allocation37_spill] sm:$0xff] %v9125_v13  ;;  %v1322_v12 = vmul.u32 %v9057_v37, %v1306_v29  ;;  %v1427_v1 = vadd.s32 %v9037_v54, %v9048_v62  ;;  %v9132_v4 = vadd.s32 3, %v9125_v13 }
 0x1c9   :  { %v1586_v7 = vand.u32 8388607, %v11873_v14  ;;  %v1325_v10 = vadd.s32 1, %v9107_v39  ;;  %vm1590_vm3 = vcmp.gt.s32.totalorder %v1589_v31, 0  ;;  %7952 = vcosq.f32 %v9117_v47 }
 0x1ca   :  { %vm7463_vm9 = vcmp.lt.s32.totalorder %v7462_v56, 0  ;;  %vm1324_vm11 = vc.u32 %v9112_v44, %v9106_v35  ;;  %v1591_v48 = vsel %vm1590_vm3, %v1589_v31, 0  ;;  %vm1269_vm14 = vcmp.lt.s32.totalorder %v8966_v53, 0 }
 0x1cb   :  { %v1442_v21 = vsel %vm7463_vm9, 0, %v7462_v56  ;;  %v1326_v37 = vsel %vm1324_vm11, %v1325_v10, %v9107_v39  ;;  %v1587_v49 = vor.u32 8388608, %v1586_v7  ;;  %v1593_v54 = vand.u32 31, %v1591_v48 }
 0x1cc   :  { %v1443_v62 = vsub.s32 32, %v1442_v21  ;;  %v1444_v27 = vshll.u32 %v9083_v20, %v1442_v21  ;;  %v1447_v23 = vsub.s32 4294967266, %v1442_v21  ;;  %v1327_v45 = vadd.s32 %v1326_v37, %v1322_v12 }
 0x1cd   :  { %v9141_v5 = vshrl.u32 %v1591_v48, 5  ;;  %v1594_v30 = vsub.s32 32, %v1593_v54  ;;  %v1596_v59 = vshll.u32 %v11843_v17, %v1593_v54  ;;  %v1599_v52 = vshll.u32 %v11838_v19, %v1593_v54 }
 0x1ce   :  { %v1445_v38 = vshrl.u32 %v1427_v1, %v1443_v62  ;;  %v1448_v2 = vadd.s32 127, %v1447_v23  ;;  %v11875_v29 = vand.u32 2147483647, %v8966_v53  ;;  %v1328_v39 = vadd.s32 536870912, %v1327_v45 }
 0x1cf   :  { %v1602_v20 = vshll.u32 %v11840_v28, %v1593_v54  ;;  %v1597_v63 = vshrl.u32 %v11838_v19, %v1594_v30  ;;  %v1600_v18 = vshrl.u32 %v11840_v28, %v1594_v30  ;;  %v1603_v14 = vshrl.u32 %v11839_v50, %v1594_v30 }
 0x1d0   :  { %vm9147_vm15 = vcmp.le.f32.partialorder %v11875_v29, 0.7853982  ;;  %v1605_v7 = vshll.u32 %v11839_v50, %v1593_v54  ;;  %v1446_v31 = vor.u32 %v1445_v38, %v1444_v27  ;;  %v1449_v56 = vshll.u32 %v1448_v2, 23 }
 0x1d1   :  { %v1329_v12 = vshrl.u32 %v1328_v39, 30  ;;  %v1606_v1 = vshrl.u32 %v11841_v8, %v1594_v30  ;;  %v1595_v10 = vshrl.u32 %v11843_v17, %v1594_v30  ;;  %v1598_v48 = vor.u32 %v1597_v63, %v1596_v59 }
 0x1d2   :  { %v1608_v21 = vshll.u32 %v11841_v8, %v1593_v54  ;;  %v1478_v37 = vand.u32 2139095040, %v9121_v46  ;;  %v1450_v62 = vor.u32 4788187, %v1449_v56  ;;  %v1453_v23 = vcvt.s32.f32 %v1446_v31  ;;  %v9160_v13 = vpop.eup %7948 }
 0x1d3   :  { %v1330_v29 = vshll.u32 %v1329_v12, 30  ;;  %v1353_v58 = vsub.s32 4, %v1329_v12  ;;  %v1601_v34 = vor.u32 %v1600_v18, %v1599_v52  ;;  %v1604_v11 = vor.u32 %v1603_v14, %v1602_v20  ;;  %v9163_v2 = vpop.eup %7950 }
 0x1d4   :  { %v1607_v27 = vor.u32 %v1606_v1, %v1605_v7  ;;  %v1609_v38 = vshrl.u32 %v11842_v16, %v1594_v30  ;;  %v1451_v39 = vand.u32 2147483647, %v1450_v62  ;;  %vm1611_vm8 = vcmp.lt.s32.totalorder %v9141_v5, 1 }
 0x1d5   :  { %v9165_v43 = vsub.s32 %v1327_v45, %v1330_v29  ;;  %v1354_v54 = vsel %vm1269_vm14, %v1353_v58, %v1329_v12  ;;  %vm1614_vm10 = vcmp.lt.s32.totalorder %v9141_v5, 4  ;;  %v1627_v63 = vshll.u32 %v1587_v49, 8 }
 0x1d6   :  { %v1610_v59 = vor.u32 %v1609_v38, %v1608_v21  ;;  %v11878_v52 = vand.u32 2147483647, %v9121_v46  ;;  %v1454_v18 = vmul.f32 %v1453_v23, %v1451_v39  ;;  %vm1613_vm0 = vcmp.lt.s32.totalorder %v9141_v5, 3  ;;  %v9179_v14 = vpop.eup %7952 }
 0x1d7   :  { %v1333_v30 = vsub.s32 0, %v9165_v43  ;;  %v1616_v45 = vsel %vm1614_vm10, %v1604_v11, 2102212464  ;;  %11879 = vst [vmem:[#allocation38_spill] sm:$0xff] %v9179_v14  ;;  %v9183_v58 = vsel %vm9147_vm15, 0, %v1354_v54  ;;  %vm1612_vm1 = vcmp.lt.s32.totalorder %v9141_v5, 2 }
 0x1d8   :  { %v9173_v20 = vand.u32 8388607, %v11878_v52  ;;  %11880 = vst [vmem:[#allocation39_spill] sm:$0xff] %v9183_v58  ;;  %v1619_v49 = vsel %vm1611_vm8, %v1598_v48, %v1601_v34  ;;  %v1620_v7 = vsel %vm1614_vm10, %v1607_v27, 920167782  ;;  %v1455_v31 = vxor.u32 2147483648, %v1454_v18 }
 0x1d9   :  { %v7457_v56 = vmin.u32 %v1333_v30, %v9165_v43  ;;  %v1615_v12 = vsel %vm1611_vm8, %v1595_v10, %v1598_v48  ;;  %v1623_v1 = vsel %vm1611_vm8, %v1601_v34, %v1604_v11  ;;  %v1617_v21 = vsel %vm1613_vm0, %v1601_v34, %v1616_v45 }
 0x1da   :  { %v1621_v62 = vsel %vm1613_vm0, %v1604_v11, %v1620_v7  ;;  %v1624_v23 = vsel %vm1614_vm10, %v1610_v59, 1326507024  ;;  %v1479_v29 = vshrl.u32 %v1478_v37, 23  ;;  %v1360_v39 = vadd.s32 3, %v9183_v58 }
 0x1db   :  { %v1335_v38 = vclz %v7457_v56  ;;  %v1622_v54 = vsel %vm1612_vm1, %v1619_v49, %v1621_v62  ;;  %v1625_v10 = vsel %vm1613_vm0, %v1607_v27, %v1624_v23  ;;  %v1456_v48 = vsel %vm1373_vm2, %v1455_v31, %v1454_v18  ;;  %v9219_v49 = vpop.f32.mrf.mxu0 }
 0x1dc   :  { %v1626_v34 = vsel %vm1612_vm1, %v1623_v1, %v1625_v10  ;;  %v9210_v11 = vmul.u32.u64.low %v1627_v63, %v1622_v54  ;;  %v9211_v52 = vmul.u32.u64.high %v1627_v63, %v1622_v54, %v9210_v11  ;;  %v1618_v59 = vsel %vm1612_vm1, %v1615_v12, %v1617_v21 }
 0x1dd   :  { %v7458_v37 = vadd.s32 4294967294, %v1335_v38  ;;  %v9216_v30 = vmul.u32.u64.low %v1627_v63, %v1626_v34  ;;  %v9217_v45 = vmul.u32.u64.high %v1627_v63, %v1626_v34, %v9216_v30  ;;  %7954 = vsinq.f32 %v9117_v47  ;;  %v9245_v54 = vpop.f32.mrf.mxu0 }
 0x1de   :  { %v9223_v27 = vand.u32 3, %v9132_v4  ;;  %v7464_v18 = vadd.s32 4294967169, %v1479_v29  ;;  %v11746_v7 = vand.u32 2147483647, %v9219_v49  ;;  %v1459_v31 = vsel %vm9079_vm7, %v8888_v61, %v1456_v48 }
 0x1df   :  { %v1323_v5 = vadd.s32 %v9106_v35, %v9112_v44  ;;  %vm7459_vm5 = vcmp.lt.s32.totalorder %v7458_v37, 0  ;;  %v9231_v56 = vand.u32 3, %v1360_v39  ;;  %v1634_v1 = vmul.u32 %v1627_v63, %v1618_v59 }
 0x1e0   :  { %11881 = vst [vmem:[#allocation40_spill] sm:$0xff] %v9223_v27  ;;  %v1338_v12 = vsel %vm7459_vm5, 0, %v7458_v37  ;;  %v1637_v47 = vadd.s32 1, %v9211_v52  ;;  %v1485_v21 = vadd.s32 1, %v7464_v18  ;;  %v1483_v29 = vor.u32 8388608, %v9173_v20 }
 0x1e1   :  { %11882 = vst [vmem:[#allocation41_spill] sm:$0xff] %v9231_v56  ;;  %v1339_v4 = vsub.s32 32, %v1338_v12  ;;  %v1340_v62 = vshll.u32 %v9165_v43, %v1338_v12  ;;  %v1343_v23 = vsub.s32 4294967266, %v1338_v12  ;;  %7956 = vcosq.f32 %v1459_v31 }
 0x1e2   :  { %vm1636_vm2 = vc.u32 %v9217_v45, %v9210_v11  ;;  %vm1486_vm6 = vcmp.gt.s32.totalorder %v1485_v21, 0  ;;  %v1790_v32 = vand.u32 2139095040, %v9219_v49  ;;  %7958 = vsinq.f32 %v1459_v31 }
 0x1e3   :  { %v1341_v35 = vshrl.u32 %v1323_v5, %v1339_v4  ;;  %v1344_v44 = vadd.s32 127, %v1343_v23  ;;  %v1638_v63 = vsel %vm1636_vm2, %v1637_v47, %v9211_v52  ;;  %v1487_v38 = vsel %vm1486_vm6, %v1485_v21, 0 }
 0x1e4   :  { %vm1581_vm7 = vcmp.lt.s32.totalorder %v9013_v3, 0  ;;  %v1639_v39 = vadd.s32 %v1638_v63, %v1634_v1  ;;  %v1489_v43 = vand.u32 31, %v1487_v38  ;;  %v9243_v20 = vand.u32 8388607, %v11746_v7 }
 0x1e5   :  { %v1342_v10 = vor.u32 %v1341_v35, %v1340_v62  ;;  %v1345_v48 = vshll.u32 %v1344_v44, 23  ;;  %v9247_v34 = vshll.u32 %v1483_v29, 8  ;;  %v1791_v18 = vshrl.u32 %v1790_v32, 23 }
 0x1e6   :  { %v1640_v59 = vadd.s32 536870912, %v1639_v39  ;;  %v1490_v52 = vsub.s32 32, %v1489_v43  ;;  %v1492_v30 = vshll.u32 %v11843_v17, %v1489_v43  ;;  %v11883_v12 = vand.u32 2147483647, %v9013_v3 }
 0x1e7   :  { %v1346_v31 = vor.u32 4788187, %v1345_v48  ;;  %v1349_v5 = vcvt.s32.f32 %v1342_v10  ;;  %v1495_v47 = vshll.u32 %v11838_v19, %v1489_v43  ;;  %v1501_v21 = vshll.u32 %v11839_v50, %v1489_v43 }
 0x1e8   :  { %vm9253_vm4 = vcmp.le.f32.partialorder %v11883_v12, 0.7853982  ;;  %v1641_v4 = vshrl.u32 %v1640_v59, 30  ;;  %v1488_v62 = vshrl.u32 %v1487_v38, 5  ;;  %v1493_v23 = vshrl.u32 %v11838_v19, %v1490_v52 }
 0x1e9   :  { %v1496_v29 = vshrl.u32 %v11840_v28, %v1490_v52  ;;  %v1347_v35 = vand.u32 2147483647, %v1346_v31  ;;  %v1498_v32 = vshll.u32 %v11840_v28, %v1489_v43  ;;  %v1499_v44 = vshrl.u32 %v11839_v50, %v1490_v52 }
 0x1ea   :  { %v1502_v63 = vshrl.u32 %v11841_v8, %v1490_v52  ;;  %v1642_v10 = vshll.u32 %v1641_v4, 30  ;;  %v1665_v48 = vsub.s32 4, %v1641_v4  ;;  %v1494_v12 = vor.u32 %v1493_v23, %v1492_v30  ;;  %v9265_v37 = vpop.eup %7954 }
 0x1eb   :  { %v1504_v7 = vshll.u32 %v11841_v8, %v1489_v43  ;;  %11886 = vst [vmem:[#allocation42_spill] sm:$0xff] %v9265_v37  ;;  %v1350_v59 = vmul.f32 %v1349_v5, %v1347_v35  ;;  %v1497_v38 = vor.u32 %v1496_v29, %v1495_v47  ;;  %v1505_v56 = vshrl.u32 %v11842_v16, %v1490_v52 }
 0x1ec   :  { %v1503_v58 = vor.u32 %v1502_v63, %v1501_v21  ;;  %v9268_v27 = vsub.s32 %v1639_v39, %v1642_v10  ;;  %v1491_v31 = vshrl.u32 %v11843_v17, %v1490_v52  ;;  %vm1507_vm12 = vcmp.lt.s32.totalorder %v1488_v62, 1 }
 0x1ed   :  { %v1795_v61 = vor.u32 8388608, %v9243_v20  ;;  %v1351_v14 = vxor.u32 2147483648, %v1350_v59  ;;  %v1666_v30 = vsel %vm1581_vm7, %v1665_v48, %v1641_v4  ;;  %v1500_v23 = vor.u32 %v1499_v44, %v1498_v32 }
 0x1ee   :  { %v7476_v43 = vadd.s32 4294967169, %v1791_v18  ;;  %v1645_v37 = vsub.s32 0, %v9268_v27  ;;  %v1506_v5 = vor.u32 %v1505_v56, %v1504_v7  ;;  %vm1509_vm13 = vcmp.lt.s32.totalorder %v1488_v62, 3  ;;  %v9275_v47 = vpop.eup %7956 }
 0x1ef   :  { %vm1510_vm3 = vcmp.lt.s32.totalorder %v1488_v62, 4  ;;  %11887 = vst [vmem:[#allocation43_spill] sm:$0xff] %v9275_v47  ;;  %vm1508_vm9 = vcmp.lt.s32.totalorder %v1488_v62, 2  ;;  %v1515_v52 = vsel %vm1507_vm12, %v1494_v12, %v1497_v38  ;;  %v9283_v4 = vsel %vm9253_vm4, 0, %v1666_v30  ;;  %v9287_v56 = vpop.eup %7958 }
 0x1f0   :  { %v1512_v39 = vsel %vm1510_vm3, %v1500_v23, 2102212464  ;;  %v1516_v20 = vsel %vm1510_vm3, %v1503_v58, 920167782  ;;  %v7469_v21 = vmin.u32 %v1645_v37, %v9268_v27  ;;  %11888 = vst [vmem:[#allocation44_spill] sm:$0xff] %v9283_v4  ;;  %v1511_v18 = vsel %vm1507_vm12, %v1491_v31, %v1494_v12  ;;  %11889 = vst [vmem:[#allocation45_spill] sm:$0xff] %v9287_v56 }
 0x1f1   :  { %v1513_v7 = vsel %vm1509_vm13, %v1497_v38, %v1512_v39  ;;  %v1635_v29 = vadd.s32 %v9210_v11, %v9217_v45  ;;  %v1672_v35 = vadd.s32 3, %v9283_v4  ;;  %v1517_v32 = vsel %vm1509_vm13, %v1500_v23, %v1516_v20 }
 0x1f2   :  { %v1519_v44 = vsel %vm1507_vm12, %v1497_v38, %v1500_v23  ;;  %v1352_v37 = vsel %vm1269_vm14, %v1351_v14, %v1350_v59  ;;  %v1647_v63 = vclz %v7469_v21  ;;  %v1518_v10 = vsel %vm1508_vm9, %v1515_v52, %v1517_v32 }
 0x1f3   :  { %v1520_v48 = vsel %vm1510_vm3, %v1506_v5, 1326507024  ;;  %v1514_v12 = vsel %vm1508_vm9, %v1511_v18, %v1513_v7  ;;  %v9301_v11 = vmul.u32.u64.low %v9247_v34, %v1518_v10  ;;  %v9302_v45 = vmul.u32.u64.high %v9247_v34, %v1518_v10, %v9301_v11 }
 0x1f4   :  { %v1521_v31 = vsel %vm1509_vm13, %v1503_v58, %v1520_v48  ;;  %v7470_v30 = vadd.s32 4294967294, %v1647_v63  ;;  %v1797_v23 = vadd.s32 1, %v7476_v43  ;;  %v9306_v39 = vshll.u32 %v1795_v61, 8 }
 0x1f5   :  { %v1522_v38 = vsel %vm1508_vm9, %v1519_v44, %v1521_v31  ;;  %v9311_v14 = vsel %vm9147_vm15, %v8966_v53, %v1352_v37  ;;  %v1686_v58 = vand.u32 2139095040, %v9245_v54  ;;  %v9318_v52 = vand.u32 3, %v1672_v35 }
 0x1f6   :  { %v9314_v59 = vmul.u32.u64.low %v9247_v34, %v1522_v38  ;;  %v9315_v5 = vmul.u32.u64.high %v9247_v34, %v1522_v38, %v9314_v59  ;;  %vm7471_vm11 = vcmp.lt.s32.totalorder %v7470_v30, 0  ;;  %v1530_v62 = vmul.u32 %v9247_v34, %v1514_v12 }
 0x1f7   :  { %11890 = vst [vmem:[#allocation46_spill] sm:$0xff] %v9318_v52  ;;  %vm1798_vm14 = vcmp.gt.s32.totalorder %v1797_v23, 0  ;;  %v1650_v43 = vsel %vm7471_vm11, 0, %v7470_v30  ;;  %v1533_v61 = vadd.s32 1, %v9302_v45  ;;  %v1687_v21 = vshrl.u32 %v1686_v58, 23 }
 0x1f8   :  { %v1799_v20 = vsel %vm1798_vm14, %v1797_v23, 0  ;;  %v1651_v55 = vsub.s32 32, %v1650_v43  ;;  %v1652_v18 = vshll.u32 %v9268_v27, %v1650_v43  ;;  %v1655_v7 = vsub.s32 4294967266, %v1650_v43 }
 0x1f9   :  { %v9323_v32 = vshrl.u32 %v1799_v20, 5  ;;  %7960 = vcosq.f32 %v9311_v14  ;;  %vm1532_vm15 = vc.u32 %v9315_v5, %v9301_v11  ;;  %v1801_v35 = vand.u32 31, %v1799_v20 }
 0x1fa   :  { %v11891_v34 = vand.u32 2147483647, %v9245_v54  ;;  %v1653_v37 = vshrl.u32 %v1635_v29, %v1651_v55  ;;  %v1656_v63 = vadd.s32 127, %v1655_v7  ;;  %vm1477_vm8 = vcmp.lt.s32.totalorder %v9121_v46, 0 }
 0x1fb   :  { %v1534_v10 = vsel %vm1532_vm15, %v1533_v61, %v9302_v45  ;;  %v9334_v27 = vadd.s32 4294967169, %v1687_v21  ;;  %v11892_v48 = vand.u32 2147483647, %v9121_v46  ;;  %v1802_v30 = vsub.s32 32, %v1801_v35 }
 0x1fc   :  { %v9330_v44 = vand.u32 8388607, %v11891_v34  ;;  %v1535_v31 = vadd.s32 %v1534_v10, %v1530_v62  ;;  %v1804_v38 = vshll.u32 %v11843_v17, %v1801_v35  ;;  %v1807_v23 = vshll.u32 %v11838_v19, %v1801_v35 }
 0x1fd   :  { %vm9338_vm10 = vcmp.le.f32.partialorder %v11892_v48, 0.7853982  ;;  %v1654_v29 = vor.u32 %v1653_v37, %v1652_v18  ;;  %v1657_v59 = vshll.u32 %v1656_v63, 23  ;;  %v1813_v58 = vshll.u32 %v11839_v50, %v1801_v35 }
 0x1fe   :  { %vm1819_vm0 = vcmp.lt.s32.totalorder %v9323_v32, 1  ;;  %v1536_v45 = vadd.s32 536870912, %v1535_v31  ;;  %v1805_v43 = vshrl.u32 %v11838_v19, %v1802_v30  ;;  %v1808_v61 = vshrl.u32 %v11840_v28, %v1802_v30 }
 0x1ff   :  { %v1810_v20 = vshll.u32 %v11840_v28, %v1801_v35  ;;  %v1658_v21 = vor.u32 4788187, %v1657_v59  ;;  %v1661_v62 = vcvt.s32.f32 %v1654_v29  ;;  %v1811_v55 = vshrl.u32 %v11839_v50, %v1802_v30 }
 0x200   :  { %v1814_v7 = vshrl.u32 %v11841_v8, %v1802_v30  ;;  %v1537_v34 = vshrl.u32 %v1536_v45, 30  ;;  %v1806_v18 = vor.u32 %v1805_v43, %v1804_v38  ;;  %v1809_v37 = vor.u32 %v1808_v61, %v1807_v23 }
 0x201   :  { %v1816_v63 = vshll.u32 %v11841_v8, %v1801_v35  ;;  %v1659_v10 = vand.u32 2147483647, %v1658_v21  ;;  %v1803_v48 = vshrl.u32 %v11843_v17, %v1802_v30  ;;  %v1817_v52 = vshrl.u32 %v11842_v16, %v1802_v30 }
 0x202   :  { %v1815_v4 = vor.u32 %v1814_v7, %v1813_v58  ;;  %v1538_v53 = vshll.u32 %v1537_v34, 30  ;;  %v1561_v47 = vsub.s32 4, %v1537_v34  ;;  %v1812_v56 = vor.u32 %v1811_v55, %v1810_v20 }
 0x203   :  { %vm1820_vm1 = vcmp.lt.s32.totalorder %v9323_v32, 2  ;;  %v1662_v29 = vmul.f32 %v1661_v62, %v1659_v10  ;;  %v1818_v59 = vor.u32 %v1817_v52, %v1816_v63  ;;  %vm1821_vm5 = vcmp.lt.s32.totalorder %v9323_v32, 3 }
 0x204   :  { %vm1822_vm2 = vcmp.lt.s32.totalorder %v9323_v32, 4  ;;  %v9357_v38 = vsub.s32 %v1535_v31, %v1538_v53  ;;  %v1562_v35 = vsel %vm1477_vm8, %v1561_v47, %v1537_v34  ;;  %v1827_v30 = vsel %vm1819_vm0, %v1806_v18, %v1809_v37 }
 0x205   :  { %v1824_v23 = vsel %vm1822_vm2, %v1812_v56, 2102212464  ;;  %v1663_v58 = vxor.u32 2147483648, %v1662_v29  ;;  %v9367_v45 = vsel %vm9338_vm10, 0, %v1562_v35  ;;  %v1823_v52 = vsel %vm1819_vm0, %v1803_v48, %v1806_v18 }
 0x206   :  { %v1828_v53 = vsel %vm1822_vm2, %v1815_v4, 920167782  ;;  %v1541_v31 = vsub.s32 0, %v9357_v38  ;;  %v1568_v47 = vadd.s32 3, %v9367_v45  ;;  %v1825_v43 = vsel %vm1821_vm5, %v1809_v37, %v1824_v23  ;;  %v9379_v20 = vpop.eup %7960 }
 0x207   :  { %v1829_v61 = vsel %vm1821_vm5, %v1812_v56, %v1828_v53  ;;  %v1664_v21 = vsel %vm1581_vm7, %v1663_v58, %v1662_v29  ;;  %v1831_v55 = vsel %vm1819_vm0, %v1809_v37, %v1812_v56  ;;  %v1832_v7 = vsel %vm1822_vm2, %v1818_v59, 1326507024 }
 0x208   :  { %v1830_v62 = vsel %vm1820_vm1, %v1827_v30, %v1829_v61  ;;  %7962 = vsinq.f32 %v9311_v14  ;;  %v1667_v34 = vsel %vm9253_vm4, %v9013_v3, %v1664_v21  ;;  %v7465_v18 = vmin.u32 %v1541_v31, %v9357_v38 }
 0x209   :  { %v1833_v63 = vsel %vm1821_vm5, %v1815_v4, %v1832_v7  ;;  %v1826_v10 = vsel %vm1820_vm1, %v1823_v52, %v1825_v43  ;;  %v9401_v37 = vmul.u32.u64.low %v9306_v39, %v1830_v62  ;;  %v9402_v48 = vmul.u32.u64.high %v9306_v39, %v1830_v62, %v9401_v37 }
 0x20a   :  { %v1834_v56 = vsel %vm1820_vm1, %v1831_v55, %v1833_v63  ;;  %v1531_v14 = vadd.s32 %v9301_v11, %v9315_v5  ;;  %v1543_v1 = vclz %v7465_v18  ;;  %7964 = vcosq.f32 %v1667_v34 }
 0x20b   :  { %v9407_v29 = vmul.u32.u64.low %v9306_v39, %v1834_v56  ;;  %v9408_v59 = vmul.u32.u64.high %v9306_v39, %v1834_v56, %v9407_v29  ;;  %v9410_v4 = vand.u32 3, %v1568_v47  ;;  %v1691_v35 = vor.u32 8388608, %v9330_v44 }
 0x20c   :  { %v1693_v32 = vadd.s32 1, %v9334_v27  ;;  %7966 = vsinq.f32 %v1667_v34  ;;  %v7466_v23 = vadd.s32 4294967294, %v1543_v1  ;;  %v1842_v30 = vmul.u32 %v9306_v39, %v1826_v10 }
 0x20d   :  { %v1845_v11 = vadd.s32 1, %v9402_v48  ;;  %v9417_v5 = vshll.u32 %v1691_v35, 8  ;;  %vm1844_vm4 = vc.u32 %v9408_v59, %v9401_v37  ;;  %v9422_v44 = vand.u32 3, %v8369_v24 }
 0x20e   :  { %vm1694_vm6 = vcmp.gt.s32.totalorder %v1693_v32, 0  ;;  %vm7467_vm7 = vcmp.lt.s32.totalorder %v7466_v23, 0  ;;  %vm1789_vm12 = vcmp.lt.s32.totalorder %v9219_v49, 0  ;;  %v9426_v39 = vadd.s32 %v9401_v37, %v9408_v59 }
 0x20f   :  { %v1695_v53 = vsel %vm1694_vm6, %v1693_v32, 0  ;;  %v1546_v27 = vsel %vm7467_vm7, 0, %v7466_v23  ;;  %v1846_v31 = vsel %vm1844_vm4, %v1845_v11, %v9402_v48  ;;  %v11895_v62 = vand.u32 2147483647, %v9219_v49 }
 0x210   :  { %v1697_v47 = vand.u32 31, %v1695_v53  ;;  %v1547_v43 = vsub.s32 32, %v1546_v27  ;;  %v1548_v61 = vshll.u32 %v9357_v38, %v1546_v27  ;;  %v1551_v21 = vsub.s32 4294967266, %v1546_v27 }
 0x211   :  { %vm9432_vm13 = vcmp.le.f32.partialorder %v11895_v62, 0.7853982  ;;  %v1847_v24 = vadd.s32 %v1846_v31, %v1842_v30  ;;  %v9436_v7 = vshrl.u32 %v1695_v53, 5  ;;  %vm427_vm3 = vcmp.eq.s32.totalorder %v8430_v0, 0 }
 0x212   :  { %v1698_v34 = vsub.s32 32, %v1697_v47  ;;  %v1700_v18 = vshll.u32 %v11843_v17, %v1697_v47  ;;  %v1703_v63 = vshll.u32 %v11838_v19, %v1697_v47  ;;  %v1549_v10 = vshrl.u32 %v1531_v14, %v1547_v43 }
 0x213   :  { %v1552_v56 = vadd.s32 127, %v1551_v21  ;;  %v1848_v37 = vadd.s32 536870912, %v1847_v24  ;;  %v1706_v38 = vshll.u32 %v11840_v28, %v1697_v47  ;;  %v1709_v59 = vshll.u32 %v11839_v50, %v1697_v47 }
 0x214   :  { %v1701_v48 = vshrl.u32 %v11838_v19, %v1698_v34  ;;  %v1704_v1 = vshrl.u32 %v11840_v28, %v1698_v34  ;;  %v1707_v29 = vshrl.u32 %v11839_v50, %v1698_v34  ;;  %v1550_v35 = vor.u32 %v1549_v10, %v1548_v61 }
 0x215   :  { %v1553_v32 = vshll.u32 %v1552_v56, 23  ;;  %v1849_v23 = vshrl.u32 %v1848_v37, 30  ;;  %v1710_v30 = vshrl.u32 %v11841_v8, %v1698_v34  ;;  %v9446_v11 = vpop.eup %7962  ;;  %v1699_v14 = vshrl.u32 %v11843_v17, %v1698_v34 }
 0x216   :  { %v1702_v53 = vor.u32 %v1701_v48, %v1700_v18  ;;  %v1705_v27 = vor.u32 %v1704_v1, %v1703_v63  ;;  %v1712_v31 = vshll.u32 %v11841_v8, %v1697_v47  ;;  %v1557_v21 = vcvt.s32.f32 %v1550_v35 }
 0x217   :  { %v1554_v43 = vor.u32 4788187, %v1553_v32  ;;  %v1850_v62 = vshll.u32 %v1849_v23, 30  ;;  %v1873_v52 = vsub.s32 4, %v1849_v23  ;;  %v1708_v58 = vor.u32 %v1707_v29, %v1706_v38  ;;  %v9454_v56 = vpop.eup %7964 }
 0x218   :  { %v1711_v61 = vor.u32 %v1710_v30, %v1709_v59  ;;  %v1713_v10 = vshrl.u32 %v11842_v16, %v1698_v34  ;;  %vm1715_vm9 = vcmp.lt.s32.totalorder %v9436_v7, 1  ;;  %vm430_vm11 = vcmp.eq.s32.totalorder %v8430_v0, 2 }
 0x219   :  { %v1555_v18 = vand.u32 2147483647, %v1554_v43  ;;  %v9456_v63 = vsub.s32 %v1847_v24, %v1850_v62  ;;  %v1874_v47 = vsel %vm1789_vm12, %v1873_v52, %v1849_v23  ;;  %vm1717_vm14 = vcmp.lt.s32.totalorder %v9436_v7, 3  ;;  %v9462_v37 = vpop.eup %7966 }
 0x21a   :  { %vm426_vm15 = vcmp.lt.s32.totalorder %v8430_v0, 2  ;;  %v9466_v34 = vsel %vm9432_vm13, 0, %v1874_v47  ;;  %v1714_v38 = vor.u32 %v1713_v10, %v1712_v31  ;;  %vm1718_vm0 = vcmp.lt.s32.totalorder %v9436_v7, 4 }
 0x21b   :  { %v1719_v24 = vsel %vm1715_vm9, %v1699_v14, %v1702_v53  ;;  %v1558_v48 = vmul.f32 %v1557_v21, %v1555_v18  ;;  %v1853_v1 = vsub.s32 0, %v9456_v63  ;;  %v1880_v52 = vadd.s32 3, %v9466_v34 }
 0x21c   :  { %v1720_v29 = vsel %vm1718_vm0, %v1708_v58, 2102212464  ;;  %vm423_vm1 = vweird.f32 %v8197_v33  ;;  %vm1716_vm5 = vcmp.lt.s32.totalorder %v9436_v7, 2  ;;  %v1723_v35 = vsel %vm1715_vm9, %v1702_v53, %v1705_v27 }
 0x21d   :  { %v1721_v59 = vsel %vm1717_vm14, %v1705_v27, %v1720_v29  ;;  %v1724_v32 = vsel %vm1718_vm0, %v1711_v61, 920167782  ;;  %v1559_v23 = vxor.u32 2147483648, %v1558_v48  ;;  %v7477_v30 = vmin.u32 %v1853_v1, %v9456_v63 }
 0x21e   :  { %v1722_v14 = vsel %vm1716_vm5, %v1719_v24, %v1721_v59  ;;  %v1727_v31 = vsel %vm1715_vm9, %v1705_v27, %v1708_v58  ;;  %v9488_v43 = vand.u32 3, %v1880_v52  ;;  %v1725_v21 = vsel %vm1717_vm14, %v1708_v58, %v1724_v32 }
 0x21f   :  { %v1728_v53 = vsel %vm1718_vm0, %v1714_v38, 1326507024  ;;  %v1738_v62 = vmul.u32 %v9417_v5, %v1722_v14  ;;  %v1560_v10 = vsel %vm1477_vm8, %v1559_v23, %v1558_v48  ;;  %v1855_v18 = vclz %v7477_v30 }
 0x220   :  { %v1726_v47 = vsel %vm1716_vm5, %v1723_v35, %v1725_v21  ;;  %v1729_v27 = vsel %vm1717_vm14, %v1711_v61, %v1728_v53  ;;  %v1563_v24 = vsel %vm9338_vm10, %v9121_v46, %v1560_v10  ;;  %vm2104_vm8 = vcmp.lt.s32.totalorder %v9422_v44, 2 }
 0x221   :  { %v1730_v58 = vsel %vm1716_vm5, %v1727_v31, %v1729_v27  ;;  %v9507_v38 = vmul.u32.u64.low %v9417_v5, %v1726_v47  ;;  %v9508_v1 = vmul.u32.u64.high %v9417_v5, %v1726_v47, %v9507_v38  ;;  %v7478_v52 = vadd.s32 4294967294, %v1855_v18 }
 0x222   :  { %v9511_v48 = vmul.u32.u64.low %v9417_v5, %v1730_v58  ;;  %v9512_v29 = vmul.u32.u64.high %v9417_v5, %v1730_v58, %v9511_v48  ;;  %7968 = vcosq.f32 %v1563_v24  ;;  %vm2105_vm2 = vcmp.eq.s32.totalorder %v9422_v44, 0 }
 0x223   :  { %vm2108_vm6 = vcmp.eq.s32.totalorder %v9422_v44, 2  ;;  %v11898_v12 = vxor.u32 2147483648, %v8478_v9  ;;  %vm7479_vm10 = vcmp.lt.s32.totalorder %v7478_v52, 0  ;;  %v11900_v5 = vxor.u32 2147483648, %v8473_v6 }
 0x224   :  { %v1858_v23 = vsel %vm7479_vm10, 0, %v7478_v52  ;;  %v1741_v30 = vadd.s32 1, %v9508_v1  ;;  %7970 = vsinq.f32 %v1563_v24  ;;  %v9538_v18 = vadd.s32 %v9507_v38, %v9512_v29 }
 0x225   :  { %v429_v7 = vsel %vm427_vm3, %v8473_v6, %v11898_v12  ;;  %v11899_v61 = vmov %v11898_v12  ;;  %v2110_v35 = vsel %vm2108_vm6, %v11900_v5, %v8478_v9  ;;  %v11901_v32 = vmov %v11900_v5 }
 0x226   :  { %v2107_v59 = vsel %vm2105_vm2, %v8473_v6, %v11899_v61  ;;  %v432_v44 = vsel %vm430_vm11, %v11901_v32, %v8478_v9  ;;  %v1859_v21 = vsub.s32 32, %v1858_v23  ;;  %v1860_v53 = vshll.u32 %v9456_v63, %v1858_v23 }
 0x227   :  { %v2111_v14 = vsel %vm2104_vm8, %v2107_v59, %v2110_v35  ;;  %v433_v31 = vsel %vm426_vm15, %v429_v7, %v432_v44  ;;  %v1863_v10 = vsub.s32 4294967266, %v1858_v23  ;;  %vm1740_vm7 = vc.u32 %v9512_v29, %v9507_v38 }
 0x228   :  { %v2112_v6 = vsel %vm423_vm1, nan, %v2111_v14  ;;  %v9545_v9 = vsel %vm423_vm1, nan, %v433_v31  ;;  %v1861_v0 = vshrl.u32 %v9426_v39, %v1859_v21  ;;  %vm1685_vm4 = vcmp.lt.s32.totalorder %v9245_v54, 0 }
 0x229   :  { %11902 = vst [vmem:[#allocation47_spill] sm:$0xff] %v9545_v9  ;;  %v1864_v47 = vadd.s32 127, %v1863_v10  ;;  %v1742_v63 = vsel %vm1740_vm7, %v1741_v30, %v9508_v1  ;;  %v3556_v27 = vmul.f32 1.4142135, %v2112_v6  ;;  %v11903_v24 = vand.u32 2147483647, %v9245_v54 }
 0x22a   :  { %v1743_v38 = vadd.s32 %v1742_v63, %v1738_v62  ;;  %vm319_vm9 = vweird.f32 %v8201_v36  ;;  %vm323_vm11 = vcmp.eq.s32.totalorder %v8439_v15, 0  ;;  %v324_v33 = vxor.u32 2147483648, %v8625_v42  ;;  %v11907_v36 = vld [vmem:[#allocation8_spill] sm:$0xff] }
 0x22b   :  { %vm9552_vm3 = vcmp.le.f32.partialorder %v11903_v24, 0.7853982  ;;  %v1862_v39 = vor.u32 %v1861_v0, %v1860_v53  ;;  %v1865_v52 = vshll.u32 %v1864_v47, 23  ;;  %7142 = vrot.lane.b32.xlu1 %v3556_v27, %s8073_s0  ;;  %vm326_vm14 = vcmp.eq.s32.totalorder %v8439_v15, 2 }
 0x22c   :  { %v327_v1 = vxor.u32 2147483648, %v8622_v51  ;;  %v1744_v48 = vadd.s32 536870912, %v1743_v38  ;;  %vm322_vm15 = vcmp.lt.s32.totalorder %v8439_v15, 2  ;;  %v2000_v62 = vand.u32 3, %v8373_v26 }
 0x22d   :  { %v325_v29 = vsel %vm323_vm11, %v8622_v51, %v324_v33  ;;  %v1866_v12 = vor.u32 4788187, %v1865_v52  ;;  %v1869_v7 = vcvt.s32.f32 %v1862_v39  ;;  %vm634_vm0 = vcmp.lt.s32.totalorder %v8587_v57, 2 }
 0x22e   :  { %v328_v61 = vsel %vm326_vm14, %v327_v1, %v8625_v42  ;;  %v1745_v59 = vshrl.u32 %v1744_v48, 30  ;;  %vm2001_vm1 = vcmp.lt.s32.totalorder %v2000_v62, 2  ;;  %vm2002_vm5 = vcmp.eq.s32.totalorder %v2000_v62, 0 }
 0x22f   :  { %vm2005_vm8 = vcmp.eq.s32.totalorder %v2000_v62, 2  ;;  %vm631_vm2 = vweird.f32 %v8207_v41  ;;  %v1867_v5 = vand.u32 2147483647, %v1866_v12  ;;  %v2004_v35 = vsel %vm2002_vm5, %v8622_v51, %v324_v33  ;;  %v9574_v14 = vpop.eup %7968 }
 0x230   :  { %v2007_v15 = vsel %vm2005_vm8, %v327_v1, %v8625_v42  ;;  %v329_v26 = vsel %vm322_vm15, %v325_v29, %v328_v61  ;;  %v1746_v32 = vshll.u32 %v1745_v59, 30  ;;  %v1769_v44 = vsub.s32 4, %v1745_v59  ;;  %v11908_v61 = vld [vmem:[#allocation5_spill] sm:$0xff] }
 0x231   :  { %v2008_v23 = vsel %vm2001_vm1, %v2004_v35, %v2007_v15  ;;  %v9572_v30 = vsel %vm319_vm9, nan, %v329_v26  ;;  %v1870_v31 = vmul.f32 %v1869_v7, %v1867_v5  ;;  %vm635_vm6 = vcmp.eq.s32.totalorder %v8587_v57, 0  ;;  %v9589_v27 = vpop.eup %7970  ;;  %v11910_v15 = vld [vmem:[#allocation11_spill] sm:$0xff] }
 0x232   :  { %11906 = vst [vmem:[#allocation48_spill] sm:$0xff] %v9572_v30  ;;  %v2009_v21 = vsel %vm319_vm9, nan, %v2008_v23  ;;  %v636_v51 = vxor.u32 2147483648, %v8735_v60  ;;  %v9580_v53 = vsub.s32 %v1743_v38, %v1746_v32  ;;  %v1770_v42 = vsel %vm1685_vm4, %v1769_v44, %v1745_v59  ;;  %v11911_v32 = vld [vmem:[#allocation18_spill] sm:$0xff]  ;;  %v11912_v23 = vld [vmem:[#allocation17_spill] sm:$0xff] }
 0x233   :  { %v3555_v10 = vmul.f32 1.4142135, %v2009_v21  ;;  %vm638_vm10 = vcmp.eq.s32.totalorder %v8587_v57, 2  ;;  %v1871_v6 = vxor.u32 2147483648, %v1870_v31  ;;  %v1772_v0 = vsel %vm9552_vm3, 0, %v1770_v42  ;;  %v11915_v42 = vld [vmem:[#allocation16_spill] sm:$0xff] }
 0x234   :  { %v639_v47 = vxor.u32 2147483648, %v8692_v25  ;;  %v2309_v63 = vand.u32 3, %v11907_v36  ;;  %v1749_v24 = vsub.s32 0, %v9580_v53  ;;  %v1776_v38 = vadd.s32 3, %v1772_v0 }
 0x235   :  { %v9592_v33 = vand.u32 3, %v1772_v0  ;;  %7140 = vrot.lane.b32.xlu0 %v3555_v10, %s8073_s0  ;;  %v637_v39 = vsel %vm635_vm6, %v8692_v25, %v636_v51  ;;  %v1872_v52 = vsel %vm1789_vm12, %v1871_v6, %v1870_v31  ;;  %vm527_vm12 = vweird.f32 %v11908_v61  ;;  %v11913_v31 = vld [vmem:[#allocation10_spill] sm:$0xff] }
 0x236   :  { %vm2310_vm7 = vcmp.lt.s32.totalorder %v2309_v63, 2  ;;  %vm2311_vm9 = vcmp.eq.s32.totalorder %v2309_v63, 0  ;;  %vm2314_vm11 = vcmp.eq.s32.totalorder %v2309_v63, 2  ;;  %v1875_v1 = vsel %vm9432_vm13, %v9219_v49, %v1872_v52 }
 0x237   :  { %v7473_v48 = vmin.u32 %v1749_v24, %v9580_v53  ;;  %v9602_v62 = vand.u32 3, %v1776_v38  ;;  %v2313_v29 = vsel %vm2311_vm9, %v8692_v25, %v636_v51  ;;  %7972 = vcosq.f32 %v1875_v1  ;;  %v11914_v51 = vld [vmem:[#allocation6_spill] sm:$0xff] }
 0x238   :  { %v2316_v12 = vsel %vm2314_vm11, %v639_v47, %v8735_v60  ;;  %v640_v7 = vsel %vm638_vm10, %v639_v47, %v8735_v60  ;;  %7974 = vsinq.f32 %v1875_v1  ;;  %vm530_vm13 = vcmp.lt.s32.totalorder %v11910_v15, 2 }
 0x239   :  { %v1751_v59 = vclz %v7473_v48  ;;  %v2317_v5 = vsel %vm2310_vm7, %v2313_v29, %v2316_v12  ;;  %v641_v55 = vsel %vm634_vm0, %v637_v39, %v640_v7  ;;  %vm531_vm14 = vcmp.eq.s32.totalorder %v11910_v15, 0  ;;  %v11917_v7 = vld [vmem:[#allocation13_spill] sm:$0xff] }
 0x23a   :  { %v2318_v35 = vsel %vm631_vm2, nan, %v2317_v5  ;;  %v9616_v25 = vsel %vm631_vm2, nan, %v641_v55  ;;  %v532_v44 = vxor.u32 2147483648, %v11911_v32  ;;  %vm534_vm15 = vcmp.eq.s32.totalorder %v11910_v15, 2 }
 0x23b   :  { %11909 = vst [vmem:[#allocation8_spill] sm:$0xff] %v9616_v25  ;;  %v7474_v60 = vadd.s32 4294967294, %v1751_v59  ;;  %v3558_v26 = vmul.f32 1.4142135, %v2318_v35  ;;  %v535_v57 = vxor.u32 2147483648, %v11912_v23  ;;  %v2206_v21 = vand.u32 3, %v11913_v31 }
 0x23c   :  { %vm839_vm0 = vweird.f32 %v11914_v51  ;;  %vm842_vm1 = vcmp.lt.s32.totalorder %v11915_v42, 2  ;;  %v533_v41 = vsel %vm531_vm14, %v11912_v23, %v532_v44  ;;  %vm843_vm8 = vcmp.eq.s32.totalorder %v11915_v42, 0 }
 0x23d   :  { %vm7475_vm5 = vcmp.lt.s32.totalorder %v7474_v60, 0  ;;  %7146 = vrot.lane.b32.xlu1 %v3558_v26, %s8073_s0  ;;  %v844_v10 = vxor.u32 2147483648, %v8812_v22  ;;  %vm2207_vm2 = vcmp.lt.s32.totalorder %v2206_v21, 2  ;;  %vm2208_vm6 = vcmp.eq.s32.totalorder %v2206_v21, 0 }
 0x23e   :  { %v1754_v6 = vsel %vm7475_vm5, 0, %v7474_v60  ;;  %vm2211_vm10 = vcmp.eq.s32.totalorder %v2206_v21, 2  ;;  %v2210_v63 = vsel %vm2208_vm6, %v11912_v23, %v532_v44  ;;  %v536_v38 = vsel %vm534_vm15, %v535_v57, %v11911_v32 }
 0x23f   :  { %v1755_v0 = vsub.s32 32, %v1754_v6  ;;  %v1756_v47 = vshll.u32 %v9580_v53, %v1754_v6  ;;  %v1759_v36 = vsub.s32 4294967266, %v1754_v6  ;;  %v2213_v24 = vsel %vm2211_vm10, %v535_v57, %v11911_v32 }
 0x240   :  { %vm846_vm7 = vcmp.eq.s32.totalorder %v11915_v42, 2  ;;  %v847_v39 = vxor.u32 2147483648, %v8806_v40  ;;  %v2214_v48 = vsel %vm2207_vm2, %v2210_v63, %v2213_v24  ;;  %v537_v53 = vsel %vm530_vm13, %v533_v41, %v536_v38  ;;  %v11919_v41 = vld [vmem:[#allocation7_spill] sm:$0xff]  ;;  %v11920_v42 = vld [vmem:[#allocation21_spill] sm:$0xff]  ;;  %v11923_v63 = vld [vmem:[#allocation14_spill] sm:$0xff] }
 0x241   :  { %v1757_v52 = vshrl.u32 %v9538_v18, %v1755_v0  ;;  %v1760_v1 = vadd.s32 127, %v1759_v36  ;;  %v2215_v29 = vsel %vm527_vm12, nan, %v2214_v48  ;;  %v9645_v12 = vsel %vm527_vm12, nan, %v537_v53 }
 0x242   :  { %11916 = vst [vmem:[#allocation5_spill] sm:$0xff] %v9645_v12  ;;  %v2515_v59 = vand.u32 3, %v11917_v7  ;;  %v845_v5 = vsel %vm843_vm8, %v8806_v40, %v844_v10  ;;  %v3557_v35 = vmul.f32 1.4142135, %v2215_v29  ;;  %v848_v60 = vsel %vm846_vm7, %v847_v39, %v8812_v22 }
 0x243   :  { %v1758_v55 = vor.u32 %v1757_v52, %v1756_v47  ;;  %v1761_v18 = vshll.u32 %v1760_v1, 23  ;;  %v849_v15 = vsel %vm842_vm1, %v845_v5, %v848_v60  ;;  %vm735_vm12 = vweird.f32 %v11919_v41  ;;  %v11922_v47 = vld [vmem:[#allocation25_spill] sm:$0xff]  ;;  %v11925_v1 = vld [vmem:[#allocation22_spill] sm:$0xff]  ;;  %v11931_v41 = vld [vmem:[#allocation27_spill] sm:$0xff] }
 0x244   :  { %vm2516_vm9 = vcmp.lt.s32.totalorder %v2515_v59, 2  ;;  %vm2517_vm11 = vcmp.eq.s32.totalorder %v2515_v59, 0  ;;  %vm2520_vm13 = vcmp.eq.s32.totalorder %v2515_v59, 2  ;;  %v9654_v61 = vpop.eup %7972  ;;  %7144 = vrot.lane.b32.xlu0 %v3557_v35, %s8073_s0  ;;  %v9663_v21 = vsel %vm839_vm0, nan, %v849_v15  ;;  %v11924_v52 = vld [vmem:[#allocation9_spill] sm:$0xff]  ;;  %v11928_v15 = vld [vmem:[#allocation31_spill] sm:$0xff] }
 0x245   :  { %v1762_v26 = vor.u32 4788187, %v1761_v18  ;;  %v1765_v32 = vcvt.s32.f32 %v1758_v55  ;;  %v2519_v44 = vsel %vm2517_vm11, %v8806_v40, %v844_v10  ;;  %v2522_v23 = vsel %vm2520_vm13, %v847_v39, %v8812_v22  ;;  %v9659_v57 = vpop.eup %7974  ;;  %11918 = vst [vmem:[#allocation11_spill] sm:$0xff] %v9663_v21  ;;  %v11921_v40 = vld [vmem:[#allocation26_spill] sm:$0xff]  ;;  %v11927_v55 = vld [vmem:[#allocation32_spill] sm:$0xff] }
 0x246   :  { %v2523_v31 = vsel %vm2516_vm9, %v2519_v44, %v2522_v23  ;;  %vm738_vm14 = vcmp.lt.s32.totalorder %v11920_v42, 2  ;;  %vm739_vm15 = vcmp.eq.s32.totalorder %v11920_v42, 0  ;;  %v740_v10 = vxor.u32 2147483648, %v11921_v40  ;;  %v11929_v23 = vld [vmem:[#allocation20_spill] sm:$0xff] }
 0x247   :  { %v1763_v6 = vand.u32 2147483647, %v1762_v26  ;;  %v2524_v0 = vsel %vm839_vm0, nan, %v2523_v31  ;;  %vm742_vm1 = vcmp.eq.s32.totalorder %v11920_v42, 2  ;;  %v743_v36 = vxor.u32 2147483648, %v11922_v47 }
 0x248   :  { %v3560_v22 = vmul.f32 1.4142135, %v2524_v0  ;;  %v2412_v24 = vand.u32 3, %v11923_v63  ;;  %v741_v39 = vsel %vm739_vm15, %v11922_v47, %v740_v10  ;;  %vm1047_vm5 = vweird.f32 %v11924_v52  ;;  %v11930_v0 = vld [vmem:[#allocation12_spill] sm:$0xff] }
 0x249   :  { %v1766_v38 = vmul.f32 %v1765_v32, %v1763_v6  ;;  %vm1050_vm8 = vcmp.lt.s32.totalorder %v11925_v1, 2  ;;  %v744_v51 = vsel %vm742_vm1, %v743_v36, %v11921_v40  ;;  %vm1051_vm10 = vcmp.eq.s32.totalorder %v11925_v1, 0 }
 0x24a   :  { %7150 = vrot.lane.b32.xlu1 %v3560_v22, %s8073_s0  ;;  %vm2413_vm0 = vcmp.lt.s32.totalorder %v2412_v24, 2  ;;  %vm2414_vm2 = vcmp.eq.s32.totalorder %v2412_v24, 0  ;;  %vm2417_vm6 = vcmp.eq.s32.totalorder %v2412_v24, 2  ;;  %v745_v7 = vsel %vm738_vm14, %v741_v39, %v744_v51  ;;  %v11935_v51 = vld [vmem:[#allocation23_spill] sm:$0xff] }
 0x24b   :  { %v1767_v48 = vxor.u32 2147483648, %v1766_v38  ;;  %v2416_v53 = vsel %vm2414_vm2, %v11922_v47, %v740_v10  ;;  %v2419_v29 = vsel %vm2417_vm6, %v743_v36, %v11921_v40  ;;  %v9685_v5 = vsel %vm735_vm12, nan, %v745_v7  ;;  %v11933_v36 = vld [vmem:[#allocation34_spill] sm:$0xff] }
 0x24c   :  { %v2420_v59 = vsel %vm2413_vm0, %v2416_v53, %v2419_v29  ;;  %11926 = vst [vmem:[#allocation18_spill] sm:$0xff] %v9685_v5  ;;  %v1052_v18 = vxor.u32 2147483648, %v11927_v55  ;;  %vm1054_vm7 = vcmp.eq.s32.totalorder %v11925_v1, 2  ;;  %v1055_v26 = vxor.u32 2147483648, %v11928_v15  ;;  %v11936_v1 = vld [vmem:[#allocation15_spill] sm:$0xff]  ;;  %v11937_v7 = vld [vmem:[#allocation30_spill] sm:$0xff] }
 0x24d   :  { %v1768_v35 = vsel %vm1685_vm4, %v1767_v48, %v1766_v38  ;;  %v2421_v60 = vsel %vm735_vm12, nan, %v2420_v59  ;;  %v2721_v31 = vand.u32 3, %v11929_v23  ;;  %vm943_vm4 = vweird.f32 %v11930_v0  ;;  %v11934_v38 = vld [vmem:[#allocation33_spill] sm:$0xff] }
 0x24e   :  { %v1771_v32 = vsel %vm9552_vm3, %v9245_v54, %v1768_v35  ;;  %v3559_v44 = vmul.f32 1.4142135, %v2421_v60  ;;  %v1053_v42 = vsel %vm1051_vm10, %v11928_v15, %v1052_v18  ;;  %v1056_v6 = vsel %vm1054_vm7, %v1055_v26, %v11927_v55 }
 0x24f   :  { %7976 = vcosq.f32 %v1771_v32  ;;  %vm946_vm9 = vcmp.lt.s32.totalorder %v11931_v41, 2  ;;  %vm2722_vm11 = vcmp.lt.s32.totalorder %v2721_v31, 2  ;;  %vm2723_vm13 = vcmp.eq.s32.totalorder %v2721_v31, 0 }
 0x250   :  { %7978 = vsinq.f32 %v1771_v32  ;;  %7148 = vrot.lane.b32.xlu0 %v3559_v44, %s8073_s0  ;;  %vm2726_vm12 = vcmp.eq.s32.totalorder %v2721_v31, 2  ;;  %v2725_v58 = vsel %vm2723_vm13, %v11928_v15, %v1052_v18  ;;  %v1057_v10 = vsel %vm1050_vm8, %v1053_v42, %v1056_v6  ;;  %v11939_v44 = vld [vmem:[#allocation28_spill] sm:$0xff]  ;;  %v11940_v42 = vld [vmem:[#allocation19_spill] sm:$0xff] }
 0x251   :  { %v2728_v40 = vsel %vm2726_vm12, %v1055_v26, %v11927_v55  ;;  %vm947_vm3 = vcmp.eq.s32.totalorder %v11931_v41, 0  ;;  %v9711_v47 = vsel %vm1047_vm5, nan, %v1057_v10  ;;  %v948_v63 = vxor.u32 2147483648, %v11933_v36 }
 0x252   :  { %v2729_v22 = vsel %vm2722_vm11, %v2725_v58, %v2728_v40  ;;  %11932 = vst [vmem:[#allocation17_spill] sm:$0xff] %v9711_v47  ;;  %vm950_vm14 = vcmp.eq.s32.totalorder %v11931_v41, 2  ;;  %v951_v39 = vxor.u32 2147483648, %v11934_v38  ;;  %v2618_v48 = vand.u32 3, %v11935_v51  ;;  %v11941_v58 = vld [vmem:[#allocation36_spill] sm:$0xff] }
 0x253   :  { %v2730_v24 = vsel %vm1047_vm5, nan, %v2729_v22  ;;  %vm1255_vm15 = vweird.f32 %v11936_v1  ;;  %v949_v29 = vsel %vm947_vm3, %v11934_v38, %v948_v63  ;;  %vm1258_vm1 = vcmp.lt.s32.totalorder %v11937_v7, 2 }
 0x254   :  { %v3562_v53 = vmul.f32 1.4142135, %v2730_v24  ;;  %vm1259_vm8 = vcmp.eq.s32.totalorder %v11937_v7, 0  ;;  %vm2619_vm0 = vcmp.lt.s32.totalorder %v2618_v48, 2  ;;  %vm2620_vm2 = vcmp.eq.s32.totalorder %v2618_v48, 0 }
 0x255   :  { %vm2623_vm6 = vcmp.eq.s32.totalorder %v2618_v48, 2  ;;  %v952_v59 = vsel %vm950_vm14, %v951_v39, %v11933_v36  ;;  %v2622_v52 = vsel %vm2620_vm2, %v11934_v38, %v948_v63  ;;  %v1260_v35 = vxor.u32 2147483648, %v9163_v2  ;;  %v11945_v48 = vld [vmem:[#allocation35_spill] sm:$0xff] }
 0x256   :  { %7154 = vrot.lane.b32.xlu1 %v3562_v53, %s8073_s0  ;;  %v2625_v55 = vsel %vm2623_vm6, %v951_v39, %v11933_v36  ;;  %v953_v18 = vsel %vm946_vm9, %v949_v29, %v952_v59  ;;  %vm1262_vm5 = vcmp.eq.s32.totalorder %v11937_v7, 2  ;;  %v1263_v26 = vxor.u32 2147483648, %v9160_v13  ;;  %v11943_v36 = vld [vmem:[#allocation42_spill] sm:$0xff]  ;;  %v11946_v7 = vld [vmem:[#allocation24_spill] sm:$0xff] }
 0x257   :  { %v2626_v60 = vsel %vm2619_vm0, %v2622_v52, %v2625_v55  ;;  %v9732_v15 = vsel %vm943_vm4, nan, %v953_v18  ;;  %v2927_v23 = vand.u32 3, %v11939_v44  ;;  %v1261_v31 = vsel %vm1259_vm8, %v9160_v13, %v1260_v35  ;;  %v11944_v39 = vld [vmem:[#allocation38_spill] sm:$0xff]  ;;  %v11947_v59 = vld [vmem:[#allocation40_spill] sm:$0xff] }
 0x258   :  { %11938 = vst [vmem:[#allocation10_spill] sm:$0xff] %v9732_v15  ;;  %v2627_v32 = vsel %vm943_vm4, nan, %v2626_v60  ;;  %vm1151_vm10 = vweird.f32 %v11940_v42  ;;  %v1264_v41 = vsel %vm1262_vm5, %v1263_v26, %v9163_v2  ;;  %vm1154_vm7 = vcmp.lt.s32.totalorder %v11941_v58, 2 }
 0x259   :  { %v3561_v6 = vmul.f32 1.4142135, %v2627_v32  ;;  %vm1155_vm9 = vcmp.eq.s32.totalorder %v11941_v58, 0  ;;  %vm2928_vm11 = vcmp.lt.s32.totalorder %v2927_v23, 2  ;;  %vm2929_vm13 = vcmp.eq.s32.totalorder %v2927_v23, 0 }
 0x25a   :  { %vm2932_vm12 = vcmp.eq.s32.totalorder %v2927_v23, 2  ;;  %v1265_v0 = vsel %vm1258_vm1, %v1261_v31, %v1264_v41  ;;  %v2931_v40 = vsel %vm2929_vm13, %v9160_v13, %v1260_v35  ;;  %v1156_v63 = vxor.u32 2147483648, %v11943_v36  ;;  %v11950_v31 = vld [vmem:[#allocation43_spill] sm:$0xff]  ;;  %v11951_v41 = vld [vmem:[#allocation37_spill] sm:$0xff] }
 0x25b   :  { %7152 = vrot.lane.b32.xlu0 %v3561_v6, %s8073_s0  ;;  %v2934_v10 = vsel %vm2932_vm12, %v1263_v26, %v9163_v2  ;;  %v9753_v22 = vsel %vm1255_vm15, nan, %v1265_v0  ;;  %vm1158_vm4 = vcmp.eq.s32.totalorder %v11941_v58, 2  ;;  %v1159_v51 = vxor.u32 2147483648, %v11944_v39  ;;  %v11948_v26 = vld [vmem:[#allocation45_spill] sm:$0xff] }
 0x25c   :  { %11942 = vst [vmem:[#allocation6_spill] sm:$0xff] %v9753_v22  ;;  %v9756_v24 = vpop.eup %7976  ;;  %v2935_v38 = vsel %vm2928_vm11, %v2931_v40, %v2934_v10  ;;  %v2824_v53 = vand.u32 3, %v11945_v48  ;;  %v1157_v2 = vsel %vm1155_vm9, %v11944_v39, %v1156_v63  ;;  %vm1463_vm3 = vweird.f32 %v11946_v7  ;;  %v11952_v58 = vld [vmem:[#allocation29_spill] sm:$0xff] }
 0x25d   :  { %v9761_v29 = vpop.eup %7978  ;;  %v2936_v13 = vsel %vm1255_vm15, nan, %v2935_v38  ;;  %vm1466_vm14 = vcmp.lt.s32.totalorder %v11947_v59, 2  ;;  %v1160_v35 = vsel %vm1158_vm4, %v1159_v51, %v11943_v36  ;;  %vm1467_vm15 = vcmp.eq.s32.totalorder %v11947_v59, 0 }
 0x25e   :  { %v3564_v52 = vmul.f32 1.4142135, %v2936_v13  ;;  %vm2825_vm1 = vcmp.lt.s32.totalorder %v2824_v53, 2  ;;  %vm2826_vm8 = vcmp.eq.s32.totalorder %v2824_v53, 0  ;;  %vm2829_vm0 = vcmp.eq.s32.totalorder %v2824_v53, 2 }
 0x25f   :  { %v2828_v55 = vsel %vm2826_vm8, %v11944_v39, %v1156_v63  ;;  %v2831_v18 = vsel %vm2829_vm0, %v1159_v51, %v11943_v36  ;;  %v1161_v60 = vsel %vm1154_vm7, %v1157_v2, %v1160_v35  ;;  %v1468_v32 = vxor.u32 2147483648, %v11948_v26  ;;  %v11953_v36 = vld [vmem:[#allocation41_spill] sm:$0xff]  ;;  %v11956_v35 = vld [vmem:[#allocation46_spill] sm:$0xff] }
 0x260   :  { %7158 = vrot.lane.b32.xlu1 %v3564_v52, %s8073_s0  ;;  %v2832_v1 = vsel %vm2825_vm1, %v2828_v55, %v2831_v18  ;;  %vm1470_vm2 = vcmp.eq.s32.totalorder %v11947_v59, 2  ;;  %v9783_v23 = vsel %vm1151_vm10, nan, %v1161_v60  ;;  %v1471_v6 = vxor.u32 2147483648, %v11950_v31  ;;  %v11955_v52 = vld [vmem:[#allocation39_spill] sm:$0xff] }
 0x261   :  { %v2833_v44 = vsel %vm1151_vm10, nan, %v2832_v1  ;;  %11949 = vst [vmem:[#allocation16_spill] sm:$0xff] %v9783_v23  ;;  %v3133_v0 = vand.u32 3, %v11951_v41  ;;  %v1469_v10 = vsel %vm1467_vm15, %v11950_v31, %v1468_v32  ;;  %vm1359_vm6 = vweird.f32 %v11952_v58 }
 0x262   :  { %v3563_v40 = vmul.f32 1.4142135, %v2833_v44  ;;  %vm1362_vm5 = vcmp.lt.s32.totalorder %v11953_v36, 2  ;;  %v1472_v63 = vsel %vm1470_vm2, %v1471_v6, %v11948_v26  ;;  %vm1363_vm10 = vcmp.eq.s32.totalorder %v11953_v36, 0 }
 0x263   :  { %vm3134_vm7 = vcmp.lt.s32.totalorder %v3133_v0, 2  ;;  %vm3135_vm9 = vcmp.eq.s32.totalorder %v3133_v0, 0  ;;  %vm3138_vm11 = vcmp.eq.s32.totalorder %v3133_v0, 2  ;;  %v1473_v39 = vsel %vm1466_vm14, %v1469_v10, %v1472_v63 }
 0x264   :  { %7156 = vrot.lane.b32.xlu0 %v3563_v40, %s8073_s0  ;;  %v3137_v42 = vsel %vm3135_vm9, %v11950_v31, %v1468_v32  ;;  %v3140_v38 = vsel %vm3138_vm11, %v1471_v6, %v11948_v26  ;;  %v9799_v48 = vsel %vm1463_vm3, nan, %v1473_v39  ;;  %v1364_v53 = vxor.u32 2147483648, %v9446_v11 }
 0x265   :  { %v3141_v51 = vsel %vm3134_vm7, %v3137_v42, %v3140_v38  ;;  %11954 = vst [vmem:[#allocation13_spill] sm:$0xff] %v9799_v48  ;;  %vm1366_vm13 = vcmp.eq.s32.totalorder %v11953_v36, 2  ;;  %v1367_v2 = vxor.u32 2147483648, %v9379_v20  ;;  %v3030_v55 = vand.u32 3, %v11955_v52 }
 0x266   :  { %v3142_v13 = vsel %vm1463_vm3, nan, %v3141_v51  ;;  %vm1671_vm12 = vweird.f32 %v9013_v3  ;;  %v1365_v18 = vsel %vm1363_vm10, %v9379_v20, %v1364_v53  ;;  %vm1674_vm4 = vcmp.lt.s32.totalorder %v11956_v35, 2 }
 0x267   :  { %v3566_v59 = vmul.f32 1.4142135, %v3142_v13  ;;  %vm1675_vm14 = vcmp.eq.s32.totalorder %v11956_v35, 0  ;;  %vm3031_vm1 = vcmp.lt.s32.totalorder %v3030_v55, 2  ;;  %vm3032_vm8 = vcmp.eq.s32.totalorder %v3030_v55, 0 }
 0x268   :  { %vm3035_vm0 = vcmp.eq.s32.totalorder %v3030_v55, 2  ;;  %v1368_v1 = vsel %vm1366_vm13, %v1367_v2, %v9446_v11  ;;  %v3034_v7 = vsel %vm3032_vm8, %v9379_v20, %v1364_v53  ;;  %v1676_v32 = vxor.u32 2147483648, %v9462_v37  ;;  %v11958_v20 = vld [vmem:[#allocation44_spill] sm:$0xff] }
 0x269   :  { %7162 = vrot.lane.b32.xlu1 %v3566_v59, %s8073_s0  ;;  %v3037_v60 = vsel %vm3035_vm0, %v1367_v2, %v9446_v11  ;;  %v1369_v26 = vsel %vm1362_vm5, %v1365_v18, %v1368_v1  ;;  %vm1678_vm3 = vcmp.eq.s32.totalorder %v11956_v35, 2  ;;  %v1679_v6 = vxor.u32 2147483648, %v9454_v56 }
 0x26a   :  { %v3038_v44 = vsel %vm3031_vm1, %v3034_v7, %v3037_v60  ;;  %v9820_v31 = vsel %vm1359_vm6, nan, %v1369_v26  ;;  %v3339_v0 = vand.u32 3, %v11958_v20  ;;  %v1677_v11 = vsel %vm1675_vm14, %v9454_v56, %v1676_v32 }
 0x26b   :  { %11957 = vst [vmem:[#allocation7_spill] sm:$0xff] %v9820_v31  ;;  %v3039_v41 = vsel %vm1359_vm6, nan, %v3038_v44  ;;  %vm1567_vm15 = vweird.f32 %v9121_v46  ;;  %v1680_v10 = vsel %vm1678_vm3, %v1679_v6, %v9462_v37  ;;  %vm1570_vm2 = vcmp.lt.s32.totalorder %v9410_v4, 2 }
 0x26c   :  { %v3565_v40 = vmul.f32 1.4142135, %v3039_v41  ;;  %vm1571_vm5 = vcmp.eq.s32.totalorder %v9410_v4, 0  ;;  %vm3340_vm7 = vcmp.lt.s32.totalorder %v3339_v0, 2  ;;  %vm3341_vm9 = vcmp.eq.s32.totalorder %v3339_v0, 0 }
 0x26d   :  { %vm3344_vm11 = vcmp.eq.s32.totalorder %v3339_v0, 2  ;;  %v1681_v58 = vsel %vm1674_vm4, %v1677_v11, %v1680_v10  ;;  %v3343_v36 = vsel %vm3341_vm9, %v9454_v56, %v1676_v32  ;;  %v1572_v38 = vxor.u32 2147483648, %v9589_v27 }
 0x26e   :  { %7160 = vrot.lane.b32.xlu0 %v3565_v40, %s8073_s0  ;;  %v3346_v63 = vsel %vm3344_vm11, %v1679_v6, %v9462_v37  ;;  %v9841_v42 = vsel %vm1671_vm12, nan, %v1681_v58  ;;  %vm1574_vm6 = vcmp.eq.s32.totalorder %v9410_v4, 2  ;;  %v1575_v51 = vxor.u32 2147483648, %v9574_v14  ;;  %v9872_v4 = vpop.f32.mrf.mxu1 }
 0x26f   :  { %11959 = vst [vmem:[#allocation21_spill] sm:$0xff] %v9841_v42  ;;  %v3347_v39 = vsel %vm3340_vm7, %v3343_v36, %v3346_v63  ;;  %v3236_v53 = vand.u32 3, %v9367_v45  ;;  %v1573_v56 = vsel %vm1571_vm5, %v9574_v14, %v1572_v38  ;;  %vm1879_vm10 = vweird.f32 %v9219_v49 }
 0x270   :  { %v3348_v13 = vsel %vm1671_vm12, nan, %v3347_v39  ;;  %vm1882_vm13 = vcmp.lt.s32.totalorder %v9488_v43, 2  ;;  %v1576_v55 = vsel %vm1574_vm6, %v1575_v51, %v9589_v27  ;;  %vm1883_vm8 = vcmp.eq.s32.totalorder %v9488_v43, 0 }
 0x271   :  { %v3568_v37 = vmul.f32 1.4142135, %v3348_v13  ;;  %vm3237_vm4 = vcmp.lt.s32.totalorder %v3236_v53, 2  ;;  %vm3238_vm14 = vcmp.eq.s32.totalorder %v3236_v53, 0  ;;  %vm3241_vm1 = vcmp.eq.s32.totalorder %v3236_v53, 2 }
 0x272   :  { %v3240_v2 = vsel %vm3238_vm14, %v9574_v14, %v1572_v38  ;;  %v3243_v52 = vsel %vm3241_vm1, %v1575_v51, %v9589_v27  ;;  %v1577_v45 = vsel %vm1570_vm2, %v1573_v56, %v1576_v55  ;;  %v1884_v59 = vxor.u32 2147483648, %v9659_v57 }
 0x273   :  { %7166 = vrot.lane.b32.xlu1 %v3568_v37, %s8073_s0  ;;  %v3244_v3 = vsel %vm3237_vm4, %v3240_v2, %v3243_v52  ;;  %vm1886_vm12 = vcmp.eq.s32.totalorder %v9488_v43, 2  ;;  %v9865_v14 = vsel %vm1567_vm15, nan, %v1577_v45  ;;  %v1887_v27 = vxor.u32 2147483648, %v9654_v61  ;;  %v9892_v43 = vpop.f32.mrf.mxu1 }
 0x274   :  { %v3245_v18 = vsel %vm1567_vm15, nan, %v3244_v3  ;;  %11960 = vst [vmem:[#allocation26_spill] sm:$0xff] %v9865_v14  ;;  %v3545_v35 = vand.u32 3, %v9466_v34  ;;  %v1885_v7 = vsel %vm1883_vm8, %v9654_v61, %v1884_v59  ;;  %vm1775_vm0 = vweird.f32 %v9245_v54 }
 0x275   :  { %v3567_v1 = vmul.f32 1.4142135, %v3245_v18  ;;  %vm1778_vm3 = vcmp.lt.s32.totalorder %v9602_v62, 2  ;;  %v1888_v46 = vsel %vm1886_vm12, %v1887_v27, %v9659_v57  ;;  %vm1779_vm15 = vcmp.eq.s32.totalorder %v9602_v62, 0 }
 0x276   :  { %vm3546_vm2 = vcmp.lt.s32.totalorder %v3545_v35, 2  ;;  %vm3547_vm5 = vcmp.eq.s32.totalorder %v3545_v35, 0  ;;  %vm3550_vm7 = vcmp.eq.s32.totalorder %v3545_v35, 2  ;;  %v1889_v26 = vsel %vm1882_vm13, %v1885_v7, %v1888_v46 }
 0x277   :  { %7164 = vrot.lane.b32.xlu0 %v3567_v1, %s8073_s0  ;;  %v3549_v60 = vsel %vm3547_vm5, %v9654_v61, %v1884_v59  ;;  %v3552_v34 = vsel %vm3550_vm7, %v1887_v27, %v9659_v57  ;;  %v9883_v44 = vsel %vm1879_vm10, nan, %v1889_v26  ;;  %v1780_v6 = vxor.u32 2147483648, %v9761_v29 }
 0x278   :  { %v3553_v32 = vsel %vm3546_vm2, %v3549_v60, %v3552_v34  ;;  %11961 = vst [vmem:[#allocation25_spill] sm:$0xff] %v9883_v44  ;;  %vm1782_vm9 = vcmp.eq.s32.totalorder %v9602_v62, 2  ;;  %v1783_v61 = vxor.u32 2147483648, %v9756_v24  ;;  %vm3443_vm11 = vcmp.lt.s32.totalorder %v9592_v33, 2 }
 0x279   :  { %v3554_v41 = vsel %vm1879_vm10, nan, %v3553_v32  ;;  %vm3444_vm6 = vcmp.eq.s32.totalorder %v9592_v33, 0  ;;  %vm3447_vm13 = vcmp.eq.s32.totalorder %v9592_v33, 2  ;;  %v1781_v0 = vsel %vm1779_vm15, %v9756_v24, %v1780_v6 }
 0x27a   :  { %v3570_v57 = vmul.f32 1.4142135, %v3554_v41  ;;  %v3446_v20 = vsel %vm3444_vm6, %v9756_v24, %v1780_v6  ;;  %v3449_v11 = vsel %vm3447_vm13, %v1783_v61, %v9761_v29  ;;  %v1784_v49 = vsel %vm1782_vm9, %v1783_v61, %v9761_v29  ;;  %v9911_v29 = vpop.f32.mrf.mxu1 }
 0x27b   :  { %v11763_v40 = vand.u32 2147483647, %v9872_v4  ;;  %v3450_v10 = vsel %vm3443_vm11, %v3446_v20, %v3449_v11  ;;  %v1785_v58 = vsel %vm1778_vm3, %v1781_v0, %v1784_v49  ;;  %v3887_v36 = vand.u32 2139095040, %v9872_v4  ;;  %11963 = vst [vmem:[#allocation9_spill] sm:$0xff] %v9911_v29 }
 0x27c   :  { %7170 = vrot.lane.b32.xlu1 %v3570_v57, %s8073_s0  ;;  %v11761_v63 = vand.u32 2147483647, %v9892_v43  ;;  %v3451_v33 = vsel %vm1775_vm0, nan, %v3450_v10  ;;  %v9909_v24 = vsel %vm1775_vm0, nan, %v1785_v58  ;;  %v3783_v62 = vand.u32 2139095040, %v9892_v43 }
 0x27d   :  { %11962 = vst [vmem:[#allocation14_spill] sm:$0xff] %v9909_v24  ;;  %v3569_v38 = vmul.f32 1.4142135, %v3451_v33  ;;  %v3888_v39 = vshrl.u32 %v3887_v36, 23  ;;  %v3891_v51 = vand.u32 8388607, %v11763_v40 }
 0x27e   :  { %v3787_v53 = vand.u32 8388607, %v11761_v63  ;;  %v4095_v56 = vand.u32 2139095040, %v9911_v29  ;;  %v3784_v54 = vshrl.u32 %v3783_v62, 23 }
 0x27f   :  { %7168 = vrot.lane.b32.xlu0 %v3569_v38, %s8073_s0  ;;  %v7565_v13 = vadd.s32 4294967169, %v3888_v39  ;;  %v3892_v2 = vor.u32 8388608, %v3891_v51 }
 0x280   :  { %v7561_v52 = vadd.s32 4294967169, %v3784_v54  ;;  %v3788_v55 = vor.u32 8388608, %v3787_v53  ;;  %v4096_v3 = vshrl.u32 %v4095_v56, 23 }
 0x281   :  { %v3894_v37 = vadd.s32 1, %v7565_v13  ;;  %v9920_v35 = vshll.u32 %v3892_v2, 8 }
 0x282   :  { %v3790_v59 = vadd.s32 1, %v7561_v52  ;;  %v9922_v1 = vshll.u32 %v3788_v55, 8  ;;  %v7573_v7 = vadd.s32 4294967169, %v4096_v3 }
 0x283   :  { %vm3895_vm10 = vcmp.gt.s32.totalorder %v3894_v37, 0 }
 0x284   :  { %v3896_v45 = vsel %vm3895_vm10, %v3894_v37, 0  ;;  %vm3791_vm4 = vcmp.gt.s32.totalorder %v3790_v59, 0 }
 0x285   :  { %v3897_v18 = vshrl.u32 %v3896_v45, 5  ;;  %v3898_v27 = vand.u32 31, %v3896_v45  ;;  %v3792_v36 = vsel %vm3791_vm4, %v3790_v59, 0  ;;  %v4102_v45 = vadd.s32 1, %v7573_v7 }
 0x286   :  { %v3794_v39 = vand.u32 31, %v3792_v36 }
 0x287   :  { %v3899_v46 = vsub.s32 32, %v3898_v27  ;;  %v3901_v60 = vshll.u32 %v11843_v17, %v3898_v27  ;;  %v3904_v34 = vshll.u32 %v11838_v19, %v3898_v27  ;;  %v3907_v26 = vshll.u32 %v11840_v28, %v3898_v27 }
 0x288   :  { %v3910_v32 = vshll.u32 %v11839_v50, %v3898_v27  ;;  %v3913_v6 = vshll.u32 %v11841_v8, %v3898_v27  ;;  %vm3916_vm14 = vcmp.lt.s32.totalorder %v3897_v18, 1  ;;  %vm3917_vm1 = vcmp.lt.s32.totalorder %v3897_v18, 2 }
 0x289   :  { %v3902_v41 = vshrl.u32 %v11838_v19, %v3899_v46  ;;  %v3905_v61 = vshrl.u32 %v11840_v28, %v3899_v46  ;;  %v3908_v57 = vshrl.u32 %v11839_v50, %v3899_v46  ;;  %v3900_v20 = vshrl.u32 %v11843_v17, %v3899_v46 }
 0x28a   :  { %v3911_v0 = vshrl.u32 %v11841_v8, %v3899_v46  ;;  %v3914_v11 = vshrl.u32 %v11842_v16, %v3899_v46  ;;  %vm3918_vm8 = vcmp.lt.s32.totalorder %v3897_v18, 3  ;;  %vm3919_vm12 = vcmp.lt.s32.totalorder %v3897_v18, 4 }
 0x28b   :  { %v3903_v49 = vor.u32 %v3902_v41, %v3901_v60  ;;  %v3906_v10 = vor.u32 %v3905_v61, %v3904_v34  ;;  %v3909_v58 = vor.u32 %v3908_v57, %v3907_v26  ;;  %v3795_v2 = vsub.s32 32, %v3794_v39 }
 0x28c   :  { %v3912_v33 = vor.u32 %v3911_v0, %v3910_v32  ;;  %v3915_v38 = vor.u32 %v3914_v11, %v3913_v6  ;;  %v3793_v46 = vshrl.u32 %v3792_v36, 5  ;;  %v3797_v60 = vshll.u32 %v11843_v17, %v3794_v39 }
 0x28d   :  { %v3920_v51 = vsel %vm3916_vm14, %v3900_v20, %v3903_v49  ;;  %v3921_v62 = vsel %vm3919_vm12, %v3909_v58, 2102212464  ;;  %v3924_v53 = vsel %vm3916_vm14, %v3903_v49, %v3906_v10  ;;  %v3928_v13 = vsel %vm3916_vm14, %v3906_v10, %v3909_v58 }
 0x28e   :  { %v3922_v56 = vsel %vm3918_vm8, %v3906_v10, %v3921_v62  ;;  %v3925_v54 = vsel %vm3919_vm12, %v3912_v33, 920167782  ;;  %v3929_v37 = vsel %vm3919_vm12, %v3915_v38, 1326507024  ;;  %v3798_v7 = vshrl.u32 %v11838_v19, %v3795_v2 }
 0x28f   :  { %v3923_v52 = vsel %vm3917_vm1, %v3920_v51, %v3922_v56  ;;  %v3926_v55 = vsel %vm3918_vm8, %v3909_v58, %v3925_v54  ;;  %v3930_v3 = vsel %vm3918_vm8, %v3912_v33, %v3929_v37  ;;  %v3800_v61 = vshll.u32 %v11838_v19, %v3794_v39 }
 0x290   :  { %v3927_v59 = vsel %vm3917_vm1, %v3924_v53, %v3926_v55  ;;  %v3931_v27 = vsel %vm3917_vm1, %v3928_v13, %v3930_v3  ;;  %v3939_v41 = vmul.u32 %v9920_v35, %v3923_v52  ;;  %v3801_v18 = vshrl.u32 %v11840_v28, %v3795_v2  ;;  %v9970_v52 = vpop.f32.mrf.mxu1 }
 0x291   :  { %v9947_v34 = vmul.u32.u64.low %v9920_v35, %v3931_v27  ;;  %v9948_v26 = vmul.u32.u64.high %v9920_v35, %v3931_v27, %v9947_v34  ;;  %v9951_v32 = vmul.u32.u64.low %v9920_v35, %v3927_v59  ;;  %v9952_v6 = vmul.u32.u64.high %v9920_v35, %v3927_v59, %v9951_v32  ;;  %11964 = vst [vmem:[#allocation22_spill] sm:$0xff] %v9970_v52 }
 0x292   :  { %v3803_v57 = vshll.u32 %v11840_v28, %v3794_v39  ;;  %v3804_v20 = vshrl.u32 %v11839_v50, %v3795_v2  ;;  %v3806_v0 = vshll.u32 %v11839_v50, %v3794_v39  ;;  %v3807_v11 = vshrl.u32 %v11841_v8, %v3795_v2 }
 0x293   :  { %v3799_v49 = vor.u32 %v3798_v7, %v3797_v60  ;;  %v3802_v10 = vor.u32 %v3801_v18, %v3800_v61  ;;  %v3809_v58 = vshll.u32 %v11841_v8, %v3794_v39  ;;  %v3810_v35 = vshrl.u32 %v11842_v16, %v3795_v2 }
 0x294   :  { %vm3941_vm0 = vc.u32 %v9948_v26, %v9951_v32  ;;  %v3942_v36 = vadd.s32 1, %v9952_v6  ;;  %v3796_v33 = vshrl.u32 %v11843_v17, %v3795_v2  ;;  %v3805_v38 = vor.u32 %v3804_v20, %v3803_v57 }
 0x295   :  { %v3808_v51 = vor.u32 %v3807_v11, %v3806_v0  ;;  %v3811_v62 = vor.u32 %v3810_v35, %v3809_v58  ;;  %vm3812_vm3 = vcmp.lt.s32.totalorder %v3793_v46, 1  ;;  %vm3813_vm2 = vcmp.lt.s32.totalorder %v3793_v46, 2 }
 0x296   :  { %v3943_v53 = vsel %vm3941_vm0, %v3942_v36, %v9952_v6  ;;  %vm3814_vm5 = vcmp.lt.s32.totalorder %v3793_v46, 3  ;;  %vm3815_vm7 = vcmp.lt.s32.totalorder %v3793_v46, 4  ;;  %v3820_v13 = vsel %vm3812_vm3, %v3799_v49, %v3802_v10 }
 0x297   :  { %v3944_v39 = vadd.s32 %v3943_v53, %v3939_v41  ;;  %v3817_v56 = vsel %vm3815_vm7, %v3805_v38, 2102212464  ;;  %v3821_v54 = vsel %vm3815_vm7, %v3808_v51, 920167782  ;;  %v3824_v37 = vsel %vm3812_vm3, %v3802_v10, %v3805_v38 }
 0x298   :  { %v3816_v55 = vsel %vm3812_vm3, %v3796_v33, %v3799_v49  ;;  %v3822_v3 = vsel %vm3814_vm5, %v3805_v38, %v3821_v54  ;;  %v3825_v59 = vsel %vm3815_vm7, %v3811_v62, 1326507024  ;;  %vm4103_vm15 = vcmp.gt.s32.totalorder %v4102_v45, 0 }
 0x299   :  { %v3945_v2 = vadd.s32 536870912, %v3944_v39  ;;  %v3818_v27 = vsel %vm3814_vm5, %v3802_v10, %v3817_v56  ;;  %v3823_v60 = vsel %vm3813_vm2, %v3820_v13, %v3822_v3  ;;  %v3826_v34 = vsel %vm3814_vm5, %v3808_v51, %v3825_v59 }
 0x29a   :  { %v3827_v6 = vsel %vm3813_vm2, %v3824_v37, %v3826_v34  ;;  %v9975_v7 = vmul.u32.u64.low %v9922_v1, %v3823_v60  ;;  %v9976_v61 = vmul.u32.u64.high %v9922_v1, %v3823_v60, %v9975_v7  ;;  %v3991_v41 = vand.u32 2139095040, %v9970_v52 }
 0x29b   :  { %v9980_v18 = vshrl.u32 %v3945_v2, 30  ;;  %v9983_v57 = vmul.u32.u64.low %v9922_v1, %v3827_v6  ;;  %v9984_v20 = vmul.u32.u64.high %v9922_v1, %v3827_v6, %v9983_v57  ;;  %v4104_v0 = vsel %vm4103_vm15, %v4102_v45, 0 }
 0x29c   :  { %v3819_v11 = vsel %vm3813_vm2, %v3816_v55, %v3818_v27  ;;  %v4106_v49 = vand.u32 31, %v4104_v0  ;;  %v3838_v58 = vadd.s32 1, %v9976_v61  ;;  %v11760_v35 = vand.u32 2147483647, %v9911_v29 }
 0x29d   :  { %v3947_v10 = vshll.u32 %v9980_v18, 30  ;;  %v3835_v38 = vmul.u32 %v9922_v1, %v3819_v11  ;;  %vm3837_vm9 = vc.u32 %v9984_v20, %v9975_v7  ;;  %v3992_v51 = vshrl.u32 %v3991_v41, 23 }
 0x29e   :  { %v4107_v36 = vsub.s32 32, %v4106_v49  ;;  %v3839_v45 = vsel %vm3837_vm9, %v3838_v58, %v9976_v61  ;;  %v4109_v46 = vshll.u32 %v11843_v17, %v4106_v49  ;;  %v4112_v53 = vshll.u32 %v11838_v19, %v4106_v49 }
 0x29f   :  { %v9990_v33 = vsub.s32 %v3944_v39, %v3947_v10  ;;  %v3840_v56 = vadd.s32 %v3839_v45, %v3835_v38  ;;  %v4115_v54 = vshll.u32 %v11840_v28, %v4106_v49  ;;  %v4118_v37 = vshll.u32 %v11839_v50, %v4106_v49 }
 0x2a0   :  { %v4110_v62 = vshrl.u32 %v11838_v19, %v4107_v36  ;;  %v4113_v39 = vshrl.u32 %v11840_v28, %v4107_v36  ;;  %v4116_v1 = vshrl.u32 %v11839_v50, %v4107_v36  ;;  %v4119_v55 = vshrl.u32 %v11841_v8, %v4107_v36 }
 0x2a1   :  { %v3950_v13 = vsub.s32 0, %v9990_v33  ;;  %v4099_v3 = vand.u32 8388607, %v11760_v35  ;;  %v4105_v59 = vshrl.u32 %v4104_v0, 5  ;;  %v4121_v2 = vshll.u32 %v11841_v8, %v4106_v49 }
 0x2a2   :  { %v7569_v27 = vadd.s32 4294967169, %v3992_v51  ;;  %v4120_v34 = vor.u32 %v4119_v55, %v4118_v37  ;;  %v4122_v6 = vshrl.u32 %v11842_v16, %v4107_v36  ;;  %v3841_v61 = vadd.s32 536870912, %v3840_v56 }
 0x2a3   :  { %v7566_v60 = vmin.u32 %v3950_v13, %v9990_v33  ;;  %v4111_v41 = vor.u32 %v4110_v62, %v4109_v46  ;;  %v4114_v57 = vor.u32 %v4113_v39, %v4112_v53  ;;  %v4117_v11 = vor.u32 %v4116_v1, %v4115_v54 }
 0x2a4   :  { %v4123_v10 = vor.u32 %v4122_v6, %v4121_v2  ;;  %v4100_v58 = vor.u32 8388608, %v4099_v3  ;;  %v4108_v38 = vshrl.u32 %v11843_v17, %v4107_v36  ;;  %vm4127_vm11 = vcmp.lt.s32.totalorder %v4105_v59, 4 }
 0x2a5   :  { %v3998_v45 = vadd.s32 1, %v7569_v27  ;;  %v3952_v35 = vclz %v7566_v60  ;;  %vm4124_vm6 = vcmp.lt.s32.totalorder %v4105_v59, 1  ;;  %v4133_v0 = vsel %vm4127_vm11, %v4120_v34, 920167782 }
 0x2a6   :  { %v4137_v49 = vsel %vm4127_vm11, %v4123_v10, 1326507024  ;;  %v10011_v51 = vshrl.u32 %v3841_v61, 30  ;;  %vm4126_vm13 = vcmp.lt.s32.totalorder %v4105_v59, 3  ;;  %v4132_v13 = vsel %vm4124_vm6, %v4111_v41, %v4114_v57 }
 0x2a7   :  { %v4136_v37 = vsel %vm4124_vm6, %v4114_v57, %v4117_v11  ;;  %v4129_v55 = vsel %vm4127_vm11, %v4117_v11, 2102212464  ;;  %v4134_v63 = vsel %vm4126_vm13, %v4117_v11, %v4133_v0  ;;  %v4138_v46 = vsel %vm4126_vm13, %v4120_v34, %v4137_v49 }
 0x2a8   :  { %vm4125_vm10 = vcmp.lt.s32.totalorder %v4105_v59, 2  ;;  %v4140_v62 = vshll.u32 %v4100_v58, 8  ;;  %v4128_v53 = vsel %vm4124_vm6, %v4108_v38, %v4111_v41  ;;  %vm3999_vm4 = vcmp.gt.s32.totalorder %v3998_v45, 0 }
 0x2a9   :  { %v4135_v39 = vsel %vm4125_vm10, %v4132_v13, %v4134_v63  ;;  %v4139_v54 = vsel %vm4125_vm10, %v4136_v37, %v4138_v46  ;;  %v7567_v36 = vadd.s32 4294967294, %v3952_v35  ;;  %v3843_v1 = vshll.u32 %v10011_v51, 30  ;;  %v10035_v13 = vpop.f32.mrf.mxu1 }
 0x2aa   :  { %v4130_v3 = vsel %vm4126_vm13, %v4114_v57, %v4129_v55  ;;  %v4000_v2 = vsel %vm3999_vm4, %v3998_v45, 0  ;;  %v10014_v27 = vmul.u32.u64.low %v4140_v62, %v4139_v54  ;;  %v10015_v60 = vmul.u32.u64.high %v4140_v62, %v4139_v54, %v10014_v27  ;;  %11965 = vst [vmem:[#allocation32_spill] sm:$0xff] %v10035_v13 }
 0x2ab   :  { %v10017_v6 = vmul.u32.u64.low %v4140_v62, %v4135_v39  ;;  %v10018_v61 = vmul.u32.u64.high %v4140_v62, %v4135_v39, %v10017_v6  ;;  %v4002_v11 = vand.u32 31, %v4000_v2  ;;  %v4131_v34 = vsel %vm4125_vm10, %v4128_v53, %v4130_v3 }
 0x2ac   :  { %v11762_v59 = vand.u32 2147483647, %v9970_v52  ;;  %vm7568_vm14 = vcmp.lt.s32.totalorder %v7567_v36, 0  ;;  %v10022_v63 = vsub.s32 %v3840_v56, %v3843_v1  ;;  %v4147_v57 = vmul.u32 %v4140_v62, %v4131_v34 }
 0x2ad   :  { %vm4149_vm1 = vc.u32 %v10015_v60, %v10017_v6  ;;  %v4150_v35 = vadd.s32 1, %v10018_v61  ;;  %v4003_v41 = vsub.s32 32, %v4002_v11  ;;  %v10028_v58 = vsel %vm7568_vm14, 0, %v7567_v36 }
 0x2ae   :  { %v3995_v38 = vand.u32 8388607, %v11762_v59  ;;  %v3846_v45 = vsub.s32 0, %v10022_v63  ;;  %v4005_v56 = vshll.u32 %v11843_v17, %v4002_v11  ;;  %v4008_v49 = vshll.u32 %v11838_v19, %v4002_v11 }
 0x2af   :  { %v4151_v10 = vsel %vm4149_vm1, %v4150_v35, %v10018_v61  ;;  %v4006_v37 = vshrl.u32 %v11838_v19, %v4003_v41  ;;  %v4009_v55 = vshrl.u32 %v11840_v28, %v4003_v41  ;;  %v4011_v46 = vshll.u32 %v11840_v28, %v4002_v11 }
 0x2b0   :  { %v4152_v0 = vadd.s32 %v4151_v10, %v4147_v57  ;;  %v4012_v62 = vshrl.u32 %v11839_v50, %v4003_v41  ;;  %v4014_v39 = vshll.u32 %v11839_v50, %v4002_v11  ;;  %v4015_v54 = vshrl.u32 %v11841_v8, %v4003_v41 }
 0x2b1   :  { %v3996_v36 = vor.u32 8388608, %v3995_v38  ;;  %v4303_v1 = vand.u32 2139095040, %v10035_v13  ;;  %v3960_v3 = vsub.s32 4294967266, %v10028_v58  ;;  %v7562_v27 = vmin.u32 %v3846_v45, %v10022_v63 }
 0x2b2   :  { %v4153_v53 = vadd.s32 536870912, %v4152_v0  ;;  %v4001_v61 = vshrl.u32 %v4000_v2, 5  ;;  %v4017_v34 = vshll.u32 %v11841_v8, %v4002_v11  ;;  %v4007_v35 = vor.u32 %v4006_v37, %v4005_v56 }
 0x2b3   :  { %v4010_v57 = vor.u32 %v4009_v55, %v4008_v49  ;;  %v4013_v10 = vor.u32 %v4012_v62, %v4011_v46  ;;  %v4018_v59 = vshrl.u32 %v11842_v16, %v4003_v41  ;;  %v4016_v24 = vor.u32 %v4015_v54, %v4014_v39 }
 0x2b4   :  { %v10048_v40 = vshrl.u32 %v4153_v53, 30  ;;  %v4004_v44 = vshrl.u32 %v11843_v17, %v4003_v41  ;;  %v4036_v14 = vshll.u32 %v3996_v36, 8  ;;  %v3956_v42 = vsub.s32 32, %v10028_v58 }
 0x2b5   :  { %v4019_v38 = vor.u32 %v4018_v59, %v4017_v34  ;;  %vm4020_vm8 = vcmp.lt.s32.totalorder %v4001_v61, 1  ;;  %vm4023_vm12 = vcmp.lt.s32.totalorder %v4001_v61, 4  ;;  %v4304_v45 = vshrl.u32 %v4303_v1, 23 }
 0x2b6   :  { %v3961_v2 = vadd.s32 127, %v3960_v3  ;;  %v3848_v31 = vclz %v7562_v27  ;;  %v4025_v11 = vsel %vm4023_vm12, %v4013_v10, 2102212464  ;;  %v4028_v56 = vsel %vm4020_vm8, %v4007_v35, %v4010_v57 }
 0x2b7   :  { %v4155_v49 = vshll.u32 %v10048_v40, 30  ;;  %vm4022_vm0 = vcmp.lt.s32.totalorder %v4001_v61, 3  ;;  %v4029_v37 = vsel %vm4023_vm12, %v4016_v24, 920167782  ;;  %v4032_v55 = vsel %vm4020_vm8, %v4010_v57, %v4013_v10 }
 0x2b8   :  { %vm4021_vm3 = vcmp.lt.s32.totalorder %v4001_v61, 2  ;;  %v4024_v46 = vsel %vm4020_vm8, %v4004_v44, %v4007_v35  ;;  %v4030_v62 = vsel %vm4022_vm0, %v4013_v10, %v4029_v37  ;;  %v4033_v41 = vsel %vm4023_vm12, %v4019_v38, 1326507024 }
 0x2b9   :  { %v4026_v59 = vsel %vm4022_vm0, %v4010_v57, %v4025_v11  ;;  %v4031_v53 = vsel %vm4021_vm3, %v4028_v56, %v4030_v62  ;;  %v4034_v39 = vsel %vm4022_vm0, %v4016_v24, %v4033_v41  ;;  %v7581_v54 = vadd.s32 4294967169, %v4304_v45 }
 0x2ba   :  { %v4035_v36 = vsel %vm4021_vm3, %v4032_v55, %v4034_v39  ;;  %v10053_v34 = vmul.u32.u64.low %v4036_v14, %v4031_v53  ;;  %v10054_v1 = vmul.u32.u64.high %v4036_v14, %v4031_v53, %v10053_v34  ;;  %v3940_v3 = vadd.s32 %v9951_v32, %v9948_v26 }
 0x2bb   :  { %v7563_v27 = vadd.s32 4294967294, %v3848_v31  ;;  %v10059_v48 = vmul.u32.u64.low %v4036_v14, %v4035_v36  ;;  %v10060_v23 = vmul.u32.u64.high %v4036_v14, %v4035_v36, %v10059_v48  ;;  %v4027_v61 = vsel %vm4021_vm3, %v4024_v46, %v4026_v59 }
 0x2bc   :  { %v4310_v44 = vadd.s32 1, %v7581_v54  ;;  %v3958_v35 = vshrl.u32 %v3940_v3, %v3956_v42  ;;  %v3962_v10 = vshll.u32 %v3961_v2, 23  ;;  %v10062_v57 = vsub.s32 %v4152_v0, %v4155_v49 }
 0x2bd   :  { %v3957_v24 = vshll.u32 %v9990_v33, %v10028_v58  ;;  %v4046_v38 = vadd.s32 1, %v10054_v1  ;;  %v11764_v45 = vand.u32 2147483647, %v10035_v13  ;;  %vm7564_vm5 = vcmp.lt.s32.totalorder %v7563_v27, 0 }
 0x2be   :  { %vm4311_vm2 = vcmp.gt.s32.totalorder %v4310_v44, 0  ;;  %v4043_v26 = vmul.u32 %v4036_v14, %v4027_v61  ;;  %vm4045_vm7 = vc.u32 %v10060_v23, %v10053_v34  ;;  %v3963_v0 = vor.u32 4788187, %v3962_v10 }
 0x2bf   :  { %v4312_v48 = vsel %vm4311_vm2, %v4310_v44, 0  ;;  %v4047_v31 = vsel %vm4045_vm7, %v4046_v38, %v10054_v1  ;;  %v3959_v32 = vor.u32 %v3958_v35, %v3957_v24  ;;  %v4158_v2 = vsub.s32 0, %v10062_v57 }
 0x2c0   :  { %v4314_v42 = vand.u32 31, %v4312_v48  ;;  %v4048_v11 = vadd.s32 %v4047_v31, %v4043_v26  ;;  %v10072_v33 = vsel %vm7564_vm5, 0, %v7563_v27  ;;  %v4307_v58 = vand.u32 8388607, %v11764_v45  ;;  %v10095_v26 = vpop.f32.mrf.mxu1 }
 0x2c1   :  { %v10076_v56 = vshrl.u32 %v4312_v48, 5  ;;  %v3964_v39 = vand.u32 2147483647, %v3963_v0  ;;  %v7574_v54 = vmin.u32 %v4158_v2, %v10062_v57  ;;  %v3966_v3 = vcvt.s32.f32 %v3959_v32  ;;  %11966 = vst [vmem:[#allocation31_spill] sm:$0xff] %v10095_v26 }
 0x2c2   :  { %v4315_v14 = vsub.s32 32, %v4314_v42  ;;  %v4049_v49 = vadd.s32 536870912, %v4048_v11  ;;  %v4317_v37 = vshll.u32 %v11843_v17, %v4314_v42  ;;  %v4320_v55 = vshll.u32 %v11838_v19, %v4314_v42 }
 0x2c3   :  { %v4323_v46 = vshll.u32 %v11840_v28, %v4314_v42  ;;  %v4326_v53 = vshll.u32 %v11839_v50, %v4314_v42  ;;  %v3970_v27 = vsub.s32 4, %v9980_v18  ;;  %v3836_v61 = vadd.s32 %v9975_v7, %v9984_v20 }
 0x2c4   :  { %v4318_v62 = vshrl.u32 %v11838_v19, %v4315_v14  ;;  %v4321_v41 = vshrl.u32 %v11840_v28, %v4315_v14  ;;  %v4324_v59 = vshrl.u32 %v11839_v50, %v4315_v14  ;;  %v10086_v36 = vshrl.u32 %v4049_v49, 30 }
 0x2c5   :  { %v4327_v1 = vshrl.u32 %v11841_v8, %v4315_v14  ;;  %v4329_v44 = vshll.u32 %v11841_v8, %v4314_v42  ;;  %v3856_v35 = vsub.s32 4294967266, %v10072_v33  ;;  %v4330_v0 = vshrl.u32 %v11842_v16, %v4315_v14 }
 0x2c6   :  { %v4051_v10 = vshll.u32 %v10086_v36, 30  ;;  %v4319_v24 = vor.u32 %v4318_v62, %v4317_v37  ;;  %v4322_v38 = vor.u32 %v4321_v41, %v4320_v55  ;;  %v4325_v48 = vor.u32 %v4324_v59, %v4323_v46 }
 0x2c7   :  { %v4328_v31 = vor.u32 %v4327_v1, %v4326_v53  ;;  %vm4332_vm15 = vcmp.lt.s32.totalorder %v10076_v56, 1  ;;  %v3967_v32 = vmul.f32 %v3966_v3, %v3964_v39  ;;  %v4160_v2 = vclz %v7574_v54 }
 0x2c8   :  { %v10099_v49 = vsub.s32 %v4048_v11, %v4051_v10  ;;  %v4308_v7 = vor.u32 8388608, %v4307_v58  ;;  %vm3886_vm9 = vcmp.lt.s32.totalorder %v9872_v4, 0  ;;  %v4331_v20 = vor.u32 %v4330_v0, %v4329_v44 }
 0x2c9   :  { %vm4334_vm11 = vcmp.lt.s32.totalorder %v10076_v56, 3  ;;  %vm4335_vm6 = vcmp.lt.s32.totalorder %v10076_v56, 4  ;;  %v4199_v42 = vand.u32 2139095040, %v10095_v26  ;;  %v3852_v37 = vsub.s32 32, %v10072_v33 }
 0x2ca   :  { %v3857_v55 = vadd.s32 127, %v3856_v35  ;;  %vm4333_vm13 = vcmp.lt.s32.totalorder %v10076_v56, 2  ;;  %v4340_v46 = vsel %vm4332_vm15, %v4319_v24, %v4322_v38  ;;  %v4316_v11 = vshrl.u32 %v11843_v17, %v4315_v14 }
 0x2cb   :  { %v4341_v58 = vsel %vm4335_vm6, %v4328_v31, 920167782  ;;  %v4344_v62 = vsel %vm4332_vm15, %v4322_v38, %v4325_v48  ;;  %v4345_v41 = vsel %vm4335_vm6, %v4331_v20, 1326507024  ;;  %v7575_v59 = vadd.s32 4294967294, %v4160_v2 }
 0x2cc   :  { %v4054_v53 = vsub.s32 0, %v10099_v49  ;;  %v4342_v39 = vsel %vm4334_vm11, %v4325_v48, %v4341_v58  ;;  %v4348_v54 = vshll.u32 %v4308_v7, 8  ;;  %v4337_v1 = vsel %vm4335_vm6, %v4325_v48, 2102212464 }
 0x2cd   :  { %v4343_v3 = vsel %vm4333_vm13, %v4340_v46, %v4342_v39  ;;  %v4346_v44 = vsel %vm4334_vm11, %v4328_v31, %v4345_v41  ;;  %v4200_v14 = vshrl.u32 %v4199_v42, 23  ;;  %v3968_v35 = vxor.u32 2147483648, %v3967_v32 }
 0x2ce   :  { %v3854_v10 = vshrl.u32 %v3836_v61, %v3852_v37  ;;  %v3858_v0 = vshll.u32 %v3857_v55, 23  ;;  %v4347_v2 = vsel %vm4333_vm13, %v4344_v62, %v4346_v44  ;;  %v4336_v20 = vsel %vm4332_vm15, %v4316_v11, %v4319_v24  ;;  %v10168_v44 = vpop.f32.mrf.mxu1 }
 0x2cf   :  { %v10123_v45 = vmul.u32.u64.low %v4348_v54, %v4347_v2  ;;  %v10124_v58 = vmul.u32.u64.high %v4348_v54, %v4347_v2, %v10123_v45  ;;  %v7577_v48 = vadd.s32 4294967169, %v4200_v14  ;;  %v7570_v7 = vmin.u32 %v4054_v53, %v10099_v49  ;;  %11970 = vst [vmem:[#allocation20_spill] sm:$0xff] %v10168_v44 }
 0x2d0   :  { %v4338_v46 = vsel %vm4334_vm11, %v4322_v38, %v4337_v1  ;;  %v10129_v31 = vmul.u32.u64.low %v4348_v54, %v4343_v3  ;;  %v10130_v42 = vmul.u32.u64.high %v4348_v54, %v4343_v3, %v10129_v31  ;;  %v11967_v61 = vand.u32 2147483647, %v9872_v4 }
 0x2d1   :  { %v3853_v24 = vshll.u32 %v10022_v63, %v10072_v33  ;;  %vm7576_vm4 = vcmp.lt.s32.totalorder %v7575_v59, 0  ;;  %v4206_v45 = vadd.s32 1, %v7577_v48  ;;  %v3969_v55 = vsel %vm3886_vm9, %v3968_v35, %v3967_v32 }
 0x2d2   :  { %vm10135_vm10 = vcmp.le.f32.partialorder %v11967_v61, 0.7853982  ;;  %v3971_v38 = vsel %vm3886_vm9, %v3970_v27, %v9980_v18  ;;  %v3866_v11 = vsub.s32 4, %v10011_v51  ;;  %v11765_v62 = vand.u32 2147483647, %v10095_v26 }
 0x2d3   :  { %v3855_v41 = vor.u32 %v3854_v10, %v3853_v24  ;;  %v4339_v53 = vsel %vm4333_vm13, %v4336_v20, %v4338_v46  ;;  %vm4357_vm14 = vc.u32 %v10124_v58, %v10129_v31  ;;  %vm4207_vm1 = vcmp.gt.s32.totalorder %v4206_v45, 0 }
 0x2d4   :  { %v3859_v63 = vor.u32 4788187, %v3858_v0  ;;  %v10152_v33 = vsel %vm7576_vm4, 0, %v7575_v59  ;;  %v4056_v32 = vclz %v7570_v7  ;;  %v4358_v39 = vadd.s32 1, %v10130_v42 }
 0x2d5   :  { %v10157_v18 = vsel %vm10135_vm10, 0, %v3971_v38  ;;  %vm3782_vm8 = vcmp.lt.s32.totalorder %v9892_v43, 0  ;;  %v4208_v27 = vsel %vm4207_vm1, %v4206_v45, 0  ;;  %v4148_v1 = vadd.s32 %v10017_v6, %v10015_v60 }
 0x2d6   :  { %v10163_v56 = vsel %vm3782_vm8, %v3866_v11, %v10011_v51  ;;  %v4355_v59 = vmul.u32 %v4348_v54, %v4339_v53  ;;  %v4359_v3 = vsel %vm4357_vm14, %v4358_v39, %v10130_v42  ;;  %v10173_v14 = vsel %vm10135_vm10, %v9872_v4, %v3969_v55 }
 0x2d7   :  { %v4168_v35 = vsub.s32 4294967266, %v10152_v33  ;;  %v4203_v10 = vand.u32 8388607, %v11765_v62  ;;  %v4210_v51 = vand.u32 31, %v4208_v27  ;;  %v3860_v0 = vand.u32 2147483647, %v3859_v63 }
 0x2d8   :  { %v3862_v2 = vcvt.s32.f32 %v3855_v41  ;;  %v7571_v20 = vadd.s32 4294967294, %v4056_v32  ;;  %v4360_v60 = vadd.s32 %v4359_v3, %v4355_v59  ;;  %v4511_v7 = vand.u32 2139095040, %v10168_v44 }
 0x2d9   :  { %v4211_v6 = vsub.s32 32, %v4210_v51  ;;  %v4213_v54 = vshll.u32 %v11843_v17, %v4210_v51  ;;  %v4216_v48 = vshll.u32 %v11838_v19, %v4210_v51  ;;  %v4164_v46 = vsub.s32 32, %v10152_v33 }
 0x2da   :  { %v4209_v42 = vshrl.u32 %v4208_v27, 5  ;;  %v4219_v61 = vshll.u32 %v11840_v28, %v4210_v51  ;;  %v4222_v37 = vshll.u32 %v11839_v50, %v4210_v51  ;;  %v4169_v24 = vadd.s32 127, %v4168_v35 }
 0x2db   :  { %v4204_v45 = vor.u32 8388608, %v4203_v10  ;;  %v4214_v55 = vshrl.u32 %v11838_v19, %v4211_v6  ;;  %v4217_v38 = vshrl.u32 %v11840_v28, %v4211_v6  ;;  %v4361_v11 = vadd.s32 536870912, %v4360_v60 }
 0x2dc   :  { %v4220_v41 = vshrl.u32 %v11839_v50, %v4211_v6  ;;  %v4223_v53 = vshrl.u32 %v11841_v8, %v4211_v6  ;;  %v4225_v63 = vshll.u32 %v11841_v8, %v4210_v51  ;;  %vm7572_vm12 = vcmp.lt.s32.totalorder %v7571_v20, 0 }
 0x2dd   :  { %v4215_v32 = vor.u32 %v4214_v55, %v4213_v54  ;;  %v4218_v39 = vor.u32 %v4217_v38, %v4216_v48  ;;  %v4512_v27 = vshrl.u32 %v4511_v7, 23  ;;  %v4226_v35 = vshrl.u32 %v11842_v16, %v4211_v6 }
 0x2de   :  { %v4221_v59 = vor.u32 %v4220_v41, %v4219_v61  ;;  %v4224_v3 = vor.u32 %v4223_v53, %v4222_v37  ;;  %vm4228_vm0 = vcmp.lt.s32.totalorder %v4209_v42, 1  ;;  %v3863_v10 = vmul.f32 %v3862_v2, %v3860_v0 }
 0x2df   :  { %v4165_v62 = vshll.u32 %v10062_v57, %v10152_v33  ;;  %vm4230_vm3 = vcmp.lt.s32.totalorder %v4209_v42, 3  ;;  %vm4231_vm2 = vcmp.lt.s32.totalorder %v4209_v42, 4  ;;  %v4166_v22 = vshrl.u32 %v4148_v1, %v4164_v46 }
 0x2e0   :  { %v10192_v15 = vsel %vm7572_vm12, 0, %v7571_v20  ;;  %v10194_v47 = vshrl.u32 %v4361_v11, 30  ;;  %v4227_v51 = vor.u32 %v4226_v35, %v4225_v63  ;;  %v4170_v54 = vshll.u32 %v4169_v24, 23 }
 0x2e1   :  { %v4236_v48 = vsel %vm4228_vm0, %v4215_v32, %v4218_v39  ;;  %v4237_v7 = vsel %vm4231_vm2, %v4224_v3, 920167782  ;;  %v4244_v61 = vshll.u32 %v4204_v45, 8  ;;  %v4212_v37 = vshrl.u32 %v11843_v17, %v4211_v6 }
 0x2e2   :  { %vm4229_vm5 = vcmp.lt.s32.totalorder %v4209_v42, 2  ;;  %v4238_v0 = vsel %vm4230_vm3, %v4221_v59, %v4237_v7  ;;  %v7589_v57 = vadd.s32 4294967169, %v4512_v27  ;;  %v4064_v33 = vsub.s32 4294967266, %v10192_v15 }
 0x2e3   :  { %v4233_v1 = vsel %vm4231_vm2, %v4221_v59, 2102212464  ;;  %v4239_v2 = vsel %vm4229_vm5, %v4236_v48, %v4238_v0  ;;  %v4240_v20 = vsel %vm4228_vm0, %v4218_v39, %v4221_v59  ;;  %v4363_v46 = vshll.u32 %v10194_v47, 30 }
 0x2e4   :  { %v4241_v24 = vsel %vm4231_vm2, %v4227_v51, 1326507024  ;;  %v10206_v55 = vmul.u32.u64.low %v4244_v61, %v4239_v2  ;;  %v10207_v45 = vmul.u32.u64.high %v4244_v61, %v4239_v2, %v10206_v55  ;;  %v3864_v6 = vxor.u32 2147483648, %v3863_v10 }
 0x2e5   :  { %v4167_v38 = vor.u32 %v4166_v22, %v4165_v62  ;;  %v4171_v11 = vor.u32 4788187, %v4170_v54  ;;  %v4242_v41 = vsel %vm4230_vm3, %v4224_v3, %v4241_v24  ;;  %v4232_v53 = vsel %vm4228_vm0, %v4212_v37, %v4215_v32 }
 0x2e6   :  { %v4234_v63 = vsel %vm4230_vm3, %v4218_v39, %v4233_v1  ;;  %v4243_v27 = vsel %vm4229_vm5, %v4240_v20, %v4242_v41  ;;  %v4518_v59 = vadd.s32 1, %v7589_v57  ;;  %v4065_v35 = vadd.s32 127, %v4064_v33 }
 0x2e7   :  { %v10214_v48 = vmul.u32.u64.low %v4244_v61, %v4243_v27  ;;  %v10215_v7 = vmul.u32.u64.high %v4244_v61, %v4243_v27, %v10214_v48  ;;  %v11766_v51 = vand.u32 2147483647, %v10168_v44  ;;  %7980 = vcosq.f32 %v10173_v14 }
 0x2e8   :  { %v4178_v22 = vsub.s32 4, %v10048_v40  ;;  %v10220_v62 = vsub.s32 %v4360_v60, %v4363_v46  ;;  %vm4519_vm7 = vcmp.gt.s32.totalorder %v4518_v59, 0  ;;  %v3865_v32 = vsel %vm3782_vm8, %v3864_v6, %v3863_v10 }
 0x2e9   :  { %v4235_v39 = vsel %vm4229_vm5, %v4232_v53, %v4234_v63  ;;  %v4254_v3 = vadd.s32 1, %v10207_v45  ;;  %v4520_v54 = vsel %vm4519_vm7, %v4518_v59, 0  ;;  %v4172_v37 = vand.u32 2147483647, %v4171_v11 }
 0x2ea   :  { %v4174_v0 = vcvt.s32.f32 %v4167_v38  ;;  %v4044_v57 = vadd.s32 %v10053_v34, %v10060_v23  ;;  %v4522_v33 = vand.u32 31, %v4520_v54  ;;  %v4060_v1 = vsub.s32 32, %v10192_v15 }
 0x2eb   :  { %v4061_v60 = vshll.u32 %v10099_v49, %v10192_v15  ;;  %v4066_v2 = vshll.u32 %v4065_v35, 23  ;;  %v4515_v10 = vand.u32 8388607, %v11766_v51  ;;  %v4366_v42 = vsub.s32 0, %v10220_v62  ;;  %v10241_v15 = vpop.f32.mrf.mxu1 }
 0x2ec   :  { %v4251_v20 = vmul.u32 %v4244_v61, %v4235_v39  ;;  %vm4253_vm15 = vc.u32 %v10215_v7, %v10206_v55  ;;  %v4523_v46 = vsub.s32 32, %v4522_v33  ;;  %v10237_v23 = vshrl.u32 %v4520_v54, 5  ;;  %11971 = vst [vmem:[#allocation12_spill] sm:$0xff] %v10241_v15 }
 0x2ed   :  { %v4255_v24 = vsel %vm4253_vm15, %v4254_v3, %v10207_v45  ;;  %v4525_v34 = vshll.u32 %v11843_v17, %v4522_v33  ;;  %v4528_v6 = vshll.u32 %v11838_v19, %v4522_v33  ;;  %v11972_v49 = vand.u32 2147483647, %v9892_v43 }
 0x2ee   :  { %v10249_v61 = vadd.s32 %v4255_v24, %v4251_v20  ;;  %v4526_v11 = vshrl.u32 %v11838_v19, %v4523_v46  ;;  %v4529_v45 = vshrl.u32 %v11840_v28, %v4523_v46  ;;  %v4531_v41 = vshll.u32 %v11840_v28, %v4522_v33 }
 0x2ef   :  { %vm10245_vm9 = vcmp.le.f32.partialorder %v11972_v49, 0.7853982  ;;  %v4062_v53 = vshrl.u32 %v4044_v57, %v4060_v1  ;;  %v4516_v63 = vor.u32 8388608, %v4515_v10  ;;  %v4532_v27 = vshrl.u32 %v11839_v50, %v4523_v46 }
 0x2f0   :  { %v4534_v59 = vshll.u32 %v11839_v50, %v4522_v33  ;;  %v4067_v35 = vor.u32 4788187, %v4066_v2  ;;  %v7582_v48 = vmin.u32 %v4366_v42, %v10220_v62  ;;  %v4535_v39 = vshrl.u32 %v11841_v8, %v4523_v46 }
 0x2f1   :  { %v4407_v3 = vand.u32 2139095040, %v10241_v15  ;;  %v4257_v54 = vadd.s32 536870912, %v10249_v61  ;;  %v4527_v20 = vor.u32 %v4526_v11, %v4525_v34  ;;  %v4530_v24 = vor.u32 %v4529_v45, %v4528_v6 }
 0x2f2   :  { %v4537_v49 = vshll.u32 %v11841_v8, %v4522_v33  ;;  %v4533_v51 = vor.u32 %v4532_v27, %v4531_v41  ;;  %v4536_v57 = vor.u32 %v4535_v39, %v4534_v59  ;;  %v4538_v1 = vshrl.u32 %v11842_v16, %v4523_v46 }
 0x2f3   :  { %vm4540_vm11 = vcmp.lt.s32.totalorder %v10237_v23, 1  ;;  %v4175_v10 = vmul.f32 %v4174_v0, %v4172_v37  ;;  %v4063_v2 = vor.u32 %v4062_v53, %v4061_v60  ;;  %vm4542_vm6 = vcmp.lt.s32.totalorder %v10237_v23, 3 }
 0x2f4   :  { %vm4543_vm13 = vcmp.lt.s32.totalorder %v10237_v23, 4  ;;  %vm4094_vm10 = vcmp.lt.s32.totalorder %v9911_v29, 0  ;;  %v4368_v42 = vclz %v7582_v48  ;;  %v4524_v34 = vshrl.u32 %v11843_v17, %v4523_v46  ;;  %v10268_v33 = vpop.eup %7980 }
 0x2f5   :  { %v4539_v6 = vor.u32 %v4538_v1, %v4537_v49  ;;  %vm4541_vm4 = vcmp.lt.s32.totalorder %v10237_v23, 2  ;;  %v4068_v11 = vand.u32 2147483647, %v4067_v35  ;;  %v4548_v45 = vsel %vm4540_vm11, %v4527_v20, %v4530_v24 }
 0x2f6   :  { %v4549_v37 = vsel %vm4543_vm13, %v4536_v57, 920167782  ;;  %v4556_v0 = vshll.u32 %v4516_v63, 8  ;;  %v10274_v60 = vshrl.u32 %v4257_v54, 30  ;;  %v4545_v41 = vsel %vm4543_vm13, %v4533_v51, 2102212464 }
 0x2f7   :  { %v4550_v46 = vsel %vm4542_vm6, %v4533_v51, %v4549_v37  ;;  %v4408_v53 = vshrl.u32 %v4407_v3, 23  ;;  %v3868_v27 = vsel %vm10245_vm9, %v9892_v43, %v3865_v32  ;;  %v4176_v59 = vxor.u32 2147483648, %v4175_v10 }
 0x2f8   :  { %vm3990_vm14 = vcmp.lt.s32.totalorder %v9970_v52, 0  ;;  %v4070_v35 = vcvt.s32.f32 %v4063_v2  ;;  %v4551_v63 = vsel %vm4541_vm4, %v4548_v45, %v4550_v46  ;;  %v11975_v48 = vand.u32 2147483647, %v9911_v29 }
 0x2f9   :  { %v7583_v54 = vadd.s32 4294967294, %v4368_v42  ;;  %v4544_v3 = vsel %vm4540_vm11, %v4524_v34, %v4527_v20  ;;  %v4552_v32 = vsel %vm4540_vm11, %v4530_v24, %v4533_v51  ;;  %v4553_v49 = vsel %vm4543_vm13, %v4539_v6, 1326507024 }
 0x2fa   :  { %vm10288_vm1 = vcmp.le.f32.partialorder %v11975_v48, 0.7853982  ;;  %v4546_v1 = vsel %vm4542_vm6, %v4530_v24, %v4545_v41  ;;  %v4554_v2 = vsel %vm4542_vm6, %v4536_v57, %v4553_v49  ;;  %v4071_v42 = vmul.f32 %v4070_v35, %v4068_v11 }
 0x2fb   :  { %v10302_v45 = vmul.u32.u64.low %v4556_v0, %v4551_v63  ;;  %v10303_v37 = vmul.u32.u64.high %v4556_v0, %v4551_v63, %v10302_v45  ;;  %v4259_v46 = vshll.u32 %v10274_v60, 30  ;;  %v4555_v20 = vsel %vm4541_vm4, %v4552_v32, %v4554_v2 }
 0x2fc   :  { %v7585_v51 = vadd.s32 4294967169, %v4408_v53  ;;  %7982 = vsinq.f32 %v10173_v14  ;;  %v10313_v24 = vsel %vm10245_vm9, 0, %v10163_v56  ;;  %v4074_v6 = vsub.s32 4, %v10086_v36 }
 0x2fd   :  { %v10315_v34 = vmul.u32.u64.low %v4556_v0, %v4555_v20  ;;  %v10316_v57 = vmul.u32.u64.high %v4556_v0, %v4555_v20, %v10315_v34  ;;  %vm7584_vm8 = vcmp.lt.s32.totalorder %v7583_v54, 0  ;;  %v4547_v11 = vsel %vm4541_vm4, %v4544_v3, %v4546_v1 }
 0x2fe   :  { %v4414_v41 = vadd.s32 1, %v7585_v51  ;;  %7984 = vcosq.f32 %v3868_v27  ;;  %v4177_v53 = vsel %vm4094_vm10, %v4176_v59, %v4175_v10  ;;  %v10328_v56 = vsel %vm4094_vm10, %v4178_v22, %v10048_v40  ;;  %v10345_v59 = vpop.f32.mrf.mxu1 }
 0x2ff   :  { %v4566_v14 = vadd.s32 1, %v10303_v37  ;;  %v4072_v38 = vxor.u32 2147483648, %v4071_v42  ;;  %v10332_v35 = vsub.s32 %v10249_v61, %v4259_v46  ;;  %v11767_v23 = vand.u32 2147483647, %v10241_v15 }
 0x300   :  { %vm4415_vm12 = vcmp.gt.s32.totalorder %v4414_v41, 0  ;;  %v10335_v63 = vsel %vm7584_vm8, 0, %v7583_v54  ;;  %v4563_v48 = vmul.u32 %v4556_v0, %v4547_v11  ;;  %vm4565_vm0 = vc.u32 %v10316_v57, %v10302_v45 }
 0x301   :  { %v4416_v10 = vsel %vm4415_vm12, %v4414_v41, 0  ;;  %7986 = vsinq.f32 %v3868_v27  ;;  %v10342_v40 = vsel %vm3990_vm14, %v4074_v6, %v10086_v36  ;;  %v4567_v22 = vsel %vm4565_vm0, %v4566_v14, %v10303_v37 }
 0x302   :  { %v4418_v61 = vand.u32 31, %v4416_v10  ;;  %v10350_v54 = vsel %vm10288_vm1, %v9911_v29, %v4177_v53  ;;  %v4356_v0 = vadd.s32 %v10129_v31, %v10124_v58  ;;  %v4568_v3 = vadd.s32 %v4567_v22, %v4563_v48 }
 0x303   :  { %v10357_v36 = vsel %vm3990_vm14, %v4072_v38, %v4071_v42  ;;  %v4376_v32 = vsub.s32 4294967266, %v10335_v63  ;;  %v4262_v49 = vsub.s32 0, %v10332_v35  ;;  %v4411_v37 = vand.u32 8388607, %v11767_v23 }
 0x304   :  { %v4419_v1 = vsub.s32 32, %v4418_v61  ;;  %v4569_v2 = vadd.s32 536870912, %v4568_v3  ;;  %v10363_v46 = vshrl.u32 %v4416_v10, 5  ;;  %v4719_v58 = vand.u32 2139095040, %v10345_v59 }
 0x305   :  { %v4421_v31 = vshll.u32 %v11843_v17, %v4418_v61  ;;  %v4424_v42 = vshll.u32 %v11838_v19, %v4418_v61  ;;  %v4427_v51 = vshll.u32 %v11840_v28, %v4418_v61  ;;  %v4430_v41 = vshll.u32 %v11839_v50, %v4418_v61 }
 0x306   :  { %v4422_v20 = vshrl.u32 %v11838_v19, %v4419_v1  ;;  %v10370_v34 = vshrl.u32 %v4569_v2, 30  ;;  %v4425_v6 = vshrl.u32 %v11840_v28, %v4419_v1  ;;  %v4428_v11 = vshrl.u32 %v11839_v50, %v4419_v1 }
 0x307   :  { %v4372_v53 = vsub.s32 32, %v10335_v63  ;;  %v4377_v14 = vadd.s32 127, %v4376_v32  ;;  %v7578_v38 = vmin.u32 %v4262_v49, %v10332_v35  ;;  %v4431_v48 = vshrl.u32 %v11841_v8, %v4419_v1 }
 0x308   :  { %v4373_v10 = vshll.u32 %v10220_v62, %v10335_v63  ;;  %v4571_v22 = vshll.u32 %v10370_v34, 30  ;;  %v4412_v2 = vor.u32 8388608, %v4411_v37  ;;  %v4720_v23 = vshrl.u32 %v4719_v58, 23 }
 0x309   :  { %v10381_v27 = vpop.eup %7982  ;;  %v4423_v5 = vor.u32 %v4422_v20, %v4421_v31  ;;  %v4426_v21 = vor.u32 %v4425_v6, %v4424_v42  ;;  %v4432_v12 = vor.u32 %v4431_v48, %v4430_v41  ;;  %v4433_v25 = vshll.u32 %v11841_v8, %v4418_v61 }
 0x30a   :  { %v11978_v32 = vand.u32 2147483647, %v9970_v52  ;;  %v10390_v30 = vsub.s32 %v4568_v3, %v4571_v22  ;;  %v4429_v62 = vor.u32 %v4428_v11, %v4427_v51  ;;  %v4434_v63 = vshrl.u32 %v11842_v16, %v4419_v1 }
 0x30b   :  { %vm4436_vm2 = vcmp.lt.s32.totalorder %v10363_v46, 1  ;;  %v10394_v37 = vpop.eup %7984  ;;  %v4374_v58 = vshrl.u32 %v4356_v0, %v4372_v53  ;;  %v4378_v31 = vshll.u32 %v4377_v14, 23  ;;  %v4264_v20 = vclz %v7578_v38 }
 0x30c   :  { %vm10386_vm3 = vcmp.le.f32.partialorder %v11978_v32, 0.7853982  ;;  %vm4438_vm5 = vcmp.lt.s32.totalorder %v10363_v46, 3  ;;  %vm4302_vm7 = vcmp.lt.s32.totalorder %v10035_v13, 0  ;;  %v4435_v61 = vor.u32 %v4434_v63, %v4433_v25 }
 0x30d   :  { %vm4437_vm15 = vcmp.lt.s32.totalorder %v10363_v46, 2  ;;  %vm4439_vm9 = vcmp.lt.s32.totalorder %v10363_v46, 4  ;;  %v4452_v3 = vshll.u32 %v4412_v2, 8  ;;  %v4420_v42 = vshrl.u32 %v11843_v17, %v4419_v1 }
 0x30e   :  { %v4444_v51 = vsel %vm4436_vm2, %v4423_v5, %v4426_v21  ;;  %v4445_v6 = vsel %vm4439_vm9, %v4432_v12, 920167782  ;;  %v7597_v11 = vadd.s32 4294967169, %v4720_v23  ;;  %v10403_v0 = vpop.eup %7986  ;;  %v4574_v41 = vsub.s32 0, %v10390_v30 }
 0x30f   :  { %v4441_v53 = vsel %vm4439_vm9, %v4429_v62, 2102212464  ;;  %v4446_v25 = vsel %vm4438_vm5, %v4429_v62, %v4445_v6  ;;  %v4448_v14 = vsel %vm4436_vm2, %v4426_v21, %v4429_v62  ;;  %v4375_v38 = vor.u32 %v4374_v58, %v4373_v10 }
 0x310   :  { %v4447_v1 = vsel %vm4437_vm15, %v4444_v51, %v4446_v25  ;;  %v4449_v48 = vsel %vm4439_vm9, %v4435_v61, 1326507024  ;;  %v11768_v22 = vand.u32 2147483647, %v10345_v59  ;;  %v7579_v2 = vadd.s32 4294967294, %v4264_v20 }
 0x311   :  { %v4450_v23 = vsel %vm4438_vm5, %v4432_v12, %v4449_v48  ;;  %v10415_v32 = vmul.u32.u64.low %v4452_v3, %v4447_v1  ;;  %v10416_v63 = vmul.u32.u64.high %v4452_v3, %v4447_v1, %v10415_v32  ;;  %v4440_v6 = vsel %vm4436_vm2, %v4420_v42, %v4423_v5 }
 0x312   :  { %v4442_v10 = vsel %vm4438_vm5, %v4426_v21, %v4441_v53  ;;  %v4451_v62 = vsel %vm4437_vm15, %v4448_v14, %v4450_v23  ;;  %v4726_v58 = vadd.s32 1, %v7597_v11  ;;  %v4379_v61 = vor.u32 4788187, %v4378_v31 }
 0x313   :  { %v7590_v20 = vmin.u32 %v4574_v41, %v10390_v30  ;;  %v10426_v51 = vmul.u32.u64.low %v4452_v3, %v4451_v62  ;;  %v10427_v25 = vmul.u32.u64.high %v4452_v3, %v4451_v62, %v10426_v51  ;;  %v10432_v12 = vsel %vm10288_vm1, 0, %v10328_v56 }
 0x314   :  { %11981 = vst [vmem:[#allocation27_spill] sm:$0xff] %v10432_v12  ;;  %7988 = vcosq.f32 %v10350_v54  ;;  %v10438_v21 = vsel %vm10386_vm3, 0, %v10342_v40  ;;  %vm4727_vm11 = vcmp.gt.s32.totalorder %v4726_v58, 0  ;;  %vm7580_vm6 = vcmp.lt.s32.totalorder %v7579_v2, 0 }
 0x315   :  { %11982 = vst [vmem:[#allocation34_spill] sm:$0xff] %v10438_v21  ;;  %v4443_v5 = vsel %vm4437_vm15, %v4440_v6, %v4442_v10  ;;  %v4462_v31 = vadd.s32 1, %v10416_v63  ;;  %v4728_v42 = vsel %vm4727_vm11, %v4726_v58, 0  ;;  %v10447_v39 = vsel %vm10386_vm3, %v9970_v52, %v10357_v36 }
 0x316   :  { %v11983_v56 = vsub.s32 4, %v10194_v47  ;;  %v10458_v46 = vadd.s32 %v10206_v55, %v10215_v7  ;;  %v4730_v11 = vand.u32 31, %v4728_v42  ;;  %v4380_v41 = vand.u32 2147483647, %v4379_v61 }
 0x317   :  { %v4382_v53 = vcvt.s32.f32 %v4375_v38  ;;  %v4576_v14 = vclz %v7590_v20  ;;  %v4723_v49 = vand.u32 8388607, %v11768_v22  ;;  %v10462_v36 = vsel %vm7580_vm6, 0, %v7579_v2 }
 0x318   :  { %v10454_v40 = vsel %vm4302_vm7, %v11983_v56, %v10194_v47  ;;  %v4459_v1 = vmul.u32 %v4452_v3, %v4443_v5  ;;  %vm4461_vm13 = vc.u32 %v10427_v25, %v10415_v32  ;;  %v4731_v48 = vsub.s32 32, %v4730_v11 }
 0x319   :  { %v4463_v47 = vsel %vm4461_vm13, %v4462_v31, %v10416_v63  ;;  %v4733_v23 = vshll.u32 %v11843_v17, %v4730_v11  ;;  %v4736_v55 = vshll.u32 %v11838_v19, %v4730_v11  ;;  %v4739_v7 = vshll.u32 %v11840_v28, %v4730_v11 }
 0x31a   :  { %v4464_v38 = vadd.s32 %v4463_v47, %v4459_v1  ;;  %v4729_v6 = vshrl.u32 %v4728_v42, 5  ;;  %v4734_v10 = vshrl.u32 %v11838_v19, %v4731_v48  ;;  %v4737_v2 = vshrl.u32 %v11840_v28, %v4731_v48 }
 0x31b   :  { %v4272_v3 = vsub.s32 4294967266, %v10462_v36  ;;  %v7591_v62 = vadd.s32 4294967294, %v4576_v14  ;;  %v4740_v58 = vshrl.u32 %v11839_v50, %v4731_v48  ;;  %v4742_v61 = vshll.u32 %v11839_v50, %v4730_v11 }
 0x31c   :  { %v4383_v63 = vmul.f32 %v4382_v53, %v4380_v41  ;;  %v4465_v20 = vadd.s32 536870912, %v4464_v38  ;;  %v4724_v51 = vor.u32 8388608, %v4723_v49  ;;  %v4743_v5 = vshrl.u32 %v11841_v8, %v4731_v48  ;;  %v10480_v41 = vpop.f32.mrf.mxu1 }
 0x31d   :  { %v4735_v31 = vor.u32 %v4734_v10, %v4733_v23  ;;  %v4738_v56 = vor.u32 %v4737_v2, %v4736_v55  ;;  %v4741_v1 = vor.u32 %v4740_v58, %v4739_v7  ;;  %v4745_v42 = vshll.u32 %v11841_v8, %v4730_v11  ;;  %11984 = vst [vmem:[#allocation33_spill] sm:$0xff] %v10480_v41 }
 0x31e   :  { %v10477_v47 = vshrl.u32 %v4465_v20, 30  ;;  %v4744_v22 = vor.u32 %v4743_v5, %v4742_v61  ;;  %v4746_v9 = vshrl.u32 %v11842_v16, %v4731_v48  ;;  %vm4748_vm10 = vcmp.lt.s32.totalorder %v4729_v6, 1 }
 0x31f   :  { %v4273_v14 = vadd.s32 127, %v4272_v3  ;;  %vm7592_vm4 = vcmp.lt.s32.totalorder %v7591_v62, 0  ;;  %vm4750_vm14 = vcmp.lt.s32.totalorder %v4729_v6, 3  ;;  %vm4751_vm1 = vcmp.lt.s32.totalorder %v4729_v6, 4 }
 0x320   :  { %v11985_v53 = vand.u32 2147483647, %v10035_v13  ;;  %v4467_v11 = vshll.u32 %v10477_v47, 30  ;;  %v4732_v23 = vshrl.u32 %v11843_v17, %v4731_v48  ;;  %v4747_v55 = vor.u32 %v4746_v9, %v4745_v42 }
 0x321   :  { %vm4749_vm12 = vcmp.lt.s32.totalorder %v4729_v6, 2  ;;  %v10490_v7 = vpop.eup %7988  ;;  %v4268_v10 = vsub.s32 32, %v10462_v36  ;;  %v4756_v2 = vsel %vm4748_vm10, %v4735_v31, %v4738_v56  ;;  %v4757_v3 = vsel %vm4751_vm1, %v4744_v22, 920167782 }
 0x322   :  { %vm10484_vm8 = vcmp.le.f32.partialorder %v11985_v53, 0.7853982  ;;  %11988 = vst [vmem:[#allocation23_spill] sm:$0xff] %v10490_v7  ;;  %v4764_v58 = vshll.u32 %v4724_v51, 8  ;;  %v10495_v61 = vsub.s32 %v4464_v38, %v4467_v11  ;;  %v4753_v20 = vsel %vm4751_vm1, %v4741_v1, 2102212464 }
 0x323   :  { %v4758_v5 = vsel %vm4750_vm14, %v4741_v1, %v4757_v3  ;;  %v4615_v53 = vand.u32 2139095040, %v10480_v41  ;;  %v4384_v48 = vxor.u32 2147483648, %v4383_v63  ;;  %v4274_v9 = vshll.u32 %v4273_v14, 23 }
 0x324   :  { %v10501_v42 = vsel %vm7592_vm4, 0, %v7591_v62  ;;  %v4759_v52 = vsel %vm4749_vm12, %v4756_v2, %v4758_v5  ;;  %v4470_v29 = vsub.s32 0, %v10495_v61  ;;  %v4752_v21 = vsel %vm4748_vm10, %v4732_v23, %v4735_v31 }
 0x325   :  { %v4760_v38 = vsel %vm4748_vm10, %v4738_v56, %v4741_v1  ;;  %v4761_v51 = vsel %vm4751_vm1, %v4747_v55, 1326507024  ;;  %vm4198_vm0 = vcmp.lt.s32.totalorder %v10095_v26, 0  ;;  %v4754_v11 = vsel %vm4750_vm14, %v4738_v56, %v4753_v20  ;;  %v10534_v20 = vpop.f32.mrf.mxu1 }
 0x326   :  { %v4762_v3 = vsel %vm4750_vm14, %v4744_v22, %v4761_v51  ;;  %v10511_v14 = vmul.u32.u64.low %v4764_v58, %v4759_v52  ;;  %v10512_v7 = vmul.u32.u64.high %v4764_v58, %v4759_v52, %v10511_v14  ;;  %v4270_v62 = vshrl.u32 %v10458_v46, %v4268_v10  ;;  %11990 = vst [vmem:[#allocation30_spill] sm:$0xff] %v10534_v20 }
 0x327   :  { %v7586_v2 = vmin.u32 %v4470_v29, %v10495_v61  ;;  %v4763_v31 = vsel %vm4749_vm12, %v4760_v38, %v4762_v3  ;;  %v4616_v23 = vshrl.u32 %v4615_v53, 23  ;;  %v4275_v1 = vor.u32 4788187, %v4274_v9 }
 0x328   :  { %v4584_v55 = vsub.s32 4294967266, %v10501_v42  ;;  %v10519_v5 = vmul.u32.u64.low %v4764_v58, %v4763_v31  ;;  %v10520_v12 = vmul.u32.u64.high %v4764_v58, %v4763_v31, %v10519_v5  ;;  %7990 = vsinq.f32 %v10350_v54 }
 0x329   :  { %v4269_v52 = vshll.u32 %v10332_v35, %v10462_v36  ;;  %v4755_v22 = vsel %vm4749_vm12, %v4752_v21, %v4754_v11  ;;  %v7593_v56 = vadd.s32 4294967169, %v4616_v23  ;;  %7992 = vcosq.f32 %v10447_v39 }
 0x32a   :  { %v10530_v29 = vsel %vm10484_vm8, 0, %v10454_v40  ;;  %v4282_v46 = vsub.s32 4, %v10274_v60  ;;  %v4774_v10 = vadd.s32 1, %v10512_v7  ;;  %v4385_v54 = vsel %vm4302_vm7, %v4384_v48, %v4383_v63 }
 0x32b   :  { %11989 = vst [vmem:[#allocation15_spill] sm:$0xff] %v10530_v29  ;;  %v4271_v35 = vor.u32 %v4270_v62, %v4269_v52  ;;  %v4472_v36 = vclz %v7586_v2  ;;  %v4622_v21 = vadd.s32 1, %v7593_v56  ;;  %v4276_v6 = vand.u32 2147483647, %v4275_v1 }
 0x32c   :  { %v4585_v53 = vadd.s32 127, %v4584_v55  ;;  %v4771_v9 = vmul.u32 %v4764_v58, %v4755_v22  ;;  %vm4773_vm3 = vc.u32 %v10520_v12, %v10511_v14  ;;  %v4580_v40 = vsub.s32 32, %v10501_v42 }
 0x32d   :  { %v4775_v38 = vsel %vm4773_vm3, %v4774_v10, %v10512_v7  ;;  %vm4623_vm2 = vcmp.gt.s32.totalorder %v4622_v21, 0  ;;  %v4927_v51 = vand.u32 2139095040, %v10534_v20  ;;  %7994 = vsinq.f32 %v10447_v39 }
 0x32e   :  { %v4776_v11 = vadd.s32 %v4775_v38, %v4771_v9  ;;  %v11776_v63 = vand.u32 2147483647, %v10480_v41  ;;  %v4624_v48 = vsel %vm4623_vm2, %v4622_v21, 0  ;;  %v4278_v3 = vcvt.s32.f32 %v4271_v35 }
 0x32f   :  { %v10548_v58 = vsel %vm4198_vm0, %v4282_v46, %v10274_v60  ;;  %v4564_v62 = vadd.s32 %v10302_v45, %v10316_v57  ;;  %v7587_v2 = vadd.s32 4294967294, %v4472_v36  ;;  %v10555_v7 = vsel %vm10484_vm8, %v10035_v13, %v4385_v54 }
 0x330   :  { %v4586_v39 = vshll.u32 %v4585_v53, 23  ;;  %v4777_v31 = vadd.s32 536870912, %v4776_v11  ;;  %v4626_v23 = vand.u32 31, %v4624_v48  ;;  %v10557_v1 = vmul.f32 %v4278_v3, %v4276_v6 }
 0x331   :  { %v4581_v55 = vshll.u32 %v10390_v30, %v10501_v42  ;;  %v4582_v5 = vshrl.u32 %v4564_v62, %v4580_v40  ;;  %v4928_v60 = vshrl.u32 %v4927_v51, 23  ;;  %v4619_v45 = vand.u32 8388607, %v11776_v63 }
 0x332   :  { %v10561_v52 = vshrl.u32 %v4777_v31, 30  ;;  %v4627_v57 = vsub.s32 32, %v4626_v23  ;;  %v4629_v49 = vshll.u32 %v11843_v17, %v4626_v23  ;;  %vm7588_vm5 = vcmp.lt.s32.totalorder %v7587_v2, 0 }
 0x333   :  { %v10566_v22 = vshrl.u32 %v4624_v48, 5  ;;  %v4632_v56 = vshll.u32 %v11838_v19, %v4626_v23  ;;  %v4635_v46 = vshll.u32 %v11840_v28, %v4626_v23  ;;  %v4587_v10 = vor.u32 4788187, %v4586_v39 }
 0x334   :  { %v4779_v30 = vshll.u32 %v10561_v52, 30  ;;  %v4630_v42 = vshrl.u32 %v11838_v19, %v4627_v57  ;;  %v4638_v54 = vshll.u32 %v11839_v50, %v4626_v23  ;;  %v4633_v35 = vshrl.u32 %v11840_v28, %v4627_v57 }
 0x335   :  { %v4636_v36 = vshrl.u32 %v11839_v50, %v4627_v57  ;;  %v7605_v6 = vadd.s32 4294967169, %v4928_v60  ;;  %v10576_v53 = vpop.eup %7990  ;;  %v10578_v9 = vsel %vm7588_vm5, 0, %v7587_v2  ;;  %v4639_v51 = vshrl.u32 %v11841_v8, %v4627_v57 }
 0x336   :  { %11991 = vst [vmem:[#allocation28_spill] sm:$0xff] %v10576_v53  ;;  %v10580_v40 = vsub.s32 %v4776_v11, %v4779_v30  ;;  %v4631_v38 = vor.u32 %v4630_v42, %v4629_v49  ;;  %v10583_v48 = vpop.eup %7992  ;;  %v4620_v3 = vor.u32 8388608, %v4619_v45  ;;  %v4634_v62 = vor.u32 %v4633_v35, %v4632_v56 }
 0x337   :  { %11992 = vst [vmem:[#allocation19_spill] sm:$0xff] %v10583_v48  ;;  %v4637_v39 = vor.u32 %v4636_v36, %v4635_v46  ;;  %vm4644_vm7 = vcmp.lt.s32.totalorder %v10566_v22, 1  ;;  %v4640_v63 = vor.u32 %v4639_v51, %v4638_v54  ;;  %v4641_v60 = vshll.u32 %v11841_v8, %v4626_v23 }
 0x338   :  { %v4782_v31 = vsub.s32 0, %v10580_v40  ;;  %v4642_v2 = vshrl.u32 %v11842_v16, %v4627_v57  ;;  %v4480_v11 = vsub.s32 4294967266, %v10578_v9  ;;  %vm4646_vm15 = vcmp.lt.s32.totalorder %v10566_v22, 3 }
 0x339   :  { %vm4647_vm9 = vcmp.lt.s32.totalorder %v10566_v22, 4  ;;  %v4934_v49 = vadd.s32 1, %v7605_v6  ;;  %v4628_v45 = vshrl.u32 %v11843_v17, %v4627_v57  ;;  %vm4645_vm11 = vcmp.lt.s32.totalorder %v10566_v22, 2 }
 0x33a   :  { %v4643_v56 = vor.u32 %v4642_v2, %v4641_v60  ;;  %v4652_v46 = vsel %vm4644_vm7, %v4631_v38, %v4634_v62  ;;  %v10596_v30 = vpop.eup %7994  ;;  %v4583_v23 = vor.u32 %v4582_v5, %v4581_v55  ;;  %v4653_v42 = vsel %vm4647_vm9, %v4640_v63, 920167782 }
 0x33b   :  { %11993 = vst [vmem:[#allocation36_spill] sm:$0xff] %v10596_v30  ;;  %v4656_v54 = vsel %vm4644_vm7, %v4634_v62, %v4637_v39  ;;  %v4660_v35 = vshll.u32 %v4620_v3, 8  ;;  %v7598_v36 = vmin.u32 %v4782_v31, %v10580_v40  ;;  %v4649_v51 = vsel %vm4647_vm9, %v4637_v39, 2102212464 }
 0x33c   :  { %v4654_v57 = vsel %vm4646_vm15, %v4637_v39, %v4653_v42  ;;  %v4657_v6 = vsel %vm4647_vm9, %v4643_v56, 1326507024  ;;  %v4588_v60 = vand.u32 2147483647, %v4587_v10  ;;  %v11994_v55 = vand.u32 2147483647, %v10534_v20 }
 0x33d   :  { %v4655_v2 = vsel %vm4645_vm11, %v4652_v46, %v4654_v57  ;;  %v4658_v21 = vsel %vm4646_vm15, %v4640_v63, %v4657_v6  ;;  %v4481_v13 = vadd.s32 127, %v4480_v11  ;;  %v4648_v3 = vsel %vm4644_vm7, %v4628_v45, %v4631_v38 }
 0x33e   :  { %v10609_v5 = vand.u32 8388607, %v11994_v55  ;;  %v4659_v31 = vsel %vm4645_vm11, %v4656_v54, %v4658_v21  ;;  %vm4935_vm6 = vcmp.gt.s32.totalorder %v4934_v49, 0  ;;  %v4650_v10 = vsel %vm4646_vm15, %v4634_v62, %v4649_v51 }
 0x33f   :  { %v10617_v39 = vmul.u32.u64.low %v4660_v35, %v4659_v31  ;;  %v10618_v56 = vmul.u32.u64.high %v4660_v35, %v4659_v31, %v10617_v39  ;;  %v4936_v46 = vsel %vm4935_vm6, %v4934_v49, 0  ;;  %v4590_v63 = vcvt.s32.f32 %v4583_v23 }
 0x340   :  { %v4784_v42 = vclz %v7598_v36  ;;  %v10620_v57 = vmul.u32.u64.low %v4660_v35, %v4655_v2  ;;  %v10621_v6 = vmul.u32.u64.high %v4660_v35, %v4655_v2, %v10620_v57  ;;  %7996 = vcosq.f32 %v10555_v7 }
 0x341   :  { %v4280_v38 = vxor.u32 2147483648, %v10557_v1  ;;  %v4594_v21 = vsub.s32 4, %v10370_v34  ;;  %v4938_v11 = vand.u32 31, %v4936_v46  ;;  %v10627_v45 = vmul.f32 %v4590_v63, %v4588_v60 }
 0x342   :  { %v4460_v62 = vadd.s32 %v10415_v32, %v10427_v25  ;;  %v4476_v49 = vsub.s32 32, %v10578_v9  ;;  %v4651_v23 = vsel %vm4645_vm11, %v4648_v3, %v4650_v10  ;;  %v4482_v54 = vshll.u32 %v4481_v13, 23 }
 0x343   :  { %vm4669_vm13 = vc.u32 %v10618_v56, %v10620_v57  ;;  %v4932_v36 = vor.u32 8388608, %v10609_v5  ;;  %v4939_v51 = vsub.s32 32, %v4938_v11  ;;  %v7599_v2 = vadd.s32 4294967294, %v4784_v42 }
 0x344   :  { %v4670_v55 = vadd.s32 1, %v10621_v6  ;;  %v4941_v60 = vshll.u32 %v11843_v17, %v4938_v11  ;;  %v4944_v31 = vshll.u32 %v11838_v19, %v4938_v11  ;;  %vm4510_vm10 = vcmp.lt.s32.totalorder %v10168_v44, 0 }
 0x345   :  { %v4667_v32 = vmul.u32 %v4660_v35, %v4651_v23  ;;  %v4942_v25 = vshrl.u32 %v11838_v19, %v4939_v51  ;;  %v4945_v13 = vshrl.u32 %v11840_v28, %v4939_v51  ;;  %v4947_v22 = vshll.u32 %v11840_v28, %v4938_v11 }
 0x346   :  { %v4478_v3 = vshrl.u32 %v4460_v62, %v4476_v49  ;;  %v4671_v5 = vsel %vm4669_vm13, %v4670_v55, %v10621_v6  ;;  %v4937_v10 = vshrl.u32 %v4936_v46, 5  ;;  %v4948_v39 = vshrl.u32 %v11839_v50, %v4939_v51 }
 0x347   :  { %v4477_v63 = vshll.u32 %v10495_v61, %v10578_v9  ;;  %v4483_v42 = vor.u32 4788187, %v4482_v54  ;;  %v4672_v29 = vadd.s32 %v4671_v5, %v4667_v32  ;;  %v4950_v48 = vshll.u32 %v11839_v50, %v4938_v11 }
 0x348   :  { %vm7600_vm4 = vcmp.lt.s32.totalorder %v7599_v2, 0  ;;  %v4943_v35 = vor.u32 %v4942_v25, %v4941_v60  ;;  %v4946_v23 = vor.u32 %v4945_v13, %v4944_v31  ;;  %v4951_v30 = vshrl.u32 %v11841_v8, %v4939_v51 }
 0x349   :  { %v11995_v53 = vand.u32 2147483647, %v10095_v26  ;;  %v4673_v46 = vadd.s32 536870912, %v4672_v29  ;;  %v4949_v6 = vor.u32 %v4948_v39, %v4947_v22  ;;  %v4953_v49 = vshll.u32 %v11841_v8, %v4938_v11 }
 0x34a   :  { %v4954_v61 = vshrl.u32 %v11842_v16, %v4939_v51  ;;  %v4479_v9 = vor.u32 %v4478_v3, %v4477_v63  ;;  %v4952_v54 = vor.u32 %v4951_v30, %v4950_v48  ;;  %vm4956_vm1 = vcmp.lt.s32.totalorder %v4937_v10, 1 }
 0x34b   :  { %vm10652_vm14 = vcmp.le.f32.partialorder %v11995_v53, 0.7853982  ;;  %vm4958_vm8 = vcmp.lt.s32.totalorder %v4937_v10, 3  ;;  %v10658_v55 = vshrl.u32 %v4673_v46, 30  ;;  %v4940_v60 = vshrl.u32 %v11843_v17, %v4939_v51 }
 0x34c   :  { %v4955_v31 = vor.u32 %v4954_v61, %v4953_v49  ;;  %vm4959_vm12 = vcmp.lt.s32.totalorder %v4937_v10, 4  ;;  %v4484_v53 = vand.u32 2147483647, %v4483_v42  ;;  %v4787_v32 = vsel %vm7600_vm4, 0, %v7599_v2  ;;  %v10682_v42 = vpop.f32.mrf.mxu1 }
 0x34d   :  { %vm4957_vm3 = vcmp.lt.s32.totalorder %v4937_v10, 2  ;;  %v4965_v25 = vsel %vm4959_vm12, %v4952_v54, 920167782  ;;  %v4675_v11 = vshll.u32 %v10658_v55, 30  ;;  %v4961_v13 = vsel %vm4959_vm12, %v4949_v6, 2102212464  ;;  %v10667_v22 = vpop.eup %7996 }
 0x34e   :  { %v4964_v48 = vsel %vm4956_vm1, %v4943_v35, %v4946_v23  ;;  %v4966_v30 = vsel %vm4958_vm8, %v4949_v6, %v4965_v25  ;;  %v4281_v51 = vsel %vm4198_vm0, %v4280_v38, %v10557_v1  ;;  %v11998_v3 = vand.u32 2147483647, %v10168_v44 }
 0x34f   :  { %v4595_v5 = vsel %vm4510_vm10, %v4594_v21, %v10370_v34  ;;  %v4968_v39 = vsel %vm4956_vm1, %v4946_v23, %v4949_v6  ;;  %v4972_v63 = vshll.u32 %v4932_v36, 8  ;;  %vm4406_vm5 = vcmp.lt.s32.totalorder %v10241_v15, 0 }
 0x350   :  { %vm10674_vm2 = vcmp.le.f32.partialorder %v11998_v3, 0.7853982  ;;  %v4486_v46 = vcvt.s32.f32 %v4479_v9  ;;  %v4792_v49 = vsub.s32 4294967266, %v4787_v32  ;;  %v4960_v1 = vsel %vm4956_vm1, %v4940_v60, %v4943_v35 }
 0x351   :  { %v4969_v38 = vsel %vm4959_vm12, %v4955_v31, 1326507024  ;;  %v10687_v61 = vsub.s32 %v4672_v29, %v4675_v11  ;;  %v4962_v25 = vsel %vm4958_vm8, %v4946_v23, %v4961_v13  ;;  %v4967_v3 = vsel %vm4957_vm3, %v4964_v48, %v4966_v30 }
 0x352   :  { %v4970_v34 = vsel %vm4958_vm8, %v4952_v54, %v4969_v38  ;;  %v4592_v21 = vxor.u32 2147483648, %v10627_v45  ;;  %v4487_v36 = vmul.f32 %v4486_v46, %v4484_v53  ;;  %v4823_v9 = vand.u32 2139095040, %v10682_v42 }
 0x353   :  { %v4971_v6 = vsel %vm4957_vm3, %v4968_v39, %v4970_v34  ;;  %v4284_v35 = vsel %vm10652_vm14, %v10095_v26, %v4281_v51  ;;  %v12001_v29 = vand.u32 2147483647, %v10241_v15  ;;  %v4788_v23 = vsub.s32 32, %v4787_v32 }
 0x354   :  { %v10704_v31 = vmul.u32.u64.low %v4972_v63, %v4971_v6  ;;  %v10705_v54 = vmul.u32.u64.high %v4972_v63, %v4971_v6, %v10704_v31  ;;  %v4793_v11 = vadd.s32 127, %v4792_v49  ;;  %v4963_v53 = vsel %vm4957_vm3, %v4960_v1, %v4962_v25 }
 0x355   :  { %vm10700_vm0 = vcmp.le.f32.partialorder %v12001_v29, 0.7853982  ;;  %v10708_v13 = vmul.u32.u64.low %v4972_v63, %v4967_v3  ;;  %v10709_v48 = vmul.u32.u64.high %v4972_v63, %v4967_v3, %v10708_v13  ;;  %v4490_v30 = vsub.s32 4, %v10477_v47 }
 0x356   :  { %vm4718_vm7 = vcmp.lt.s32.totalorder %v10345_v59, 0  ;;  %v4772_v51 = vadd.s32 %v10511_v14, %v10520_v12  ;;  %v4678_v39 = vsub.s32 0, %v10687_v61  ;;  %v4824_v46 = vshrl.u32 %v4823_v9, 23 }
 0x357   :  { %7998 = vsinq.f32 %v10555_v7  ;;  %v10721_v10 = vsel %vm10652_vm14, 0, %v10548_v58  ;;  %v4593_v49 = vsel %vm4510_vm10, %v4592_v21, %v10627_v45  ;;  %v4488_v1 = vxor.u32 2147483648, %v4487_v36 }
 0x358   :  { %v4790_v38 = vshrl.u32 %v4772_v51, %v4788_v23  ;;  %v4979_v25 = vmul.u32 %v4972_v63, %v4963_v53  ;;  %vm4981_vm15 = vc.u32 %v10705_v54, %v10708_v13  ;;  %v7601_v12 = vadd.s32 4294967169, %v4824_v46 }
 0x359   :  { %8000 = vcosq.f32 %v4284_v35  ;;  %v10730_v14 = vsel %vm10674_vm2, 0, %v4595_v5  ;;  %v4794_v7 = vshll.u32 %v4793_v11, 23  ;;  %v4982_v58 = vadd.s32 1, %v10709_v48 }
 0x35a   :  { %12004 = vst [vmem:[#allocation42_spill] sm:$0xff] %v10730_v14  ;;  %v4491_v62 = vsel %vm4406_vm5, %v4490_v30, %v10477_v47  ;;  %v4789_v45 = vshll.u32 %v10580_v40, %v4787_v32  ;;  %v7594_v63 = vmin.u32 %v4678_v39, %v10687_v61  ;;  %v4830_v3 = vadd.s32 1, %v7601_v12  ;;  %v10748_v40 = vpop.f32.mrf.mxu1 }
 0x35b   :  { %v4596_v34 = vsel %vm10674_vm2, %v10168_v44, %v4593_v49  ;;  %v4489_v5 = vsel %vm4406_vm5, %v4488_v1, %v4487_v36  ;;  %v4802_v21 = vsub.s32 4, %v10561_v52  ;;  %v4983_v6 = vsel %vm4981_vm15, %v4982_v58, %v10709_v48 }
 0x35c   :  { %v10745_v9 = vor.u32 %v4790_v38, %v4789_v45  ;;  %v4984_v29 = vadd.s32 %v4983_v6, %v4979_v25  ;;  %v11783_v47 = vand.u32 2147483647, %v10682_v42  ;;  %vm4831_vm9 = vcmp.gt.s32.totalorder %v4830_v3, 0 }
 0x35d   :  { %8002 = vsinq.f32 %v4284_v35  ;;  %v10752_v32 = vsel %vm10700_vm0, 0, %v4491_v62  ;;  %v10754_v2 = vor.u32 4788187, %v4794_v7  ;;  %v4832_v36 = vsel %vm4831_vm9, %v4830_v3, 0 }
 0x35e   :  { %12005 = vst [vmem:[#allocation38_spill] sm:$0xff] %v10752_v32  ;;  %8004 = vcosq.f32 %v4596_v34  ;;  %v4680_v23 = vclz %v7594_v63  ;;  %v4985_v31 = vadd.s32 536870912, %v4984_v29  ;;  %v4834_v11 = vand.u32 31, %v4832_v36 }
 0x35f   :  { %8006 = vsinq.f32 %v4596_v34  ;;  %v10759_v53 = vsel %vm10700_vm0, %v10241_v15, %v4489_v5  ;;  %v10764_v35 = vsel %vm4718_vm7, %v4802_v21, %v10561_v52  ;;  %v5135_v48 = vand.u32 2139095040, %v10748_v40 }
 0x360   :  { %v4798_v30 = vcvt.s32.f32 %v10745_v9  ;;  %v10768_v51 = vshrl.u32 %v4985_v31, 30  ;;  %v4827_v39 = vand.u32 8388607, %v11783_v47  ;;  %v4835_v46 = vsub.s32 32, %v4834_v11 }
 0x361   :  { %v4796_v49 = vand.u32 2147483647, %v10754_v2  ;;  %v4837_v60 = vshll.u32 %v11843_v17, %v4834_v11  ;;  %v4840_v1 = vshll.u32 %v11838_v19, %v4834_v11  ;;  %v4843_v38 = vshll.u32 %v11840_v28, %v4834_v11 }
 0x362   :  { %v7595_v52 = vadd.s32 4294967294, %v4680_v23  ;;  %v4987_v25 = vshll.u32 %v10768_v51, 30  ;;  %v4838_v12 = vshrl.u32 %v11838_v19, %v4835_v46  ;;  %v4846_v7 = vshll.u32 %v11839_v50, %v4834_v11 }
 0x363   :  { %v4833_v58 = vshrl.u32 %v4832_v36, 5  ;;  %v4841_v62 = vshrl.u32 %v11840_v28, %v4835_v46  ;;  %v4844_v45 = vshrl.u32 %v11839_v50, %v4835_v46  ;;  %v5136_v63 = vshrl.u32 %v5135_v48, 23 }
 0x364   :  { %v10781_v3 = vpop.eup %7998  ;;  %v10783_v34 = vsub.s32 %v4984_v29, %v4987_v25  ;;  %v4828_v5 = vor.u32 8388608, %v4827_v39  ;;  %v4847_v21 = vshrl.u32 %v11841_v8, %v4835_v46  ;;  %v12006_v9 = vand.u32 2147483647, %v10345_v59 }
 0x365   :  { %v4836_v36 = vshrl.u32 %v11843_v17, %v4835_v46  ;;  %v4839_v23 = vor.u32 %v4838_v12, %v4837_v60  ;;  %v4842_v31 = vor.u32 %v4841_v62, %v4840_v1  ;;  %v4845_v48 = vor.u32 %v4844_v45, %v4843_v38 }
 0x366   :  { %vm10789_vm11 = vcmp.le.f32.partialorder %v12006_v9, 0.7853982  ;;  %v10794_v47 = vpop.eup %8000  ;;  %v4990_v29 = vsub.s32 0, %v10783_v34  ;;  %v4848_v39 = vor.u32 %v4847_v21, %v4846_v7  ;;  %v4849_v25 = vshll.u32 %v11841_v8, %v4834_v11 }
 0x367   :  { %12009 = vst [vmem:[#allocation35_spill] sm:$0xff] %v10794_v47  ;;  %v4850_v6 = vshrl.u32 %v11842_v16, %v4835_v46  ;;  %vm7596_vm6 = vcmp.lt.s32.totalorder %v7595_v52, 0  ;;  %vm4852_vm13 = vcmp.lt.s32.totalorder %v4833_v58, 1  ;;  %vm4854_vm10 = vcmp.lt.s32.totalorder %v4833_v58, 3 }
 0x368   :  { %v7613_v9 = vadd.s32 4294967169, %v5136_v63  ;;  %v7606_v15 = vmin.u32 %v4990_v29, %v10783_v34  ;;  %vm4853_vm4 = vcmp.lt.s32.totalorder %v4833_v58, 2  ;;  %vm4855_vm14 = vcmp.lt.s32.totalorder %v4833_v58, 4 }
 0x369   :  { %v4851_v32 = vor.u32 %v4850_v6, %v4849_v25  ;;  %v4857_v60 = vsel %vm4855_vm14, %v4845_v48, 2102212464  ;;  %v4860_v1 = vsel %vm4852_vm13, %v4839_v23, %v4842_v31  ;;  %v4861_v38 = vsel %vm4855_vm14, %v4848_v39, 920167782 }
 0x36a   :  { %v4868_v12 = vshll.u32 %v4828_v5, 8  ;;  %v10800_v62 = vpop.eup %8002  ;;  %v4856_v7 = vsel %vm4852_vm13, %v4836_v36, %v4839_v23  ;;  %v4858_v11 = vsel %vm4854_vm10, %v4842_v31, %v4857_v60  ;;  %v4862_v46 = vsel %vm4854_vm10, %v4845_v48, %v4861_v38 }
 0x36b   :  { %12010 = vst [vmem:[#allocation24_spill] sm:$0xff] %v10800_v62  ;;  %v4864_v45 = vsel %vm4852_vm13, %v4842_v31, %v4845_v48  ;;  %v10804_v21 = vpop.eup %8004  ;;  %v10807_v63 = vsel %vm7596_vm6, 0, %v7595_v52  ;;  %v4863_v6 = vsel %vm4853_vm4, %v4860_v1, %v4862_v46  ;;  %v4865_v29 = vsel %vm4855_vm14, %v4851_v32, 1326507024  ;;  %v10817_v31 = vpop.f32.mrf.mxu1 }
 0x36c   :  { %12011 = vst [vmem:[#allocation40_spill] sm:$0xff] %v10804_v21  ;;  %v5142_v25 = vadd.s32 1, %v7613_v9  ;;  %v10810_v44 = vpop.eup %8006  ;;  %v10812_v5 = vmul.f32 %v4798_v30, %v4796_v49  ;;  %v4992_v14 = vclz %v7606_v15  ;;  %v4866_v36 = vsel %vm4854_vm10, %v4848_v39, %v4865_v29 }
 0x36d   :  { %12012 = vst [vmem:[#allocation45_spill] sm:$0xff] %v10810_v44  ;;  %v12013_v23 = vand.u32 2147483647, %v10748_v40  ;;  %v4859_v48 = vsel %vm4853_vm4, %v4856_v7, %v4858_v11  ;;  %v4867_v52 = vsel %vm4853_vm4, %v4864_v45, %v4866_v36  ;;  %v10828_v32 = vsel %vm10789_vm11, 0, %v10764_v35 }
 0x36e   :  { %v10821_v38 = vmul.u32.u64.low %v4868_v12, %v4863_v6  ;;  %v10822_v1 = vmul.u32.u64.high %v4868_v12, %v4863_v6, %v10821_v38  ;;  %12014 = vst [vmem:[#allocation43_spill] sm:$0xff] %v10828_v32  ;;  %v4688_v15 = vsub.s32 4294967266, %v10807_v63  ;;  %8008 = vcosq.f32 %v10759_v53 }
 0x36f   :  { %v5139_v60 = vand.u32 8388607, %v12013_v23  ;;  %v10831_v30 = vmul.u32.u64.low %v4868_v12, %v4867_v52  ;;  %v10832_v49 = vmul.u32.u64.high %v4868_v12, %v4867_v52, %v10831_v30  ;;  %v4668_v58 = vadd.s32 %v10620_v57, %v10618_v56 }
 0x370   :  { %vm5143_vm1 = vcmp.gt.s32.totalorder %v5142_v25, 0  ;;  %v5031_v39 = vand.u32 2139095040, %v10817_v31  ;;  %v7607_v7 = vadd.s32 4294967294, %v4992_v14  ;;  %v4875_v11 = vmul.u32 %v4868_v12, %v4859_v48 }
 0x371   :  { %v5144_v46 = vsel %vm5143_vm1, %v5142_v25, 0  ;;  %v4878_v45 = vadd.s32 1, %v10822_v1  ;;  %v5140_v6 = vor.u32 8388608, %v5139_v60  ;;  %v4684_v36 = vsub.s32 32, %v10807_v63 }
 0x372   :  { %v5146_v29 = vand.u32 31, %v5144_v46  ;;  %v4685_v23 = vshll.u32 %v10687_v61, %v10807_v63  ;;  %v4689_v56 = vadd.s32 127, %v4688_v15  ;;  %vm4877_vm8 = vc.u32 %v10832_v49, %v10821_v38 }
 0x373   :  { %v4879_v57 = vsel %vm4877_vm8, %v4878_v45, %v10822_v1  ;;  %v5032_v25 = vshrl.u32 %v5031_v39, 23  ;;  %vm7608_vm12 = vcmp.lt.s32.totalorder %v7607_v7, 0  ;;  %v5145_v52 = vshrl.u32 %v5144_v46, 5 }
 0x374   :  { %v5147_v14 = vsub.s32 32, %v5146_v29  ;;  %v5149_v12 = vshll.u32 %v11843_v17, %v5146_v29  ;;  %v4880_v48 = vadd.s32 %v4879_v57, %v4875_v11  ;;  %v5152_v60 = vshll.u32 %v11838_v19, %v5146_v29 }
 0x375   :  { %v5155_v61 = vshll.u32 %v11840_v28, %v5146_v29  ;;  %v4686_v15 = vshrl.u32 %v4668_v58, %v4684_v36  ;;  %v4690_v35 = vshll.u32 %v4689_v56, 23  ;;  %v5158_v45 = vshll.u32 %v11839_v50, %v5146_v29 }
 0x376   :  { %v5150_v30 = vshrl.u32 %v11838_v19, %v5147_v14  ;;  %v5153_v9 = vshrl.u32 %v11840_v28, %v5147_v14  ;;  %v5156_v63 = vshrl.u32 %v11839_v50, %v5147_v14  ;;  %v4881_v1 = vadd.s32 536870912, %v4880_v48 }
 0x377   :  { %v10854_v32 = vsel %vm7608_vm12, 0, %v7607_v7  ;;  %v5159_v11 = vshrl.u32 %v11841_v8, %v5147_v14  ;;  %v7609_v46 = vadd.s32 4294967169, %v5032_v25  ;;  %v5161_v44 = vshll.u32 %v11841_v8, %v5146_v29 }
 0x378   :  { %v5151_v39 = vor.u32 %v5150_v30, %v5149_v12  ;;  %v10857_v57 = vshrl.u32 %v4881_v1, 30  ;;  %v5154_v21 = vor.u32 %v5153_v9, %v5152_v60  ;;  %v5162_v26 = vshrl.u32 %v11842_v16, %v5147_v14 }
 0x379   :  { %v5157_v47 = vor.u32 %v5156_v63, %v5155_v61  ;;  %v5160_v62 = vor.u32 %v5159_v11, %v5158_v45  ;;  %vm5164_vm3 = vcmp.lt.s32.totalorder %v5145_v52, 1  ;;  %v10861_v58 = vshll.u32 %v5140_v6, 8 }
 0x37a   :  { %v4691_v36 = vor.u32 4788187, %v4690_v35  ;;  %v5000_v7 = vsub.s32 4294967266, %v10854_v32  ;;  %v4883_v56 = vshll.u32 %v10857_v57, 30  ;;  %v5163_v12 = vor.u32 %v5162_v26, %v5161_v44 }
 0x37b   :  { %v5148_v25 = vshrl.u32 %v11843_v17, %v5147_v14  ;;  %vm5166_vm2 = vcmp.lt.s32.totalorder %v5145_v52, 3  ;;  %vm5167_vm5 = vcmp.lt.s32.totalorder %v5145_v52, 4  ;;  %v5038_v9 = vadd.s32 1, %v7609_v46  ;;  %v10866_v60 = vpop.eup %8008 }
 0x37c   :  { %12015 = vst [vmem:[#allocation37_spill] sm:$0xff] %v10866_v60  ;;  %v10868_v29 = vsub.s32 %v4880_v48, %v4883_v56  ;;  %vm5165_vm0 = vcmp.lt.s32.totalorder %v5145_v52, 2  ;;  %v5169_v30 = vsel %vm5167_vm5, %v5157_v47, 2102212464  ;;  %v5172_v6 = vsel %vm5164_vm3, %v5151_v39, %v5154_v21 }
 0x37d   :  { %v4687_v61 = vor.u32 %v4686_v15, %v4685_v23  ;;  %v5173_v35 = vsel %vm5167_vm5, %v5160_v62, 920167782  ;;  %v5176_v63 = vsel %vm5164_vm3, %v5154_v21, %v5157_v47  ;;  %v5177_v1 = vsel %vm5167_vm5, %v5163_v12, 1326507024 }
 0x37e   :  { %v4692_v45 = vand.u32 2147483647, %v4691_v36  ;;  %v4886_v26 = vsub.s32 0, %v10868_v29  ;;  %v5174_v44 = vsel %vm5166_vm2, %v5157_v47, %v5173_v35  ;;  %v5168_v11 = vsel %vm5164_vm3, %v5148_v25, %v5151_v39 }
 0x37f   :  { %v5170_v48 = vsel %vm5166_vm2, %v5154_v21, %v5169_v30  ;;  %v5175_v46 = vsel %vm5165_vm0, %v5172_v6, %v5174_v44  ;;  %v5178_v56 = vsel %vm5166_vm2, %v5160_v62, %v5177_v1  ;;  %v5001_v23 = vadd.s32 127, %v5000_v7 }
 0x380   :  { %v7602_v15 = vmin.u32 %v4886_v26, %v10868_v29  ;;  %v5179_v12 = vsel %vm5165_vm0, %v5176_v63, %v5178_v56  ;;  %vm5039_vm15 = vcmp.gt.s32.totalorder %v5038_v9, 0  ;;  %v4694_v36 = vcvt.s32.f32 %v4687_v61 }
 0x381   :  { %v10882_v60 = vmul.u32.u64.low %v10861_v58, %v5179_v12  ;;  %v10883_v47 = vmul.u32.u64.high %v10861_v58, %v5179_v12, %v10882_v60  ;;  %v5040_v35 = vsel %vm5039_vm15, %v5038_v9, 0  ;;  %v5171_v39 = vsel %vm5165_vm0, %v5168_v11, %v5170_v48 }
 0x382   :  { %v4888_v14 = vclz %v7602_v15  ;;  %v10887_v21 = vmul.u32.u64.low %v10861_v58, %v5175_v46  ;;  %v10888_v25 = vmul.u32.u64.high %v10861_v58, %v5175_v46, %v10887_v21  ;;  %v12016_v62 = vxor.u32 2147483648, %v10812_v5 }
 0x383   :  { %v4980_v30 = vadd.s32 %v10708_v13, %v10705_v54  ;;  %v12017_v9 = vand.u32 2147483647, %v10817_v31  ;;  %v5042_v52 = vand.u32 31, %v5040_v35  ;;  %v10902_v6 = vmul.f32 %v4694_v36, %v4692_v45 }
 0x384   :  { %v10896_v7 = vsel %vm4718_vm7, %v12016_v62, %v10812_v5  ;;  %v4996_v61 = vsub.s32 32, %v10854_v32  ;;  %v5002_v63 = vshll.u32 %v5001_v23, 23  ;;  %v7603_v1 = vadd.s32 4294967294, %v4888_v14 }
 0x385   :  { %v5035_v60 = vand.u32 8388607, %v12017_v9  ;;  %v5187_v26 = vmul.u32 %v10861_v58, %v5171_v39  ;;  %vm5189_vm9 = vc.u32 %v10883_v47, %v10887_v21  ;;  %v10908_v5 = vshrl.u32 %v5040_v35, 5 }
 0x386   :  { %v5043_v44 = vsub.s32 32, %v5042_v52  ;;  %vm7604_vm7 = vcmp.lt.s32.totalorder %v7603_v1, 0  ;;  %v5190_v54 = vadd.s32 1, %v10888_v25  ;;  %v5045_v13 = vshll.u32 %v11843_v17, %v5042_v52 }
 0x387   :  { %v5048_v45 = vshll.u32 %v11838_v19, %v5042_v52  ;;  %v4997_v11 = vshll.u32 %v10783_v34, %v10854_v32  ;;  %v5036_v48 = vor.u32 8388608, %v5035_v60  ;;  %v4998_v46 = vshrl.u32 %v4980_v30, %v4996_v61 }
 0x388   :  { %v5046_v14 = vshrl.u32 %v11838_v19, %v5043_v44  ;;  %v5049_v58 = vshrl.u32 %v11840_v28, %v5043_v44  ;;  %v10917_v56 = vsel %vm7604_vm7, 0, %v7603_v1  ;;  %v5191_v23 = vsel %vm5189_vm9, %v5190_v54, %v10888_v25 }
 0x389   :  { %v5051_v15 = vshll.u32 %v11840_v28, %v5042_v52  ;;  %v5003_v12 = vor.u32 4788187, %v5002_v63  ;;  %v5192_v36 = vadd.s32 %v5191_v23, %v5187_v26  ;;  %v5052_v35 = vshrl.u32 %v11839_v50, %v5043_v44 }
 0x38a   :  { %vm5060_vm6 = vcmp.lt.s32.totalorder %v10908_v5, 1  ;;  %v5047_v39 = vor.u32 %v5046_v14, %v5045_v13  ;;  %v5050_v34 = vor.u32 %v5049_v58, %v5048_v45  ;;  %v5054_v32 = vshll.u32 %v11839_v50, %v5042_v52 }
 0x38b   :  { %v5055_v62 = vshrl.u32 %v11841_v8, %v5043_v44  ;;  %v4896_v30 = vsub.s32 4294967266, %v10917_v56  ;;  %v5193_v9 = vadd.s32 536870912, %v5192_v36  ;;  %v5057_v60 = vshll.u32 %v11841_v8, %v5042_v52 }
 0x38c   :  { %v5058_v25 = vshrl.u32 %v11842_v16, %v5043_v44  ;;  %v5044_v61 = vshrl.u32 %v11843_v17, %v5043_v44  ;;  %v5053_v63 = vor.u32 %v5052_v35, %v5051_v15  ;;  %vm5063_vm13 = vcmp.lt.s32.totalorder %v10908_v5, 4 }
 0x38d   :  { %v5056_v1 = vor.u32 %v5055_v62, %v5054_v32  ;;  %vm4614_vm10 = vcmp.lt.s32.totalorder %v10480_v41, 0  ;;  %v4999_v26 = vor.u32 %v4998_v46, %v4997_v11  ;;  %v10931_v54 = vshrl.u32 %v5193_v9, 30 }
 0x38e   :  { %v5059_v13 = vor.u32 %v5058_v25, %v5057_v60  ;;  %vm5062_vm4 = vcmp.lt.s32.totalorder %v10908_v5, 3  ;;  %v5004_v45 = vand.u32 2147483647, %v5003_v12  ;;  %vm5061_vm14 = vcmp.lt.s32.totalorder %v10908_v5, 2  ;;  %v10965_v60 = vpop.f32.mrf.mxu1 }
 0x38f   :  { %v5065_v52 = vsel %vm5063_vm13, %v5053_v63, 2102212464  ;;  %v5068_v44 = vsel %vm5060_vm6, %v5047_v39, %v5050_v34  ;;  %vm4926_vm1 = vcmp.lt.s32.totalorder %v10534_v20, 0  ;;  %v4897_v14 = vadd.s32 127, %v4896_v30 }
 0x390   :  { %v5195_v58 = vshll.u32 %v10931_v54, 30  ;;  %v5069_v11 = vsel %vm5063_vm13, %v5056_v1, 920167782  ;;  %v5076_v46 = vshll.u32 %v5036_v48, 8  ;;  %v5064_v23 = vsel %vm5060_vm6, %v5044_v61, %v5047_v39 }
 0x391   :  { %v5070_v15 = vsel %vm5062_vm4, %v5053_v63, %v5069_v11  ;;  %v5072_v12 = vsel %vm5060_vm6, %v5050_v34, %v5053_v63  ;;  %v5073_v35 = vsel %vm5063_vm13, %v5059_v13, 1326507024  ;;  %v12018_v32 = vand.u32 2147483647, %v10480_v41 }
 0x392   :  { %v10957_v30 = vsub.s32 %v5192_v36, %v5195_v58  ;;  %v5066_v48 = vsel %vm5062_vm4, %v5050_v34, %v5065_v52  ;;  %v5071_v39 = vsel %vm5061_vm14, %v5068_v44, %v5070_v15  ;;  %v5074_v9 = vsel %vm5062_vm4, %v5056_v1, %v5073_v35 }
 0x393   :  { %vm10953_vm8 = vcmp.le.f32.partialorder %v12018_v32, 0.7853982  ;;  %v4696_v25 = vxor.u32 2147483648, %v10902_v6  ;;  %v5006_v61 = vcvt.s32.f32 %v4999_v26  ;;  %v5010_v63 = vsub.s32 4, %v10768_v51 }
 0x394   :  { %v5075_v36 = vsel %vm5061_vm14, %v5072_v12, %v5074_v9  ;;  %v4892_v13 = vsub.s32 32, %v10917_v56  ;;  %v5198_v34 = vsub.s32 0, %v10957_v30  ;;  %v5067_v1 = vsel %vm5061_vm14, %v5064_v23, %v5066_v48 }
 0x395   :  { %v10973_v52 = vmul.u32.u64.low %v5076_v46, %v5075_v36  ;;  %v10974_v58 = vmul.u32.u64.high %v5076_v46, %v5075_v36, %v10973_v52  ;;  %v10978_v44 = vmul.u32.u64.low %v5076_v46, %v5071_v39  ;;  %v10979_v11 = vmul.u32.u64.high %v5076_v46, %v5071_v39, %v10978_v44 }
 0x396   :  { %v5343_v26 = vand.u32 2139095040, %v10965_v60  ;;  %v12021_v15 = vand.u32 2147483647, %v10534_v20  ;;  %v5007_v35 = vmul.f32 %v5006_v61, %v5004_v45  ;;  %v4876_v32 = vadd.s32 %v10821_v38, %v10832_v49 }
 0x397   :  { %v4898_v9 = vshll.u32 %v4897_v14, 23  ;;  %v7614_v5 = vmin.u32 %v5198_v34, %v10957_v30  ;;  %8010 = vsinq.f32 %v10759_v53  ;;  %v4697_v23 = vsel %vm4614_vm10, %v4696_v25, %v10902_v6  ;;  %v11012_v25 = vpop.f32.mrf.mxu1 }
 0x398   :  { %vm10985_vm12 = vcmp.le.f32.partialorder %v12021_v15, 0.7853982  ;;  %v12024_v48 = vsub.s32 4, %v10658_v55  ;;  %v5344_v36 = vshrl.u32 %v5343_v26, 23  ;;  %vm4822_vm3 = vcmp.lt.s32.totalorder %v10682_v42, 0 }
 0x399   :  { %v4894_v45 = vshrl.u32 %v4876_v32, %v4892_v13  ;;  %v5200_v38 = vclz %v7614_v5  ;;  %v5083_v49 = vmul.u32 %v5076_v46, %v5067_v1  ;;  %vm5085_vm2 = vc.u32 %v10974_v58, %v10978_v44 }
 0x39a   :  { %v4699_v39 = vsel %vm4614_vm10, %v12024_v48, %v10658_v55  ;;  %v4804_v53 = vsel %vm10789_vm11, %v10345_v59, %v10896_v7  ;;  %v5011_v6 = vsel %vm4926_vm1, %v5010_v63, %v10768_v51  ;;  %v5086_v55 = vadd.s32 1, %v10979_v11 }
 0x39b   :  { %v7621_v14 = vadd.s32 4294967169, %v5344_v36  ;;  %v5008_v61 = vxor.u32 2147483648, %v5007_v35  ;;  %v4893_v46 = vshll.u32 %v10868_v29, %v10917_v56  ;;  %v4899_v13 = vor.u32 4788187, %v4898_v9 }
 0x39c   :  { %v7615_v34 = vadd.s32 4294967294, %v5200_v38  ;;  %v4700_v2 = vsel %vm10953_vm8, %v10480_v41, %v4697_v23  ;;  %v5087_v7 = vsel %vm5085_vm2, %v5086_v55, %v10979_v11  ;;  %v11798_v52 = vand.u32 2147483647, %v10965_v60 }
 0x39d   :  { %v5350_v51 = vadd.s32 1, %v7621_v14  ;;  %v4895_v63 = vor.u32 %v4894_v45, %v4893_v46  ;;  %v5088_v1 = vadd.s32 %v5087_v7, %v5083_v49  ;;  %v5239_v26 = vand.u32 2139095040, %v11012_v25 }
 0x39e   :  { %vm7616_vm11 = vcmp.lt.s32.totalorder %v7615_v34, 0  ;;  %8012 = vcosq.f32 %v4804_v53  ;;  %v11024_v29 = vsel %vm10953_vm8, 0, %v4699_v39  ;;  %v4906_v56 = vsub.s32 4, %v10857_v57 }
 0x39f   :  { %12025 = vst [vmem:[#allocation29_spill] sm:$0xff] %v11024_v29  ;;  %vm5351_vm5 = vcmp.gt.s32.totalorder %v5350_v51, 0  ;;  %8014 = vsinq.f32 %v4804_v53  ;;  %v5009_v11 = vsel %vm4926_vm1, %v5008_v61, %v5007_v35  ;;  %v4900_v15 = vand.u32 2147483647, %v4899_v13 }
 0x3a0   :  { %v5089_v32 = vadd.s32 536870912, %v5088_v1  ;;  %8016 = vcosq.f32 %v4700_v2  ;;  %v11031_v9 = vsel %vm10985_vm12, 0, %v5011_v6  ;;  %v11033_v5 = vsel %vm7616_vm11, 0, %v7615_v34 }
 0x3a1   :  { %12026 = vst [vmem:[#allocation41_spill] sm:$0xff] %v11031_v9  ;;  %v5352_v23 = vsel %vm5351_vm5, %v5350_v51, 0  ;;  %v4902_v62 = vcvt.s32.f32 %v4895_v63  ;;  %v5347_v39 = vand.u32 8388607, %v11798_v52  ;;  %v5240_v36 = vshrl.u32 %v5239_v26, 23 }
 0x3a2   :  { %v11035_v48 = vshrl.u32 %v5089_v32, 30  ;;  %8018 = vsinq.f32 %v4700_v2  ;;  %v11042_v35 = vsel %vm10985_vm12, %v10534_v20, %v5009_v11  ;;  %v11047_v45 = vsel %vm4822_vm3, %v4906_v56, %v10857_v57 }
 0x3a3   :  { %v5354_v38 = vand.u32 31, %v5352_v23  ;;  %v11049_v49 = vmul.f32 %v4902_v62, %v4900_v15  ;;  %v5188_v53 = vadd.s32 %v10887_v21, %v10883_v47  ;;  %v5208_v6 = vsub.s32 4294967266, %v11033_v5 }
 0x3a4   :  { %v5091_v55 = vshll.u32 %v11035_v48, 30  ;;  %v11058_v13 = vpop.eup %8010  ;;  %v5348_v34 = vor.u32 8388608, %v5347_v39  ;;  %v7617_v7 = vadd.s32 4294967169, %v5240_v36  ;;  %v5204_v47 = vsub.s32 32, %v11033_v5 }
 0x3a5   :  { %v5355_v14 = vsub.s32 32, %v5354_v38  ;;  %v5357_v12 = vshll.u32 %v11843_v17, %v5354_v38  ;;  %v5360_v61 = vshll.u32 %v11838_v19, %v5354_v38  ;;  %v5363_v2 = vshll.u32 %v11840_v28, %v5354_v38 }
 0x3a6   :  { %v11060_v57 = vsub.s32 %v5088_v1, %v5091_v55  ;;  %v5353_v21 = vshrl.u32 %v5352_v23, 5  ;;  %v5209_v26 = vadd.s32 127, %v5208_v6  ;;  %v5366_v15 = vshll.u32 %v11839_v50, %v5354_v38 }
 0x3a7   :  { %v5358_v51 = vshrl.u32 %v11838_v19, %v5355_v14  ;;  %v5361_v63 = vshrl.u32 %v11840_v28, %v5355_v14  ;;  %v5364_v11 = vshrl.u32 %v11839_v50, %v5355_v14  ;;  %v5367_v62 = vshrl.u32 %v11841_v8, %v5355_v14 }
 0x3a8   :  { %v5094_v56 = vsub.s32 0, %v11060_v57  ;;  %v5369_v39 = vshll.u32 %v11841_v8, %v5354_v38  ;;  %v5370_v55 = vshrl.u32 %v11842_v16, %v5355_v14  ;;  %v5246_v52 = vadd.s32 1, %v7617_v7 }
 0x3a9   :  { %v5359_v1 = vor.u32 %v5358_v51, %v5357_v12  ;;  %v5362_v32 = vor.u32 %v5361_v63, %v5360_v61  ;;  %v5365_v23 = vor.u32 %v5364_v11, %v5363_v2  ;;  %v12027_v6 = vand.u32 2147483647, %v10682_v42 }
 0x3aa   :  { %v7610_v36 = vmin.u32 %v5094_v56, %v11060_v57  ;;  %v5356_v20 = vshrl.u32 %v11843_v17, %v5355_v14  ;;  %v5368_v12 = vor.u32 %v5367_v62, %v5366_v15  ;;  %vm5372_vm15 = vcmp.lt.s32.totalorder %v5353_v21, 1 }
 0x3ab   :  { %vm11075_vm0 = vcmp.le.f32.partialorder %v12027_v6, 0.7853982  ;;  %vm5374_vm9 = vcmp.lt.s32.totalorder %v5353_v21, 3  ;;  %v11080_v61 = vpop.eup %8012  ;;  %v5210_v38 = vshll.u32 %v5209_v26, 23  ;;  %v5371_v63 = vor.u32 %v5370_v55, %v5369_v39 }
 0x3ac   :  { %v5096_v51 = vclz %v7610_v36  ;;  %vm5375_vm7 = vcmp.lt.s32.totalorder %v5353_v21, 4  ;;  %v11082_v2 = vpop.eup %8014  ;;  %vm5373_vm6 = vcmp.lt.s32.totalorder %v5353_v21, 2  ;;  %v5380_v56 = vsel %vm5372_vm15, %v5359_v1, %v5362_v32 }
 0x3ad   :  { %v5377_v7 = vsel %vm5375_vm7, %v5365_v23, 2102212464  ;;  %v5381_v11 = vsel %vm5375_vm7, %v5368_v12, 920167782  ;;  %v11087_v6 = vpop.eup %8016  ;;  %v5206_v14 = vshrl.u32 %v5188_v53, %v5204_v47  ;;  %vm5247_vm13 = vcmp.gt.s32.totalorder %v5246_v52, 0 }
 0x3ae   :  { %12030 = vst [vmem:[#allocation39_spill] sm:$0xff] %v11087_v6  ;;  %v7611_v15 = vadd.s32 4294967294, %v5096_v51  ;;  %v5382_v62 = vsel %vm5374_vm9, %v5365_v23, %v5381_v11  ;;  %v5376_v26 = vsel %vm5372_vm15, %v5356_v20, %v5359_v1  ;;  %v5378_v39 = vsel %vm5374_vm9, %v5362_v32, %v5377_v7 }
 0x3af   :  { %v5384_v36 = vsel %vm5372_vm15, %v5362_v32, %v5365_v23  ;;  %v5388_v55 = vshll.u32 %v5348_v34, 8  ;;  %v11093_v9 = vpop.eup %8018  ;;  %v5205_v41 = vshll.u32 %v10957_v30, %v11033_v5  ;;  %v5211_v29 = vor.u32 4788187, %v5210_v38 }
 0x3b0   :  { %v5383_v6 = vsel %vm5373_vm6, %v5380_v56, %v5382_v62  ;;  %v5385_v53 = vsel %vm5375_vm7, %v5371_v63, 1326507024  ;;  %v4904_v47 = vxor.u32 2147483648, %v11049_v49  ;;  %v12031_v20 = vand.u32 2147483647, %v11012_v25 }
 0x3b1   :  { %v5386_v51 = vsel %vm5374_vm9, %v5368_v12, %v5385_v53  ;;  %v5248_v7 = vsel %vm5247_vm13, %v5246_v52, 0  ;;  %v5207_v32 = vor.u32 %v5206_v14, %v5205_v41  ;;  %vm7612_vm10 = vcmp.lt.s32.totalorder %v7611_v15, 0 }
 0x3b2   :  { %v5243_v1 = vand.u32 8388607, %v12031_v20  ;;  %v5379_v34 = vsel %vm5373_vm6, %v5376_v26, %v5378_v39  ;;  %v5387_v23 = vsel %vm5373_vm6, %v5384_v36, %v5386_v51  ;;  %8020 = vcosq.f32 %v11042_v35 }
 0x3b3   :  { %v11105_v30 = vmul.u32.u64.low %v5388_v55, %v5387_v23  ;;  %v11106_v5 = vmul.u32.u64.high %v5388_v55, %v5387_v23, %v11105_v30  ;;  %v11108_v38 = vmul.u32.u64.low %v5388_v55, %v5383_v6  ;;  %v11109_v56 = vmul.u32.u64.high %v5388_v55, %v5383_v6, %v11108_v38 }
 0x3b4   :  { %v11116_v12 = vsel %vm11075_vm0, 0, %v11047_v45  ;;  %v5212_v41 = vand.u32 2147483647, %v5211_v29  ;;  %v5250_v52 = vand.u32 31, %v5248_v7  ;;  %8022 = vsinq.f32 %v11042_v35 }
 0x3b5   :  { %v11122_v21 = vsel %vm4822_vm3, %v4904_v47, %v11049_v49  ;;  %v5218_v63 = vsub.s32 4, %v10931_v54  ;;  %v5244_v11 = vor.u32 8388608, %v5243_v1  ;;  %v5214_v6 = vcvt.s32.f32 %v5207_v32 }
 0x3b6   :  { %v11126_v14 = vsel %vm7612_vm10, 0, %v7611_v15  ;;  %v5395_v62 = vmul.u32 %v5388_v55, %v5379_v34  ;;  %v5251_v26 = vsub.s32 32, %v5250_v52  ;;  %vm5397_vm4 = vc.u32 %v11106_v5, %v11108_v38 }
 0x3b7   :  { %v5398_v29 = vadd.s32 1, %v11109_v56  ;;  %v5253_v35 = vshll.u32 %v11843_v17, %v5250_v52  ;;  %v5256_v45 = vshll.u32 %v11838_v19, %v5250_v52  ;;  %v11133_v49 = vmul.f32 %v5214_v6, %v5212_v41 }
 0x3b8   :  { %v5084_v39 = vadd.s32 %v10978_v44, %v10974_v58  ;;  %v5249_v36 = vshrl.u32 %v5248_v7, 5  ;;  %v5254_v15 = vshrl.u32 %v11838_v19, %v5251_v26  ;;  %v5257_v53 = vshrl.u32 %v11840_v28, %v5251_v26 }
 0x3b9   :  { %v5399_v55 = vsel %vm5397_vm4, %v5398_v29, %v11109_v56  ;;  %v5259_v47 = vshll.u32 %v11840_v28, %v5250_v52  ;;  %v5260_v51 = vshrl.u32 %v11839_v50, %v5251_v26  ;;  %v5104_v20 = vsub.s32 4294967266, %v11126_v14 }
 0x3ba   :  { %v5400_v1 = vadd.s32 %v5399_v55, %v5395_v62  ;;  %v5262_v32 = vshll.u32 %v11839_v50, %v5250_v52  ;;  %v11144_v34 = vshll.u32 %v5244_v11, 8  ;;  %v5255_v23 = vor.u32 %v5254_v15, %v5253_v35 }
 0x3bb   :  { %v5258_v58 = vor.u32 %v5257_v53, %v5256_v45  ;;  %v5263_v44 = vshrl.u32 %v11841_v8, %v5251_v26  ;;  %v5265_v19 = vshll.u32 %v11841_v8, %v5250_v52  ;;  %v5252_v30 = vshrl.u32 %v11843_v17, %v5251_v26 }
 0x3bc   :  { %v5401_v7 = vadd.s32 536870912, %v5400_v1  ;;  %v5266_v28 = vshrl.u32 %v11842_v16, %v5251_v26  ;;  %vm5268_vm14 = vcmp.lt.s32.totalorder %v5249_v36, 1  ;;  %v5216_v56 = vxor.u32 2147483648, %v11133_v49 }
 0x3bd   :  { %v5261_v41 = vor.u32 %v5260_v51, %v5259_v47  ;;  %v5264_v6 = vor.u32 %v5263_v44, %v5262_v32  ;;  %vm5271_vm1 = vcmp.lt.s32.totalorder %v5249_v36, 4  ;;  %v5105_v50 = vadd.s32 127, %v5104_v20 }
 0x3be   :  { %v11151_v11 = vshrl.u32 %v5401_v7, 30  ;;  %v5267_v62 = vor.u32 %v5266_v28, %v5265_v19  ;;  %vm5270_vm8 = vcmp.lt.s32.totalorder %v5249_v36, 3  ;;  %vm5269_vm12 = vcmp.lt.s32.totalorder %v5249_v36, 2 }
 0x3bf   :  { %v5273_v29 = vsel %vm5271_vm1, %v5261_v41, 2102212464  ;;  %v5276_v8 = vsel %vm5268_vm14, %v5255_v23, %v5258_v58  ;;  %v5277_v17 = vsel %vm5271_vm1, %v5264_v6, 920167782  ;;  %v5100_v16 = vsub.s32 32, %v11126_v14  ;;  %v11160_v45 = vpop.eup %8020 }
 0x3c0   :  { %v5403_v52 = vshll.u32 %v11151_v11, 30  ;;  %v5272_v26 = vsel %vm5268_vm14, %v5252_v30, %v5255_v23  ;;  %v5274_v35 = vsel %vm5270_vm8, %v5258_v58, %v5273_v29  ;;  %v5278_v15 = vsel %vm5270_vm8, %v5261_v41, %v5277_v17 }
 0x3c1   :  { %v5280_v55 = vsel %vm5268_vm14, %v5258_v58, %v5261_v41  ;;  %v5281_v53 = vsel %vm5271_vm1, %v5267_v62, 1326507024  ;;  %vm3976_vm3 = vweird.f32 %v9872_v4  ;;  %v3977_v47 = vadd.s32 3, %v10157_v18  ;;  %v11167_v51 = vpop.eup %8022 }
 0x3c2   :  { %v5101_v20 = vshll.u32 %v11060_v57, %v11126_v14  ;;  %v5106_v32 = vshll.u32 %v5105_v50, 23  ;;  %v11171_v23 = vsub.s32 %v5400_v1, %v5403_v52  ;;  %v5279_v44 = vsel %vm5269_vm12, %v5276_v8, %v5278_v15 }
 0x3c3   :  { %v5275_v19 = vsel %vm5269_vm12, %v5272_v26, %v5274_v35  ;;  %v5282_v58 = vsel %vm5270_vm8, %v5264_v6, %v5281_v53  ;;  %v3981_v7 = vxor.u32 2147483648, %v10381_v27  ;;  %v3984_v30 = vxor.u32 2147483648, %v10268_v33 }
 0x3c4   :  { %v5406_v28 = vsub.s32 0, %v11171_v23  ;;  %v5283_v41 = vsel %vm5269_vm12, %v5280_v55, %v5282_v58  ;;  %v11181_v62 = vmul.u32.u64.low %v11144_v34, %v5279_v44  ;;  %v11182_v57 = vmul.u32.u64.high %v11144_v34, %v5279_v44, %v11181_v62 }
 0x3c5   :  { %v5102_v14 = vshrl.u32 %v5084_v39, %v5100_v16  ;;  %v11186_v1 = vmul.u32.u64.low %v11144_v34, %v5283_v41  ;;  %v11187_v50 = vmul.u32.u64.high %v11144_v34, %v5283_v41, %v11186_v1  ;;  %v3978_v29 = vand.u32 3, %v3977_v47 }
 0x3c6   :  { %v5107_v6 = vor.u32 4788187, %v5106_v32  ;;  %v7622_v8 = vmin.u32 %v5406_v28, %v11171_v23  ;;  %v5291_v17 = vmul.u32 %v11144_v34, %v5275_v19  ;;  %v3873_v52 = vadd.s32 3, %v10313_v24 }
 0x3c7   :  { %vm5134_vm2 = vcmp.lt.s32.totalorder %v10748_v40, 0  ;;  %vm3979_vm11 = vcmp.lt.s32.totalorder %v3978_v29, 2  ;;  %vm3980_vm5 = vcmp.eq.s32.totalorder %v3978_v29, 0  ;;  %vm3983_vm15 = vcmp.eq.s32.totalorder %v3978_v29, 2 }
 0x3c8   :  { %v3877_v36 = vxor.u32 2147483648, %v10403_v0  ;;  %v5408_v39 = vclz %v7622_v8  ;;  %v5294_v16 = vadd.s32 1, %v11182_v57  ;;  %v3982_v26 = vsel %vm3980_vm5, %v10268_v33, %v3981_v7 }
 0x3c9   :  { %v3985_v35 = vsel %vm3983_vm15, %v3984_v30, %v10381_v27  ;;  %vm5293_vm9 = vc.u32 %v11187_v50, %v11181_v62  ;;  %v3874_v15 = vand.u32 3, %v3873_v52  ;;  %v3880_v55 = vxor.u32 2147483648, %v10394_v37 }
 0x3ca   :  { %v3986_v34 = vsel %vm3979_vm11, %v3982_v26, %v3985_v35  ;;  %v5103_v53 = vor.u32 %v5102_v14, %v5101_v20  ;;  %v7623_v47 = vadd.s32 4294967294, %v5408_v39  ;;  %v5295_v32 = vsel %vm5293_vm9, %v5294_v16, %v11182_v57 }
 0x3cb   :  { %v3987_v44 = vsel %vm3976_vm3, nan, %v3986_v34  ;;  %v12032_v19 = vand.u32 2147483647, %v10748_v40  ;;  %vm5030_vm6 = vcmp.lt.s32.totalorder %v10817_v31, 0  ;;  %v5108_v28 = vand.u32 2147483647, %v5107_v6 }
 0x3cc   :  { %v5296_v41 = vadd.s32 %v5295_v32, %v5291_v17  ;;  %v5445_v1 = vmul.f32 1.4142135, %v3987_v44  ;;  %vm3876_vm13 = vcmp.eq.s32.totalorder %v3874_v15, 0  ;;  %vm7624_vm10 = vcmp.lt.s32.totalorder %v7623_v47, 0 }
 0x3cd   :  { %vm11207_vm7 = vcmp.le.f32.partialorder %v12032_v19, 0.7853982  ;;  %vm3875_vm4 = vcmp.lt.s32.totalorder %v3874_v15, 2  ;;  %v3878_v20 = vsel %vm3876_vm13, %v10394_v37, %v3877_v36  ;;  %vm3879_vm14 = vcmp.eq.s32.totalorder %v3874_v15, 2 }
 0x3ce   :  { %v5411_v57 = vsel %vm7624_vm10, 0, %v7623_v47  ;;  %v5297_v14 = vadd.s32 536870912, %v5296_v41  ;;  %7206 = vrot.lane.b32.xlu1 %v5445_v1, %s8074_s13  ;;  %v3881_v29 = vsel %vm3879_vm14, %v3880_v55, %v10403_v0  ;;  %v5656_v6 = vand.u32 3, %v10157_v18 }
 0x3cf   :  { %v4908_v8 = vsel %vm11075_vm0, %v10682_v42, %v11122_v21  ;;  %v5416_v17 = vsub.s32 4294967266, %v5411_v57  ;;  %vm3872_vm1 = vweird.f32 %v9892_v43  ;;  %v3882_v52 = vsel %vm3875_vm4, %v3878_v20, %v3881_v29  ;;  %v12040_v43 = vld [vmem:[#allocation23_spill] sm:$0xff] }
 0x3d0   :  { %v12035_v39 = vand.u32 2147483647, %v10817_v31  ;;  %v5110_v26 = vcvt.s32.f32 %v5103_v53  ;;  %v11231_v35 = vshrl.u32 %v5297_v14, 30  ;;  %v3883_v18 = vsel %vm3872_vm1, nan, %v3882_v52 }
 0x3d1   :  { %vm5658_vm12 = vcmp.eq.s32.totalorder %v5656_v6, 0  ;;  %v5217_v46 = vsel %vm5134_vm2, %v5216_v56, %v11133_v49  ;;  %v5114_v21 = vsub.s32 4, %v11035_v48  ;;  %v5444_v34 = vmul.f32 1.4142135, %v3883_v18 }
 0x3d2   :  { %vm11227_vm8 = vcmp.le.f32.partialorder %v12035_v39, 0.7853982  ;;  %v5660_v15 = vsel %vm5658_vm12, %v10268_v33, %v3981_v7  ;;  %v5111_v47 = vmul.f32 %v5110_v26, %v5108_v28  ;;  %v5412_v32 = vsub.s32 32, %v5411_v57 }
 0x3d3   :  { %v5299_v53 = vshll.u32 %v11231_v35, 30  ;;  %vm5661_vm0 = vcmp.eq.s32.totalorder %v5656_v6, 2  ;;  %v5417_v44 = vadd.s32 127, %v5416_v17  ;;  %7204 = vrot.lane.b32.xlu0 %v5444_v34, %s8074_s13  ;;  %vm5657_vm11 = vcmp.lt.s32.totalorder %v5656_v6, 2  ;;  %v12041_v34 = vld [vmem:[#allocation34_spill] sm:$0xff] }
 0x3d4   :  { %v5663_v19 = vsel %vm5661_vm0, %v3984_v30, %v10381_v27  ;;  %v5553_v49 = vand.u32 3, %v10313_v24  ;;  %v5219_v56 = vsel %vm5134_vm2, %v5218_v63, %v10931_v54  ;;  %v5396_v7 = vadd.s32 %v11108_v38, %v11106_v5 }
 0x3d5   :  { %v11255_v28 = vsub.s32 %v5296_v41, %v5299_v53  ;;  %v5664_v1 = vsel %vm5657_vm11, %v5660_v15, %v5663_v19  ;;  %8024 = vcosq.f32 %v4908_v8  ;;  %v5220_v33 = vsel %vm11207_vm7, %v10748_v40, %v5217_v46  ;;  %v12042_v19 = vld [vmem:[#allocation9_spill] sm:$0xff] }
 0x3d6   :  { %v5115_v24 = vsel %vm5030_vm6, %v5114_v21, %v11035_v48  ;;  %v5665_v27 = vsel %vm3976_vm3, nan, %v5664_v1  ;;  %v5112_v30 = vxor.u32 2147483648, %v5111_v47  ;;  %v5414_v54 = vshrl.u32 %v5396_v7, %v5412_v32 }
 0x3d7   :  { %v5302_v63 = vsub.s32 0, %v11255_v28  ;;  %v7109_v5 = vmul.f32 1.4142135, %v5665_v27  ;;  %v5413_v38 = vshll.u32 %v11171_v23, %v5411_v57  ;;  %v5418_v41 = vshll.u32 %v5417_v44, 23 }
 0x3d8   :  { %vm5555_vm2 = vcmp.eq.s32.totalorder %v5553_v49, 0  ;;  %vm5558_vm5 = vcmp.eq.s32.totalorder %v5553_v49, 2  ;;  %vm5554_vm15 = vcmp.lt.s32.totalorder %v5553_v49, 2  ;;  %8026 = vsinq.f32 %v4908_v8 }
 0x3d9   :  { %v7618_v20 = vmin.u32 %v5302_v63, %v11255_v28  ;;  %7270 = vrot.lane.b32.xlu1 %v7109_v5, %s8075_s16  ;;  %v5557_v4 = vsel %vm5555_vm2, %v10394_v37, %v3877_v36  ;;  %v5560_v48 = vsel %vm5558_vm5, %v3880_v55, %v10403_v0  ;;  %v11277_v23 = vsel %vm11207_vm7, 0, %v5219_v56  ;;  %v12038_v36 = vld [vmem:[#allocation27_spill] sm:$0xff]  ;;  %v12039_v55 = vld [vmem:[#allocation28_spill] sm:$0xff] }
 0x3da   :  { %v11281_v57 = vsel %vm11227_vm8, 0, %v5115_v24  ;;  %v5561_v14 = vsel %vm5554_vm15, %v5557_v4, %v5560_v48  ;;  %v5415_v29 = vor.u32 %v5414_v54, %v5413_v38  ;;  %v4185_v52 = vadd.s32 3, %v12038_v36  ;;  %v12043_v56 = vld [vmem:[#allocation36_spill] sm:$0xff]  ;;  %v12044_v24 = vld [vmem:[#allocation19_spill] sm:$0xff] }
 0x3db   :  { %v5304_v6 = vclz %v7618_v20  ;;  %v5562_v17 = vsel %vm3872_vm1, nan, %v5561_v14  ;;  %8028 = vcosq.f32 %v5220_v33  ;;  %v5419_v37 = vor.u32 4788187, %v5418_v41 }
 0x3dc   :  { %v7108_v0 = vmul.f32 1.4142135, %v5562_v17  ;;  %v4189_v8 = vxor.u32 2147483648, %v12039_v55  ;;  %8030 = vsinq.f32 %v5220_v33  ;;  %v5113_v58 = vsel %vm5030_vm6, %v5112_v30, %v5111_v47 }
 0x3dd   :  { %v7619_v39 = vadd.s32 4294967294, %v5304_v6  ;;  %v4186_v26 = vand.u32 3, %v4185_v52  ;;  %v5426_v18 = vsub.s32 4, %v11151_v11  ;;  %v5292_v46 = vadd.s32 %v11181_v62, %v11187_v50 }
 0x3de   :  { %7268 = vrot.lane.b32.xlu0 %v7108_v0, %s8075_s16  ;;  %v4192_v21 = vxor.u32 2147483648, %v12040_v43  ;;  %v4081_v15 = vadd.s32 3, %v12041_v34  ;;  %v5422_v32 = vcvt.s32.f32 %v5415_v29  ;;  %v5322_v53 = vsub.s32 4, %v11231_v35 }
 0x3df   :  { %vm7620_vm3 = vcmp.lt.s32.totalorder %v7619_v39, 0  ;;  %vm4188_vm9 = vcmp.eq.s32.totalorder %v4186_v26, 0  ;;  %v5420_v44 = vand.u32 2147483647, %v5419_v37  ;;  %vm4184_vm7 = vweird.f32 %v12042_v19  ;;  %v12052_v19 = vld [vmem:[#allocation15_spill] sm:$0xff] }
 0x3e0   :  { %v5307_v47 = vsel %vm7620_vm3, 0, %v7619_v39  ;;  %v4190_v49 = vsel %vm4188_vm9, %v12040_v43, %v4189_v8  ;;  %vm5238_vm6 = vcmp.lt.s32.totalorder %v11012_v25, 0  ;;  %vm4191_vm13 = vcmp.eq.s32.totalorder %v4186_v26, 2 }
 0x3e1   :  { %v5308_v62 = vsub.s32 32, %v5307_v47  ;;  %v5312_v50 = vsub.s32 4294967266, %v5307_v47  ;;  %v4085_v7 = vxor.u32 2147483648, %v12043_v56  ;;  %vm4187_vm10 = vcmp.lt.s32.totalorder %v4186_v26, 2  ;;  %v12051_v26 = vld [vmem:[#allocation22_spill] sm:$0xff] }
 0x3e2   :  { %v4193_v1 = vsel %vm4191_vm13, %v4192_v21, %v12039_v55  ;;  %v4082_v33 = vand.u32 3, %v4081_v15  ;;  %v4088_v27 = vxor.u32 2147483648, %v12044_v24  ;;  %v11302_v30 = vpop.eup %8024  ;;  %v5862_v38 = vand.u32 3, %v12038_v36 }
 0x3e3   :  { %v5310_v54 = vshrl.u32 %v5292_v46, %v5308_v62  ;;  %v5313_v63 = vadd.s32 127, %v5312_v50  ;;  %v4194_v5 = vsel %vm4187_vm10, %v4190_v49, %v4193_v1  ;;  %vm5342_vm4 = vcmp.lt.s32.totalorder %v10965_v60, 0 }
 0x3e4   :  { %v5423_v41 = vmul.f32 %v5422_v32, %v5420_v44  ;;  %v12045_v20 = vand.u32 2147483647, %v11012_v25  ;;  %v5309_v48 = vshll.u32 %v11255_v28, %v5307_v47  ;;  %v4195_v14 = vsel %vm4184_vm7, nan, %v4194_v5 }
 0x3e5   :  { %vm4084_vm1 = vcmp.eq.s32.totalorder %v4082_v33, 0  ;;  %v5314_v29 = vshll.u32 %v5313_v63, 23  ;;  %v5447_v6 = vmul.f32 1.4142135, %v4195_v14  ;;  %vm4087_vm12 = vcmp.eq.s32.totalorder %v4082_v33, 2  ;;  %v11317_v37 = vpop.eup %8026 }
 0x3e6   :  { %vm11308_vm14 = vcmp.le.f32.partialorder %v12045_v20, 0.7853982  ;;  %v4086_v17 = vsel %vm4084_vm1, %v12044_v24, %v4085_v7  ;;  %v5311_v36 = vor.u32 %v5310_v54, %v5309_v48  ;;  %vm4083_vm0 = vcmp.lt.s32.totalorder %v4082_v33, 2 }
 0x3e7   :  { %v4089_v52 = vsel %vm4087_vm12, %v4088_v27, %v12043_v56  ;;  %vm5864_vm11 = vcmp.eq.s32.totalorder %v5862_v38, 0  ;;  %v12048_v0 = vand.u32 2147483647, %v10965_v60  ;;  %v5315_v39 = vor.u32 4788187, %v5314_v29  ;;  %7210 = vrot.lane.b32.xlu1 %v5447_v6, %s8074_s13  ;;  %v12053_v6 = vld [vmem:[#allocation24_spill] sm:$0xff] }
 0x3e8   :  { %vm4080_vm5 = vweird.f32 %v12051_v26  ;;  %v4090_v46 = vsel %vm4083_vm0, %v4086_v17, %v4089_v52  ;;  %v5866_v15 = vsel %vm5864_vm11, %v12040_v43, %v4189_v8  ;;  %v5116_v32 = vsel %vm11227_vm8, %v10817_v31, %v5113_v58  ;;  %v11334_v49 = vpop.eup %8028 }
 0x3e9   :  { %vm11321_vm2 = vcmp.le.f32.partialorder %v12048_v0, 0.7853982  ;;  %v4091_v44 = vsel %vm4080_vm5, nan, %v4090_v46  ;;  %vm5867_vm15 = vcmp.eq.s32.totalorder %v5862_v38, 2  ;;  %v5759_v47 = vand.u32 3, %v12041_v34  ;;  %v11337_v33 = vpop.eup %8030  ;;  %v12055_v46 = vld [vmem:[#allocation32_spill] sm:$0xff] }
 0x3ea   :  { %v5316_v62 = vand.u32 2147483647, %v5315_v39  ;;  %v5446_v50 = vmul.f32 1.4142135, %v4091_v44  ;;  %vm5863_vm3 = vcmp.lt.s32.totalorder %v5862_v38, 2  ;;  %v5869_v1 = vsel %vm5867_vm15, %v4192_v21, %v12039_v55 }
 0x3eb   :  { %v5318_v8 = vcvt.s32.f32 %v5311_v36  ;;  %v5323_v16 = vsel %vm5238_vm6, %v5322_v53, %v11231_v35  ;;  %v5870_v58 = vsel %vm5863_vm3, %v5866_v15, %v5869_v1  ;;  %vm5761_vm8 = vcmp.eq.s32.totalorder %v5759_v47, 0  ;;  %v12054_v36 = vld [vmem:[#allocation35_spill] sm:$0xff] }
 0x3ec   :  { %v5424_v43 = vxor.u32 2147483648, %v5423_v41  ;;  %7208 = vrot.lane.b32.xlu0 %v5446_v50, %s8074_s13  ;;  %v5871_v34 = vsel %vm4184_vm7, nan, %v5870_v58  ;;  %v5763_v54 = vsel %vm5761_vm8, %v12044_v24, %v4085_v7  ;;  %vm5764_vm9 = vcmp.eq.s32.totalorder %v5759_v47, 2 }
 0x3ed   :  { %v5319_v63 = vmul.f32 %v5318_v8, %v5316_v62  ;;  %v7111_v55 = vmul.f32 1.4142135, %v5871_v34  ;;  %vm5760_vm13 = vcmp.lt.s32.totalorder %v5759_v47, 2  ;;  %v5766_v21 = vsel %vm5764_vm9, %v4088_v27, %v12043_v56  ;;  %v12056_v47 = vld [vmem:[#allocation31_spill] sm:$0xff] }
 0x3ee   :  { %v5427_v35 = vsel %vm5342_vm4, %v5426_v18, %v11151_v11  ;;  %v5325_v53 = vsel %vm11308_vm14, 0, %v5323_v16  ;;  %v5767_v5 = vsel %vm5760_vm13, %v5763_v54, %v5766_v21  ;;  %v4393_v38 = vadd.s32 3, %v12052_v19 }
 0x3ef   :  { %8032 = vcosq.f32 %v5116_v32  ;;  %7274 = vrot.lane.b32.xlu1 %v7111_v55, %s8075_s16  ;;  %v5768_v7 = vsel %vm4080_vm5, nan, %v5767_v5  ;;  %v4397_v56 = vxor.u32 2147483648, %v10781_v3  ;;  %v4400_v24 = vxor.u32 2147483648, %v10667_v22  ;;  %v12057_v5 = vld [vmem:[#allocation42_spill] sm:$0xff] }
 0x3f0   :  { %8034 = vsinq.f32 %v5116_v32  ;;  %v7110_v27 = vmul.f32 1.4142135, %v5768_v7  ;;  %v4394_v20 = vand.u32 3, %v4393_v38  ;;  %v4289_v11 = vadd.s32 3, %v10721_v10 }
 0x3f1   :  { %v5425_v18 = vsel %vm5342_vm4, %v5424_v43, %v5423_v41  ;;  %v11365_v48 = vsel %vm11321_vm2, 0, %v5427_v35  ;;  %v5320_v14 = vxor.u32 2147483648, %v5319_v63  ;;  %v5329_v29 = vadd.s32 3, %v5325_v53 }
 0x3f2   :  { %7272 = vrot.lane.b32.xlu0 %v7110_v27, %s8075_s16  ;;  %vm4396_vm7 = vcmp.eq.s32.totalorder %v4394_v20, 0  ;;  %vm4399_vm10 = vcmp.eq.s32.totalorder %v4394_v20, 2  ;;  %v4293_v17 = vxor.u32 2147483648, %v12053_v6  ;;  %v4296_v52 = vxor.u32 2147483648, %v12054_v36 }
 0x3f3   :  { %vm4395_vm1 = vcmp.lt.s32.totalorder %v4394_v20, 2  ;;  %v4398_v0 = vsel %vm4396_vm7, %v10667_v22, %v4397_v56  ;;  %v4401_v39 = vsel %vm4399_vm10, %v4400_v24, %v10781_v3  ;;  %v4290_v41 = vand.u32 3, %v4289_v11  ;;  %v12059_v20 = vld [vmem:[#allocation40_spill] sm:$0xff] }
 0x3f4   :  { %v5428_v26 = vsel %vm11321_vm2, %v10965_v60, %v5425_v18  ;;  %vm4392_vm4 = vweird.f32 %v12055_v46  ;;  %v4402_v15 = vsel %vm4395_vm1, %v4398_v0, %v4401_v39  ;;  %v6068_v32 = vand.u32 3, %v12052_v19 }
 0x3f5   :  { %v4403_v44 = vsel %vm4392_vm4, nan, %v4402_v15  ;;  %vm4288_vm12 = vweird.f32 %v12056_v47  ;;  %vm4292_vm0 = vcmp.eq.s32.totalorder %v4290_v41, 0  ;;  %vm4295_vm11 = vcmp.eq.s32.totalorder %v4290_v41, 2  ;;  %v12063_v47 = vld [vmem:[#allocation12_spill] sm:$0xff] }
 0x3f6   :  { %v5449_v62 = vmul.f32 1.4142135, %v4403_v44  ;;  %vm4291_vm5 = vcmp.lt.s32.totalorder %v4290_v41, 2  ;;  %v4294_v50 = vsel %vm4292_vm0, %v12054_v36, %v4293_v17  ;;  %v4297_v1 = vsel %vm4295_vm11, %v4296_v52, %v12053_v6 }
 0x3f7   :  { %v5321_v28 = vsel %vm5238_vm6, %v5320_v14, %v5319_v63  ;;  %v4298_v8 = vsel %vm4291_vm5, %v4294_v50, %v4297_v1  ;;  %vm6070_vm2 = vcmp.eq.s32.totalorder %v6068_v32, 0  ;;  %vm6073_vm15 = vcmp.eq.s32.totalorder %v6068_v32, 2  ;;  %v12064_v50 = vld [vmem:[#allocation43_spill] sm:$0xff] }
 0x3f8   :  { %7214 = vrot.lane.b32.xlu1 %v5449_v62, %s8074_s13  ;;  %v4299_v16 = vsel %vm4288_vm12, nan, %v4298_v8  ;;  %vm6069_vm3 = vcmp.lt.s32.totalorder %v6068_v32, 2  ;;  %v6072_v58 = vsel %vm6070_vm2, %v10667_v22, %v4397_v56  ;;  %v6075_v43 = vsel %vm6073_vm15, %v4400_v24, %v10781_v3  ;;  %v12058_v3 = vld [vmem:[#allocation45_spill] sm:$0xff] }
 0x3f9   :  { %v11389_v34 = vand.u32 3, %v5325_v53  ;;  %v5448_v54 = vmul.f32 1.4142135, %v4299_v16  ;;  %v6076_v55 = vsel %vm6069_vm3, %v6072_v58, %v6075_v43  ;;  %v5965_v21 = vand.u32 3, %v10721_v10 }
 0x3fa   :  { %8036 = vcosq.f32 %v5428_v26  ;;  %v5324_v63 = vsel %vm11308_vm14, %v11012_v25, %v5321_v28  ;;  %v6077_v35 = vsel %vm4392_vm4, nan, %v6076_v55  ;;  %v4601_v19 = vadd.s32 3, %v12057_v5 }
 0x3fb   :  { %7212 = vrot.lane.b32.xlu0 %v5448_v54, %s8074_s13  ;;  %v7113_v22 = vmul.f32 1.4142135, %v6077_v35  ;;  %vm5967_vm6 = vcmp.eq.s32.totalorder %v5965_v21, 0  ;;  %vm5970_vm8 = vcmp.eq.s32.totalorder %v5965_v21, 2  ;;  %v4605_v53 = vxor.u32 2147483648, %v12058_v3 }
 0x3fc   :  { %v11400_v38 = vpop.eup %8032  ;;  %vm5966_vm9 = vcmp.lt.s32.totalorder %v5965_v21, 2  ;;  %v5969_v10 = vsel %vm5967_vm6, %v12054_v36, %v4293_v17  ;;  %v5972_v4 = vsel %vm5970_vm8, %v4296_v52, %v12053_v6  ;;  %v4602_v7 = vand.u32 3, %v4601_v19  ;;  %v12060_v36 = vld [vmem:[#allocation20_spill] sm:$0xff]  ;;  %v12061_v52 = vld [vmem:[#allocation38_spill] sm:$0xff] }
 0x3fd   :  { %v11404_v56 = vpop.eup %8034  ;;  %8038 = vsinq.f32 %v5428_v26  ;;  %v11406_v24 = vand.u32 3, %v5329_v29  ;;  %7278 = vrot.lane.b32.xlu1 %v7113_v22, %s8075_s16  ;;  %v5973_v27 = vsel %vm5966_vm9, %v5969_v10, %v5972_v4  ;;  %v4608_v11 = vxor.u32 2147483648, %v12059_v20  ;;  %v12062_v26 = vld [vmem:[#allocation37_spill] sm:$0xff] }
 0x3fe   :  { %8040 = vcosq.f32 %v5324_v63  ;;  %v5974_v18 = vsel %vm4288_vm12, nan, %v5973_v27  ;;  %vm4604_vm14 = vcmp.eq.s32.totalorder %v4602_v7, 0  ;;  %vm4607_vm13 = vcmp.eq.s32.totalorder %v4602_v7, 2 }
 0x3ff   :  { %v7112_v14 = vmul.f32 1.4142135, %v5974_v18  ;;  %vm4603_vm7 = vcmp.lt.s32.totalorder %v4602_v7, 2  ;;  %v4606_v6 = vsel %vm4604_vm14, %v12059_v20, %v4605_v53  ;;  %v4609_v17 = vsel %vm4607_vm13, %v4608_v11, %v12058_v3 }
 0x400   :  { %vm4600_vm10 = vweird.f32 %v12060_v36  ;;  %v4610_v29 = vsel %vm4603_vm7, %v4606_v6, %v4609_v17  ;;  %v4497_v0 = vadd.s32 3, %v12061_v52  ;;  %v4501_v39 = vxor.u32 2147483648, %v11058_v13 }
 0x401   :  { %7276 = vrot.lane.b32.xlu0 %v7112_v14, %s8075_s16  ;;  %v4611_v41 = vsel %vm4600_vm10, nan, %v4610_v29  ;;  %v4504_v46 = vxor.u32 2147483648, %v12062_v26  ;;  %v6274_v15 = vand.u32 3, %v12057_v5  ;;  %v6171_v32 = vand.u32 3, %v12061_v52  ;;  %v12065_v14 = vld [vmem:[#allocation29_spill] sm:$0xff]  ;;  %v12066_v29 = vld [vmem:[#allocation39_spill] sm:$0xff] }
 0x402   :  { %8042 = vsinq.f32 %v5324_v63  ;;  %v5451_v44 = vmul.f32 1.4142135, %v4611_v41  ;;  %vm4496_vm1 = vweird.f32 %v12063_v47  ;;  %v4498_v62 = vand.u32 3, %v4497_v0 }
 0x403   :  { %vm6275_vm4 = vcmp.lt.s32.totalorder %v6274_v15, 2  ;;  %vm6276_vm12 = vcmp.eq.s32.totalorder %v6274_v15, 0  ;;  %vm6279_vm0 = vcmp.eq.s32.totalorder %v6274_v15, 2  ;;  %v4809_v1 = vadd.s32 3, %v12064_v50  ;;  %v12068_v15 = vld [vmem:[#allocation41_spill] sm:$0xff] }
 0x404   :  { %7218 = vrot.lane.b32.xlu1 %v5451_v44, %s8074_s13  ;;  %vm4499_vm11 = vcmp.lt.s32.totalorder %v4498_v62, 2  ;;  %vm4500_vm5 = vcmp.eq.s32.totalorder %v4498_v62, 0  ;;  %vm4503_vm2 = vcmp.eq.s32.totalorder %v4498_v62, 2  ;;  %v6278_v28 = vsel %vm6276_vm12, %v12059_v20, %v4605_v53 }
 0x405   :  { %v4502_v8 = vsel %vm4500_vm5, %v12062_v26, %v4501_v39  ;;  %v4505_v16 = vsel %vm4503_vm2, %v4504_v46, %v11058_v13  ;;  %v6281_v58 = vsel %vm6279_vm0, %v4608_v11, %v12058_v3  ;;  %vm6172_vm15 = vcmp.lt.s32.totalorder %v6171_v32, 2 }
 0x406   :  { %v4506_v43 = vsel %vm4499_vm11, %v4502_v8, %v4505_v16  ;;  %v6282_v54 = vsel %vm6275_vm4, %v6278_v28, %v6281_v58  ;;  %vm6173_vm3 = vcmp.eq.s32.totalorder %v6171_v32, 0  ;;  %vm6176_vm6 = vcmp.eq.s32.totalorder %v6171_v32, 2 }
 0x407   :  { %v11430_v55 = vpop.eup %8036  ;;  %v4507_v21 = vsel %vm4496_vm1, nan, %v4506_v43  ;;  %v6283_v63 = vsel %vm4600_vm10, nan, %v6282_v54  ;;  %v6175_v35 = vsel %vm6173_vm3, %v12062_v26, %v4501_v39  ;;  %v6178_v5 = vsel %vm6176_vm6, %v4504_v46, %v11058_v13  ;;  %v12067_v26 = vld [vmem:[#allocation33_spill] sm:$0xff] }
 0x408   :  { %v5450_v19 = vmul.f32 1.4142135, %v4507_v21  ;;  %v7115_v22 = vmul.f32 1.4142135, %v6283_v63  ;;  %v6179_v3 = vsel %vm6172_vm15, %v6175_v35, %v6178_v5  ;;  %v4810_v53 = vand.u32 3, %v4809_v1 }
 0x409   :  { %v6180_v10 = vsel %vm4496_vm1, nan, %v6179_v3  ;;  %vm4808_vm8 = vweird.f32 %v10345_v59  ;;  %v4813_v4 = vxor.u32 2147483648, %v11082_v2  ;;  %v4816_v7 = vxor.u32 2147483648, %v11080_v61 }
 0x40a   :  { %v11443_v27 = vpop.eup %8038  ;;  %7216 = vrot.lane.b32.xlu0 %v5450_v19, %s8074_s13  ;;  %7282 = vrot.lane.b32.xlu1 %v7115_v22, %s8075_s16  ;;  %v7114_v13 = vmul.f32 1.4142135, %v6180_v10  ;;  %vm4811_vm9 = vcmp.lt.s32.totalorder %v4810_v53, 2  ;;  %vm4812_vm14 = vcmp.eq.s32.totalorder %v4810_v53, 0  ;;  %vm4815_vm13 = vcmp.eq.s32.totalorder %v4810_v53, 2  ;;  %v12069_v19 = vld [vmem:[#allocation30_spill] sm:$0xff] }
 0x40b   :  { %v11447_v20 = vpop.eup %8040  ;;  %v4814_v11 = vsel %vm4812_vm14, %v11080_v61, %v4813_v4  ;;  %v4817_v18 = vsel %vm4815_vm13, %v4816_v7, %v11082_v2  ;;  %v4705_v6 = vadd.s32 3, %v12065_v14  ;;  %v4709_v17 = vxor.u32 2147483648, %v11093_v9 }
 0x40c   :  { %v4818_v36 = vsel %vm4811_vm9, %v4814_v11, %v4817_v18  ;;  %v4712_v52 = vxor.u32 2147483648, %v12066_v29  ;;  %v6480_v0 = vand.u32 3, %v12064_v50  ;;  %v6377_v39 = vand.u32 3, %v12065_v14  ;;  %v11488_v14 = vpop.permute.xlu1 %7142 }
 0x40d   :  { %v4819_v41 = vsel %vm4808_vm8, nan, %v4818_v36  ;;  %vm4704_vm7 = vweird.f32 %v12067_v26  ;;  %v4706_v46 = vand.u32 3, %v4705_v6  ;;  %v5017_v32 = vadd.s32 3, %v12068_v15 }
 0x40e   :  { %7280 = vrot.lane.b32.xlu0 %v7114_v13, %s8075_s16  ;;  %v5453_v44 = vmul.f32 1.4142135, %v4819_v41  ;;  %vm6481_vm10 = vcmp.lt.s32.totalorder %v6480_v0, 2  ;;  %vm6482_vm1 = vcmp.eq.s32.totalorder %v6480_v0, 0  ;;  %vm6485_vm4 = vcmp.eq.s32.totalorder %v6480_v0, 2 }
 0x40f   :  { %v11461_v47 = vpop.eup %8042  ;;  %vm4707_vm12 = vcmp.lt.s32.totalorder %v4706_v46, 2  ;;  %vm4708_vm0 = vcmp.eq.s32.totalorder %v4706_v46, 0  ;;  %vm4711_vm11 = vcmp.eq.s32.totalorder %v4706_v46, 2  ;;  %v6484_v62 = vsel %vm6482_vm1, %v11080_v61, %v4813_v4  ;;  %v11500_v46 = vpop.permute.xlu0 %7140 }
 0x410   :  { %7222 = vrot.lane.b32.xlu1 %v5453_v44, %s8074_s13  ;;  %v4710_v50 = vsel %vm4708_vm0, %v12066_v29, %v4709_v17  ;;  %v4713_v1 = vsel %vm4711_vm11, %v4712_v52, %v11093_v9  ;;  %v6487_v28 = vsel %vm6485_vm4, %v4816_v7, %v11082_v2  ;;  %vm6378_vm5 = vcmp.lt.s32.totalorder %v6377_v39, 2 }
 0x411   :  { %v4714_v8 = vsel %vm4707_vm12, %v4710_v50, %v4713_v1  ;;  %v6488_v16 = vsel %vm6481_vm10, %v6484_v62, %v6487_v28  ;;  %vm6379_vm2 = vcmp.eq.s32.totalorder %v6377_v39, 0  ;;  %vm6382_vm15 = vcmp.eq.s32.totalorder %v6377_v39, 2  ;;  %v11508_v62 = vpop.permute.xlu1 %7146 }
 0x412   :  { %v4715_v58 = vsel %vm4704_vm7, nan, %v4714_v8  ;;  %v6489_v43 = vsel %vm4808_vm8, nan, %v6488_v16  ;;  %v6381_v61 = vsel %vm6379_vm2, %v12066_v29, %v4709_v17  ;;  %v6384_v54 = vsel %vm6382_vm15, %v4712_v52, %v11093_v9 }
 0x413   :  { %v5452_v21 = vmul.f32 1.4142135, %v4715_v58  ;;  %v7117_v63 = vmul.f32 1.4142135, %v6489_v43  ;;  %v6385_v35 = vsel %vm6378_vm5, %v6381_v61, %v6384_v54  ;;  %v5018_v5 = vand.u32 3, %v5017_v32 }
 0x414   :  { %v6386_v2 = vsel %vm4704_vm7, nan, %v6385_v35  ;;  %vm5016_vm3 = vweird.f32 %v12069_v19  ;;  %v5021_v22 = vxor.u32 2147483648, %v11167_v51  ;;  %v5024_v3 = vxor.u32 2147483648, %v11160_v45 }
 0x415   :  { %7220 = vrot.lane.b32.xlu0 %v5452_v21, %s8074_s13  ;;  %7286 = vrot.lane.b32.xlu1 %v7117_v63, %s8075_s16  ;;  %v7116_v59 = vmul.f32 1.4142135, %v6386_v2  ;;  %vm5019_vm6 = vcmp.lt.s32.totalorder %v5018_v5, 2  ;;  %vm5020_vm8 = vcmp.eq.s32.totalorder %v5018_v5, 0  ;;  %vm5023_vm9 = vcmp.eq.s32.totalorder %v5018_v5, 2  ;;  %v11524_v5 = vpop.permute.xlu0 %7144 }
 0x416   :  { %v5022_v9 = vsel %vm5020_vm8, %v11160_v45, %v5021_v22  ;;  %v5025_v53 = vsel %vm5023_vm9, %v5024_v3, %v11167_v51  ;;  %v4913_v10 = vadd.s32 3, %v11116_v12  ;;  %v4917_v4 = vxor.u32 2147483648, %v11317_v37 }
 0x417   :  { %v5026_v7 = vsel %vm5019_vm6, %v5022_v9, %v5025_v53  ;;  %v4920_v13 = vxor.u32 2147483648, %v11302_v30  ;;  %v6686_v11 = vand.u32 3, %v12068_v15  ;;  %v6583_v18 = vand.u32 3, %v11116_v12 }
 0x418   :  { %v5027_v6 = vsel %vm5016_vm3, nan, %v5026_v7  ;;  %vm4912_vm14 = vweird.f32 %v10682_v42  ;;  %v4914_v17 = vand.u32 3, %v4913_v10  ;;  %v5225_v36 = vadd.s32 3, %v11277_v23 }
 0x419   :  { %7284 = vrot.lane.b32.xlu0 %v7116_v59, %s8075_s16  ;;  %v5455_v29 = vmul.f32 1.4142135, %v5027_v6  ;;  %vm6687_vm13 = vcmp.lt.s32.totalorder %v6686_v11, 2  ;;  %vm6688_vm7 = vcmp.eq.s32.totalorder %v6686_v11, 0  ;;  %vm6691_vm10 = vcmp.eq.s32.totalorder %v6686_v11, 2 }
 0x41a   :  { %vm4915_vm1 = vcmp.lt.s32.totalorder %v4914_v17, 2  ;;  %vm4916_vm4 = vcmp.eq.s32.totalorder %v4914_v17, 0  ;;  %vm4919_vm12 = vcmp.eq.s32.totalorder %v4914_v17, 2  ;;  %v6690_v12 = vsel %vm6688_vm7, %v11160_v45, %v5021_v22 }
 0x41b   :  { %7226 = vrot.lane.b32.xlu1 %v5455_v29, %s8074_s13  ;;  %v4918_v52 = vsel %vm4916_vm4, %v11302_v30, %v4917_v4  ;;  %v4921_v0 = vsel %vm4919_vm12, %v4920_v13, %v11317_v37  ;;  %v6693_v39 = vsel %vm6691_vm10, %v5024_v3, %v11167_v51  ;;  %vm6584_vm0 = vcmp.lt.s32.totalorder %v6583_v18, 2  ;;  %v11530_v3 = vpop.permute.xlu1 %7150 }
 0x41c   :  { %v4922_v41 = vsel %vm4915_vm1, %v4918_v52, %v4921_v0  ;;  %v6694_v26 = vsel %vm6687_vm13, %v6690_v12, %v6693_v39  ;;  %vm6585_vm11 = vcmp.eq.s32.totalorder %v6583_v18, 0  ;;  %vm6588_vm5 = vcmp.eq.s32.totalorder %v6583_v18, 2  ;;  %v11544_v18 = vpop.permute.xlu0 %7148 }
 0x41d   :  { %v4923_v15 = vsel %vm4912_vm14, nan, %v4922_v41  ;;  %v6695_v45 = vsel %vm5016_vm3, nan, %v6694_v26  ;;  %v6587_v32 = vsel %vm6585_vm11, %v11302_v30, %v4917_v4  ;;  %v6590_v44 = vsel %vm6588_vm5, %v4920_v13, %v11317_v37 }
 0x41e   :  { %v5454_v51 = vmul.f32 1.4142135, %v4923_v15  ;;  %v7119_v50 = vmul.f32 1.4142135, %v6695_v45  ;;  %v6591_v1 = vsel %vm6584_vm0, %v6587_v32, %v6590_v44  ;;  %v5226_v28 = vand.u32 3, %v5225_v36 }
 0x41f   :  { %v6592_v8 = vsel %vm4912_vm14, nan, %v6591_v1  ;;  %vm5224_vm2 = vweird.f32 %v10748_v40  ;;  %v5229_v16 = vxor.u32 2147483648, %v11337_v33  ;;  %v5232_v58 = vxor.u32 2147483648, %v11334_v49  ;;  %v11546_v29 = vpop.permute.xlu1 %7154 }
 0x420   :  { %7224 = vrot.lane.b32.xlu0 %v5454_v51, %s8074_s13  ;;  %7290 = vrot.lane.b32.xlu1 %v7119_v50, %s8075_s16  ;;  %v7118_v30 = vmul.f32 1.4142135, %v6592_v8  ;;  %vm5227_vm15 = vcmp.lt.s32.totalorder %v5226_v28, 2  ;;  %vm5228_vm3 = vcmp.eq.s32.totalorder %v5226_v28, 0  ;;  %vm5231_vm6 = vcmp.eq.s32.totalorder %v5226_v28, 2  ;;  %v11567_v45 = vpop.permute.xlu0 %7152 }
 0x421   :  { %v5230_v37 = vsel %vm5228_vm3, %v11334_v49, %v5229_v16  ;;  %v5233_v43 = vsel %vm5231_vm6, %v5232_v58, %v11337_v33  ;;  %v5121_v42 = vadd.s32 3, %v11281_v57  ;;  %v5125_v61 = vxor.u32 2147483648, %v11404_v56 }
 0x422   :  { %v5234_v54 = vsel %vm5227_vm15, %v5230_v37, %v5233_v43  ;;  %v5128_v21 = vxor.u32 2147483648, %v11400_v38  ;;  %v6892_v63 = vand.u32 3, %v11277_v23  ;;  %v6789_v35 = vand.u32 3, %v11281_v57 }
 0x423   :  { %v5235_v2 = vsel %vm5224_vm2, nan, %v5234_v54  ;;  %vm5120_vm8 = vweird.f32 %v10817_v31  ;;  %v5122_v19 = vand.u32 3, %v5121_v42  ;;  %v5433_v22 = vadd.s32 3, %v11365_v48  ;;  %v11573_v1 = vpop.permute.xlu1 %7158 }
 0x424   :  { %7288 = vrot.lane.b32.xlu0 %v7118_v30, %s8075_s16  ;;  %v5457_v59 = vmul.f32 1.4142135, %v5235_v2  ;;  %vm6893_vm9 = vcmp.lt.s32.totalorder %v6892_v63, 2  ;;  %vm6894_vm14 = vcmp.eq.s32.totalorder %v6892_v63, 0  ;;  %vm6897_vm13 = vcmp.eq.s32.totalorder %v6892_v63, 2  ;;  %v11590_v42 = vpop.permute.xlu0 %7156  ;;  %v12070_v63 = vld [vmem:[#allocation47_spill] sm:$0xff] }
 0x425   :  { %vm5123_vm7 = vcmp.lt.s32.totalorder %v5122_v19, 2  ;;  %vm5124_vm10 = vcmp.eq.s32.totalorder %v5122_v19, 0  ;;  %vm5127_vm1 = vcmp.eq.s32.totalorder %v5122_v19, 2  ;;  %v6896_v23 = vsel %vm6894_vm14, %v11334_v49, %v5229_v16 }
 0x426   :  { %7230 = vrot.lane.b32.xlu1 %v5457_v59, %s8074_s13  ;;  %v5126_v57 = vsel %vm5124_vm10, %v11400_v38, %v5125_v61  ;;  %v5129_v9 = vsel %vm5127_vm1, %v5128_v21, %v11404_v56  ;;  %v6899_v53 = vsel %vm6897_vm13, %v5232_v58, %v11337_v33  ;;  %vm6790_vm4 = vcmp.lt.s32.totalorder %v6789_v35, 2 }
 0x427   :  { %v5130_v10 = vsel %vm5123_vm7, %v5126_v57, %v5129_v9  ;;  %v6900_v4 = vsel %vm6893_vm9, %v6896_v23, %v6899_v53  ;;  %vm6791_vm12 = vcmp.eq.s32.totalorder %v6789_v35, 0  ;;  %vm6794_vm0 = vcmp.eq.s32.totalorder %v6789_v35, 2  ;;  %v12071_v57 = vld [vmem:[#allocation48_spill] sm:$0xff] }
 0x428   :  { %v5131_v7 = vsel %vm5120_vm8, nan, %v5130_v10  ;;  %v6901_v13 = vsel %vm5224_vm2, nan, %v6900_v4  ;;  %v6793_v49 = vsel %vm6791_vm12, %v11400_v38, %v5125_v61  ;;  %v6796_v11 = vsel %vm6794_vm0, %v5128_v21, %v11404_v56 }
 0x429   :  { %v5456_v6 = vmul.f32 1.4142135, %v5131_v7  ;;  %v7121_v17 = vmul.f32 1.4142135, %v6901_v13  ;;  %v6797_v33 = vsel %vm6790_vm4, %v6793_v49, %v6796_v11  ;;  %v5434_v36 = vand.u32 3, %v5433_v22 }
 0x42a   :  { %v6798_v12 = vsel %vm5120_vm8, nan, %v6797_v33  ;;  %vm5432_vm11 = vweird.f32 %v10965_v60  ;;  %v5437_v40 = vxor.u32 2147483648, %v11443_v27  ;;  %v5440_v52 = vxor.u32 2147483648, %v11430_v55 }
 0x42b   :  { %7228 = vrot.lane.b32.xlu0 %v5456_v6, %s8074_s13  ;;  %7294 = vrot.lane.b32.xlu1 %v7121_v17, %s8075_s16  ;;  %v7120_v38 = vmul.f32 1.4142135, %v6798_v12  ;;  %vm5436_vm5 = vcmp.eq.s32.totalorder %v5434_v36, 0  ;;  %vm5439_vm2 = vcmp.eq.s32.totalorder %v5434_v36, 2  ;;  %vm5328_vm15 = vweird.f32 %v11012_v25  ;;  %v12073_v17 = vld [vmem:[#allocation5_spill] sm:$0xff] }
 0x42c   :  { %vm5435_vm3 = vcmp.lt.s32.totalorder %v5434_v36, 2  ;;  %v5438_v56 = vsel %vm5436_vm5, %v11430_v55, %v5437_v40  ;;  %v5441_v31 = vsel %vm5439_vm2, %v5440_v52, %v11443_v27  ;;  %vm5331_vm6 = vcmp.lt.s32.totalorder %v11406_v24, 2 }
 0x42d   :  { %v5442_v0 = vsel %vm5435_vm3, %v5438_v56, %v5441_v31  ;;  %vm5332_vm8 = vcmp.eq.s32.totalorder %v11406_v24, 0  ;;  %v5333_v39 = vxor.u32 2147483648, %v11461_v47  ;;  %v5336_v41 = vxor.u32 2147483648, %v11447_v20 }
 0x42e   :  { %v5443_v26 = vsel %vm5432_vm11, nan, %v5442_v0  ;;  %vm5335_vm9 = vcmp.eq.s32.totalorder %v11406_v24, 2  ;;  %v7098_v15 = vand.u32 3, %v11365_v48  ;;  %vm6997_vm14 = vcmp.eq.s32.totalorder %v11389_v34, 0  ;;  %v12074_v0 = vld [vmem:[#allocation11_spill] sm:$0xff] }
 0x42f   :  { %7292 = vrot.lane.b32.xlu0 %v7120_v38, %s8075_s16  ;;  %v5459_v32 = vmul.f32 1.4142135, %v5443_v26  ;;  %v5334_v44 = vsel %vm5332_vm8, %v11447_v20, %v5333_v39  ;;  %v5337_v51 = vsel %vm5335_vm9, %v5336_v41, %v11461_v47  ;;  %v6999_v50 = vsel %vm6997_vm14, %v11447_v20, %v5333_v39 }
 0x430   :  { %v5338_v28 = vsel %vm5331_vm6, %v5334_v44, %v5337_v51  ;;  %vm7099_vm13 = vcmp.lt.s32.totalorder %v7098_v15, 2  ;;  %vm7100_vm7 = vcmp.eq.s32.totalorder %v7098_v15, 0  ;;  %vm7103_vm10 = vcmp.eq.s32.totalorder %v7098_v15, 2 }
 0x431   :  { %7234 = vrot.lane.b32.xlu1 %v5459_v32, %s8074_s13  ;;  %v5339_v48 = vsel %vm5328_vm15, nan, %v5338_v28  ;;  %v7102_v8 = vsel %vm7100_vm7, %v11430_v55, %v5437_v40  ;;  %v7105_v16 = vsel %vm7103_vm10, %v5440_v52, %v11443_v27  ;;  %vm7000_vm1 = vcmp.eq.s32.totalorder %v11389_v34, 2  ;;  %v11592_v27 = vpop.permute.xlu1 %7162  ;;  %v12075_v32 = vld [vmem:[#allocation18_spill] sm:$0xff] }
 0x432   :  { %v5458_v20 = vmul.f32 1.4142135, %v5339_v48  ;;  %v7106_v58 = vsel %vm7099_vm13, %v7102_v8, %v7105_v16  ;;  %vm6996_vm4 = vcmp.lt.s32.totalorder %v11389_v34, 2  ;;  %v7002_v24 = vsel %vm7000_vm1, %v5336_v41, %v11461_v47  ;;  %v11596_v34 = vpop.permute.xlu0 %7160  ;;  %v12076_v16 = vld [vmem:[#allocation17_spill] sm:$0xff] }
 0x433   :  { %v7107_v30 = vsel %vm5432_vm11, nan, %v7106_v58  ;;  %v7003_v37 = vsel %vm6996_vm4, %v6999_v50, %v7002_v24  ;;  %vm7316_vm12 = vcmask 261120   ;;  %v1892_v35 = vmul.f32 1.4142135, %v12070_v63 }
 0x434   :  { %7232 = vrot.lane.b32.xlu0 %v5458_v20, %s8074_s13  ;;  %v7123_v43 = vmul.f32 1.4142135, %v7107_v30  ;;  %v7004_v55 = vsel %vm5328_vm15, nan, %v7003_v37  ;;  %vm7333_vm0 = vcmask 523264   ;;  %vm7350_vm11 = vcmask 785408   ;;  %v12077_v37 = vld [vmem:[#allocation10_spill] sm:$0xff] }
 0x435   :  { %v7122_v61 = vmul.f32 1.4142135, %v7004_v55  ;;  %v11598_v60 = vpop.permute.xlu1 %7166  ;;  %v7318_v2 = vsel %vm7316_vm12, %v1892_v35, %v11488_v14  ;;  %v1891_v9 = vmul.f32 1.4142135, %v12071_v57  ;;  %v12072_v14 = vld [vmem:[#allocation8_spill] sm:$0xff] }
 0x436   :  { %7298 = vrot.lane.b32.xlu1 %v7123_v43, %s8075_s16  ;;  %v11600_v47 = vpop.permute.xlu0 %7164  ;;  %v1894_v49 = vmul.f32 1.4142135, %v12072_v14  ;;  %v1893_v33 = vmul.f32 1.4142135, %v12073_v17  ;;  %v1895_v44 = vmul.f32 1.4142135, %v12075_v32 }
 0x437   :  { %v7317_v53 = vsel %vm7316_vm12, %v1891_v9, %v11500_v46  ;;  %v1897_v43 = vmul.f32 1.4142135, %v12077_v37  ;;  %v12079_v57 = vld [vmem:[#allocation16_spill] sm:$0xff] }
 0x438   :  { %7296 = vrot.lane.b32.xlu0 %v7122_v61, %s8075_s16  ;;  %v7320_v6 = vsel %vm7316_vm12, %v1894_v49, %v11508_v62  ;;  %v7319_v40 = vsel %vm7316_vm12, %v1893_v33, %v11524_v5  ;;  %v1896_v62 = vmul.f32 1.4142135, %v12074_v0  ;;  %v7321_v51 = vsel %vm7316_vm12, %v1895_v44, %v11544_v18  ;;  %v12081_v33 = vld [vmem:[#allocation7_spill] sm:$0xff] }
 0x439   :  { %v11602_v54 = vpop.permute.xlu1 %7170  ;;  %v7323_v55 = vsel %vm7316_vm12, %v1897_v43, %v11567_v45  ;;  %v1899_v9 = vmul.f32 1.4142135, %v12079_v57 }
 0x43a   :  { %v11604_v25 = vpop.permute.xlu0 %7168  ;;  %v7322_v41 = vsel %vm7316_vm12, %v1896_v62, %v11530_v3  ;;  %v1898_v3 = vmul.f32 1.4142135, %v12076_v16 }
 0x43c   :  { %v7324_v20 = vsel %vm7316_vm12, %v1898_v3, %v11546_v29  ;;  %v12078_v29 = vld [vmem:[#allocation6_spill] sm:$0xff] }
 0x440   :  { %v7207_v21 = vpop.permute.xlu1 %7206 }
 0x441   :  { %v7335_v22 = vsel %vm7333_vm0, %v7318_v2, %v7207_v21  ;;  %v1900_v2 = vmul.f32 1.4142135, %v12078_v29 }
 0x445   :  { %v7205_v19 = vpop.permute.xlu0 %7204 }
 0x446   :  { %v7334_v10 = vsel %vm7333_vm0, %v7317_v53, %v7205_v19  ;;  %v7326_v19 = vsel %vm7316_vm12, %v1900_v2, %v11573_v1  ;;  %v7325_v53 = vsel %vm7316_vm12, %v1899_v9, %v11590_v42  ;;  %v12080_v1 = vld [vmem:[#allocation13_spill] sm:$0xff] }
 0x447   :  { %v1902_v14 = vmul.f32 1.4142135, %v12080_v1 }
 0x449   :  { %v7328_v49 = vsel %vm7316_vm12, %v1902_v14, %v11592_v27  ;;  %v12082_v27 = vld [vmem:[#allocation21_spill] sm:$0xff] }
 0x44b   :  { %v7271_v59 = vpop.permute.xlu1 %7270 }
 0x44c   :  { %v7352_v23 = vsel %vm7350_vm11, %v7335_v22, %v7271_v59 }
 0x44d   :  { %7368 = vst [vmem:[#allocation2 + $0x8] sm:$0xff] %v7352_v23 }
 0x450   :  { %v7269_v4 = vpop.permute.xlu0 %7268 }
 0x451   :  { %v7351_v7 = vsel %vm7350_vm11, %v7334_v10, %v7269_v4 }
 0x452   :  { %7367 = vst [vmem:[#allocation2] sm:$0xff] %v7351_v7 }
 0x459   :  { %v7211_v13 = vpop.permute.xlu1 %7210 }
 0x45a   :  { %v7337_v36 = vsel %vm7333_vm0, %v7320_v6, %v7211_v13 }
 0x45e   :  { %v7209_v11 = vpop.permute.xlu0 %7208 }
 0x45f   :  { %v7336_v52 = vsel %vm7333_vm0, %v7319_v40, %v7209_v11 }
 0x461   :  { %v7275_v12 = vpop.permute.xlu1 %7274 }
 0x462   :  { %v7354_v46 = vsel %vm7350_vm11, %v7337_v36, %v7275_v12  ;;  %v1901_v36 = vmul.f32 1.4142135, %v12081_v33 }
 0x463   :  { %7370 = vst [vmem:[#allocation2 + $0x18] sm:$0xff] %v7354_v46 }
 0x464   :  { %v7273_v38 = vpop.permute.xlu0 %7272  ;;  %v7327_v12 = vsel %vm7316_vm12, %v1901_v36, %v11596_v34 }
 0x465   :  { %v7353_v56 = vsel %vm7350_vm11, %v7336_v52, %v7273_v38 }
 0x466   :  { %7369 = vst [vmem:[#allocation2 + $0x10] sm:$0xff] %v7353_v56  ;;  %v1904_v56 = vmul.f32 1.4142135, %v12082_v27 }
 0x46a   :  { %v7215_v31 = vpop.permute.xlu1 %7214 }
 0x46b   :  { %v7339_v26 = vsel %vm7333_vm0, %v7322_v41, %v7215_v31  ;;  %v7330_v31 = vsel %vm7316_vm12, %v1904_v56, %v11598_v60  ;;  %v12083_v41 = vld [vmem:[#allocation26_spill] sm:$0xff]  ;;  %v12084_v60 = vld [vmem:[#allocation25_spill] sm:$0xff] }
 0x46d   :  { %v7213_v39 = vpop.permute.xlu0 %7212 }
 0x46e   :  { %v7338_v50 = vsel %vm7333_vm0, %v7321_v51, %v7213_v39 }
 0x46f   :  { %v7279_v15 = vpop.permute.xlu1 %7278 }
 0x470   :  { %v7356_v5 = vsel %vm7350_vm11, %v7339_v26, %v7279_v15  ;;  %v1903_v26 = vmul.f32 1.4142135, %v12083_v41 }
 0x471   :  { %7372 = vst [vmem:[#allocation2 + $0x28] sm:$0xff] %v7356_v5 }
 0x472   :  { %v7329_v15 = vsel %vm7316_vm12, %v1903_v26, %v11600_v47 }
 0x473   :  { %v7277_v28 = vpop.permute.xlu0 %7276 }
 0x474   :  { %v7355_v48 = vsel %vm7350_vm11, %v7338_v50, %v7277_v28  ;;  %v1906_v50 = vmul.f32 1.4142135, %v12084_v60 }
 0x475   :  { %7371 = vst [vmem:[#allocation2 + $0x20] sm:$0xff] %v7355_v48 }
 0x476   :  { %v7219_v8 = vpop.permute.xlu1 %7218  ;;  %v7332_v48 = vsel %vm7316_vm12, %v1906_v50, %v11602_v54 }
 0x477   :  { %v7341_v58 = vsel %vm7333_vm0, %v7324_v20, %v7219_v8  ;;  %v12085_v8 = vld [vmem:[#allocation14_spill] sm:$0xff] }
 0x478   :  { %v1905_v16 = vmul.f32 1.4142135, %v12085_v8 }
 0x47a   :  { %v7331_v20 = vsel %vm7316_vm12, %v1905_v16, %v11604_v25 }
 0x47c   :  { %v7217_v24 = vpop.permute.xlu0 %7216  ;;  %v7283_v30 = vpop.permute.xlu1 %7282 }
 0x47d   :  { %v7358_v18 = vsel %vm7350_vm11, %v7341_v58, %v7283_v30  ;;  %v7340_v61 = vsel %vm7333_vm0, %v7323_v55, %v7217_v24 }
 0x47e   :  { %7374 = vst [vmem:[#allocation2 + $0x38] sm:$0xff] %v7358_v18 }
 0x480   :  { %v7281_v21 = vpop.permute.xlu0 %7280 }
 0x481   :  { %v7357_v63 = vsel %vm7350_vm11, %v7340_v61, %v7281_v21 }
 0x482   :  { %7373 = vst [vmem:[#allocation2 + $0x30] sm:$0xff] %v7357_v63  ;;  %v7223_v35 = vpop.permute.xlu1 %7222 }
 0x483   :  { %v7343_v22 = vsel %vm7333_vm0, %v7326_v19, %v7223_v35 }
 0x487   :  { %v7221_v59 = vpop.permute.xlu0 %7220  ;;  %v7287_v23 = vpop.permute.xlu1 %7286 }
 0x488   :  { %v7360_v45 = vsel %vm7350_vm11, %v7343_v22, %v7287_v23  ;;  %v7342_v10 = vsel %vm7333_vm0, %v7325_v53, %v7221_v59 }
 0x489   :  { %7376 = vst [vmem:[#allocation2 + $0x48] sm:$0xff] %v7360_v45 }
 0x48b   :  { %v7285_v4 = vpop.permute.xlu0 %7284 }
 0x48c   :  { %v7359_v7 = vsel %vm7350_vm11, %v7342_v10, %v7285_v4 }
 0x48d   :  { %7375 = vst [vmem:[#allocation2 + $0x40] sm:$0xff] %v7359_v7  ;;  %v7227_v13 = vpop.permute.xlu1 %7226 }
 0x48e   :  { %v7345_v11 = vsel %vm7333_vm0, %v7328_v49, %v7227_v13 }
 0x492   :  { %v7225_v6 = vpop.permute.xlu0 %7224  ;;  %v7291_v17 = vpop.permute.xlu1 %7290 }
 0x493   :  { %v7362_v42 = vsel %vm7350_vm11, %v7345_v11, %v7291_v17  ;;  %v7344_v46 = vsel %vm7333_vm0, %v7327_v12, %v7225_v6 }
 0x494   :  { %7378 = vst [vmem:[#allocation2 + $0x58] sm:$0xff] %v7362_v42 }
 0x496   :  { %v7289_v40 = vpop.permute.xlu0 %7288 }
 0x497   :  { %v7361_v52 = vsel %vm7350_vm11, %v7344_v46, %v7289_v40 }
 0x498   :  { %7377 = vst [vmem:[#allocation2 + $0x50] sm:$0xff] %v7361_v52  ;;  %v7231_v38 = vpop.permute.xlu1 %7230 }
 0x499   :  { %v7347_v0 = vsel %vm7333_vm0, %v7330_v31, %v7231_v38 }
 0x49d   :  { %v7229_v62 = vpop.permute.xlu0 %7228  ;;  %v7295_v39 = vpop.permute.xlu1 %7294 }
 0x49e   :  { %v7364_v34 = vsel %vm7350_vm11, %v7347_v0, %v7295_v39  ;;  %v7346_v32 = vsel %vm7333_vm0, %v7329_v15, %v7229_v62 }
 0x49f   :  { %7380 = vst [vmem:[#allocation2 + $0x68] sm:$0xff] %v7364_v34 }
 0x4a1   :  { %v7293_v44 = vpop.permute.xlu0 %7292 }
 0x4a2   :  { %v7363_v5 = vsel %vm7350_vm11, %v7346_v32, %v7293_v44 }
 0x4a3   :  { %7379 = vst [vmem:[#allocation2 + $0x60] sm:$0xff] %v7363_v5  ;;  %v7235_v51 = vpop.permute.xlu1 %7234 }
 0x4a4   :  { %v7349_v3 = vsel %vm7333_vm0, %v7332_v48, %v7235_v51 }
 0x4a6   :  { %v7233_v28 = vpop.permute.xlu0 %7232 }
 0x4a7   :  { %v7348_v24 = vsel %vm7333_vm0, %v7331_v20, %v7233_v28 }
 0x4a8   :  { %v7299_v47 = vpop.permute.xlu1 %7298 }
 0x4a9   :  { %v7366_v58 = vsel %vm7350_vm11, %v7349_v3, %v7299_v47 }
 0x4aa   :  { %7382 = vst [vmem:[#allocation2 + $0x78] sm:$0xff] %v7366_v58  ;;  %v7297_v30 = vpop.permute.xlu0 %7296 }
 0x4ab   :  { %v7365_v37 = vsel %vm7350_vm11, %v7348_v24, %v7297_v30 }
 0x4ac   :  { %7381 = vst [vmem:[#allocation2 + $0x70] sm:$0xff] %v7365_v37 }
 0x4ad   :  { %8055 = shalt.err (!%p8052_p4)
}
 0x4ae   :  { %s8077_s19 = smov 128   ;;  %s8078_s20 = smov 8  }
 0x4af   :  { %7394 = dma.vmem_to_hbm [thread:$0]  %s7389_s1, 2048, %s11691_s2, [#allocation3], %s8077_s19, %s8077_s19, %s8078_s20  }
 0x4b0   :  { %8064 = dma.done.wait [#allocation3], 2048  }
 0x4b1   :  { %8065 = vsyncadd [#allocation3], 4294965248 }
 0x4b2   :  { %7398 = vsyncpa [#allocation3], 1 }

</bundles_post_ra>
